<compile_context>
chip_gen: v6e
topology: v6e:2x2x1
jax: 0.10.0
libtpu: 0.0.40
codegen_flags: <defaults>
</compile_context>

<pallas_src>
import functools
import math

import jax
import jax.numpy as jnp
from jax import lax
from jax.experimental import pallas as pl
from jax.experimental.pallas import tpu as pltpu

EPS = 0.0    # matches `eps = 0` in the reference module
LPAD = 128   # lane-aligned zero pad on each side of the flat row buffer (>= W+1)


def super_basic_block_kernel(x_ref, gamma_ref, beta_ref, w_ref, out_ref, row_ref,
                             *, width):
    # x_ref:     [N, C, H*W]             input, lane-dense (free reshape of NCHW)
    # gamma_ref: [1, C, 1]               BN weight
    # beta_ref:  [1, C, 1]               BN bias
    # w_ref:     [9*Cin, Cout, 1] (VMEM) conv weight columns, row t*Cin + ci,
    #                                    t = kh*3 + kw, NTK scale folded in
    # out_ref:   [N, Cout, H*W]          output, lane-dense
    # row_ref:   [3, N, C, LPAD+H*W+LPAD] scratch: zero-extended flat rows;
    #            variant 0 = unmasked (dw=0), 1 = col W-1 zeroed (dw=-1 taps),
    #            2 = col 0 zeroed (dw=+1 taps)
    n, c_in, hw = x_ref.shape
    c_out = out_ref.shape[1]

    x = x_ref[...].astype(jnp.float32)                   # [N, Cin, HW]

    # ---- BatchNorm2d (training-mode batch stats, biased var, eps=0), folded ----
    inv_cnt = 1.0 / float(n * hw)
    s1 = jnp.sum(x, axis=(0, 2), keepdims=True)          # [1, C, 1]
    s2 = jnp.sum(x * x, axis=(0, 2), keepdims=True)      # [1, C, 1]
    mean = s1 * inv_cnt
    var = jnp.maximum(s2 * inv_cnt - mean * mean, 0.0)   # clamp: cancellation guard
    scale = gamma_ref[...] * lax.rsqrt(var + EPS)        # [1, C, 1]
    shift = beta_ref[...] - mean * scale
    y = jnp.maximum(x * scale + shift, 0.0)              # fused affine + ReLU

    # ---- pre-masked column variants (2 selects total, instead of 6 per-tap) ----
    col = lax.broadcasted_iota(jnp.int32, (1, 1, hw), 2) % width
    y_dwm1 = jnp.where(col == width - 1, 0.0, y)    # source col W-1 zeroed -> dw=-1
    y_dwp1 = jnp.where(col == 0, 0.0, y)            # source col 0   zeroed -> dw=+1

    # ---- stage into zero-extended, lane-ALIGNED flat row buffers ----
    zeros_pad = jnp.zeros((3, n, c_in, LPAD), jnp.float32)
    row_ref[:, :, :, :LPAD] = zeros_pad
    row_ref[:, :, :, LPAD + hw:] = zeros_pad
    row_ref[0, :, :, LPAD:LPAD + hw] = y
    row_ref[1, :, :, LPAD:LPAD + hw] = y_dwm1
    row_ref[2, :, :, LPAD:LPAD + hw] = y_dwp1

    # ---- 3x3 conv (stride 1, zero pad 1, no bias) as 9 shifted taps on the VPU;
    #      identity shortcut folded into the accumulator init (fresh x reload) ----
    acc = x_ref[...].astype(jnp.float32)                 # [N, Cout, HW] accumulator
    tap_idx = 0
    for dh in (-1, 0, 1):
        for dw in (-1, 0, 1):
            variant = 0 if dw == 0 else (1 if dw == -1 else 2)
            off = LPAD + dh * width + dw
            tap = row_ref[variant, :, :, off:off + hw]   # [N, Cin, HW] offset load
            for ci in range(c_in):
                w_col = w_ref[tap_idx * c_in + ci]       # [Cout, 1]
                acc = acc + tap[:, ci:ci + 1, :] * w_col  # [N,1,HW]*[Cout,1]->[N,Cout,HW]
            tap_idx += 1

    out_ref[...] = acc.astype(out_ref.dtype)             # single full-tile store


def super_basic_block(x_nchw, gamma, beta, w_pt, ntk_scale):
    """x_nchw: [N, C, H, W] (PyTorch layout). Returns [N, C, H, W]."""
    n, c, h, w = x_nchw.shape
    c_out = w_pt.shape[0]
    assert c_out == c, "identity shortcut requires inplanes == planes"
    assert LPAD >= w + 1
    hw = h * w

    # Free reshape (no transpose): lane dim = H*W.
    x_flat = x_nchw.reshape(n, c, hw)
    # PyTorch weight [Cout, Cin, 3, 3] -> [(kh*3+kw)*Cin + ci, Cout, 1] columns,
    # NTK forward scale folded in (tiny host-side array).
    w_cols = (jnp.transpose(w_pt, (2, 3, 1, 0)).reshape(9 * c, c_out, 1)
              * ntk_scale).astype(jnp.float32)
    gamma3 = gamma.reshape(1, c, 1).astype(jnp.float32)
    beta3 = beta.reshape(1, c, 1).astype(jnp.float32)

    kernel = functools.partial(super_basic_block_kernel, width=w)

    out_flat = pl.pallas_call(
        kernel,
        out_shape=jax.ShapeDtypeStruct((n, c_out, hw), x_nchw.dtype),
        in_specs=[
            pl.BlockSpec(memory_space=pltpu.MemorySpace.VMEM),   # x (lane-dense)
            pl.BlockSpec(memory_space=pltpu.MemorySpace.VMEM),   # gamma
            pl.BlockSpec(memory_space=pltpu.MemorySpace.VMEM),   # beta
            pl.BlockSpec(memory_space=pltpu.MemorySpace.VMEM),   # conv weight columns
        ],
        out_specs=pl.BlockSpec(memory_space=pltpu.MemorySpace.VMEM),
        scratch_shapes=[pltpu.VMEM((3, n, c, LPAD + hw + LPAD), jnp.float32)],
    )(x_flat, gamma3, beta3, w_cols)

    return out_flat.reshape(n, c_out, h, w)


def reference(x, gamma, beta, w_pt, ntk_scale):
    """Pure-JAX reference of the PyTorch forward (NCHW)."""
    mean = jnp.mean(x, axis=(0, 2, 3), keepdims=True)
    var = jnp.mean((x - mean) ** 2, axis=(0, 2, 3), keepdims=True)
    y = (x - mean) / jnp.sqrt(var + EPS)
    y = y * gamma.reshape(1, -1, 1, 1) + beta.reshape(1, -1, 1, 1)
    y = jnp.maximum(y, 0.0)
    conv = lax.conv_general_dilated(
        y, w_pt * ntk_scale, window_strides=(1, 1), padding=((1, 1), (1, 1)),
        dimension_numbers=("NCHW", "OIHW", "NCHW"))
    return conv + x


if __name__ == "__main__":
    # SuperBasicBlock(inplanes=4, planes=4, stride=1, downsample=None)
    N, C, H, W = 2, 4, 16, 16
    key = jax.random.PRNGKey(0)
    k1, k2, k3, k4 = jax.random.split(key, 4)

    x = jax.random.normal(k1, (N, C, H, W), jnp.float32)
    gamma = 1.0 + 0.1 * jax.random.normal(k2, (C,), jnp.float32)   # bn1.weight
    beta = 0.1 * jax.random.normal(k3, (C,), jnp.float32)          # bn1.bias
    w_pt = jax.random.normal(k4, (C, C, 3, 3), jnp.float32)        # conv1.weight [Cout,Cin,3,3]
    ntk_scale = math.sqrt(2.0 / (C * 3 * 3))                       # NTK forward scale

    out = jax.block_until_ready(super_basic_block(x, gamma, beta, w_pt, ntk_scale))
    ref = reference(x, gamma, beta, w_pt, ntk_scale)

    assert out.shape == (N, C, H, W)
    err = float(jnp.max(jnp.abs(out - ref)))
    assert jnp.allclose(out, ref, atol=1e-4, rtol=1e-4), err
    print("KERNEL_OK")
</pallas_src>

<mosaic_0001>
module attributes {stable_mosaic.version = 11 : i64} {
  func.func @super_basic_block_kernel(%arg0: memref<2x4x256xf32, #tpu.memory_space<vmem>>, %arg1: memref<1x4x1xf32, #tpu.memory_space<vmem>>, %arg2: memref<1x4x1xf32, #tpu.memory_space<vmem>>, %arg3: memref<36x4x1xf32, #tpu.memory_space<vmem>>, %arg4: memref<2x4x256xf32, #tpu.memory_space<vmem>>, %arg5: memref<3x2x4x512xf32, #tpu.memory_space<vmem>>) attributes {dimension_semantics = [], scalar_prefetch = 0 : i64, scratch_operands = 1 : i64, tpu.core_type = #tpu.core_type<tc>} {
    %c0 = arith.constant 0 : index
    %c0_0 = arith.constant 0 : index
    %c0_1 = arith.constant 0 : index
    %0 = vector.load %arg0[%c0, %c0_0, %c0_1] : memref<2x4x256xf32, #tpu.memory_space<vmem>>, vector<2x4x256xf32>
    %cst = arith.constant dense<0.000000e+00> : vector<4xf32>
    %1 = vector.multi_reduction <add>, %0, %cst [0, 2] : vector<2x4x256xf32> to vector<4xf32>
    %2 = vector.shape_cast %1 : vector<4xf32> to vector<1x4x1xf32>
    %3 = arith.mulf %0, %0 : vector<2x4x256xf32>
    %cst_2 = arith.constant dense<0.000000e+00> : vector<4xf32>
    %4 = vector.multi_reduction <add>, %3, %cst_2 [0, 2] : vector<2x4x256xf32> to vector<4xf32>
    %5 = vector.shape_cast %4 : vector<4xf32> to vector<1x4x1xf32>
    %cst_3 = arith.constant 0.001953125 : f32
    %6 = vector.broadcast %cst_3 : f32 to vector<1x4x1xf32>
    %7 = arith.mulf %2, %6 : vector<1x4x1xf32>
    %cst_4 = arith.constant 0.001953125 : f32
    %8 = vector.broadcast %cst_4 : f32 to vector<1x4x1xf32>
    %9 = arith.mulf %5, %8 : vector<1x4x1xf32>
    %10 = arith.mulf %7, %7 : vector<1x4x1xf32>
    %11 = arith.subf %9, %10 : vector<1x4x1xf32>
    %cst_5 = arith.constant 0.000000e+00 : f32
    %12 = vector.broadcast %cst_5 : f32 to vector<1x4x1xf32>
    %13 = arith.maximumf %11, %12 : vector<1x4x1xf32>
    %c0_6 = arith.constant 0 : index
    %c0_7 = arith.constant 0 : index
    %c0_8 = arith.constant 0 : index
    %14 = vector.load %arg1[%c0_6, %c0_7, %c0_8] : memref<1x4x1xf32, #tpu.memory_space<vmem>>, vector<1x4x1xf32>
    %cst_9 = arith.constant 0.000000e+00 : f32
    %15 = vector.broadcast %cst_9 : f32 to vector<1x4x1xf32>
    %16 = arith.addf %13, %15 : vector<1x4x1xf32>
    %17 = math.rsqrt %16 : vector<1x4x1xf32>
    %18 = arith.mulf %14, %17 : vector<1x4x1xf32>
    %c0_10 = arith.constant 0 : index
    %c0_11 = arith.constant 0 : index
    %c0_12 = arith.constant 0 : index
    %19 = vector.load %arg2[%c0_10, %c0_11, %c0_12] : memref<1x4x1xf32, #tpu.memory_space<vmem>>, vector<1x4x1xf32>
    %20 = arith.mulf %7, %18 : vector<1x4x1xf32>
    %21 = arith.subf %19, %20 : vector<1x4x1xf32>
    %22 = vector.broadcast %18 : vector<1x4x1xf32> to vector<2x4x256xf32>
    %23 = arith.mulf %0, %22 : vector<2x4x256xf32>
    %24 = vector.broadcast %21 : vector<1x4x1xf32> to vector<2x4x256xf32>
    %25 = arith.addf %23, %24 : vector<2x4x256xf32>
    %cst_13 = arith.constant 0.000000e+00 : f32
    %26 = vector.broadcast %cst_13 : f32 to vector<2x4x256xf32>
    %27 = arith.maximumf %25, %26 : vector<2x4x256xf32>
    %28 = tpu.iota {dimensions = array<i32: 2>} : vector<1x1x256xi32>
    %c16_i32 = arith.constant 16 : i32
    %c0_i32 = arith.constant 0 : i32
    %29 = arith.cmpi eq, %c16_i32, %c0_i32 : i32
    %c1_i32 = arith.constant 1 : i32
    %30 = arith.select %29, %c1_i32, %c16_i32 : i32
    %31 = vector.broadcast %30 : i32 to vector<1x1x256xi32>
    %32 = arith.remsi %28, %31 : vector<1x1x256xi32>
    %c0_i32_14 = arith.constant 0 : i32
    %33 = vector.broadcast %c0_i32_14 : i32 to vector<1x1x256xi32>
    %34 = arith.cmpi ne, %32, %33 : vector<1x1x256xi32>
    %c0_i32_15 = arith.constant 0 : i32
    %35 = vector.broadcast %c0_i32_15 : i32 to vector<1x1x256xi32>
    %36 = arith.cmpi slt, %32, %35 : vector<1x1x256xi32>
    %c0_i32_16 = arith.constant 0 : i32
    %37 = arith.cmpi slt, %30, %c0_i32_16 : i32
    %38 = vector.broadcast %37 : i1 to vector<1x1x256xi1>
    %39 = vector.broadcast %38 : vector<1x1x256xi1> to vector<1x1x256xi1>
    %40 = arith.xori %36, %39 : vector<1x1x256xi1>
    %41 = arith.andi %40, %34 : vector<1x1x256xi1>
    %42 = vector.broadcast %30 : i32 to vector<1x1x256xi32>
    %43 = arith.addi %32, %42 : vector<1x1x256xi32>
    %44 = arith.select %41, %43, %32 : vector<1x1x256xi1>, vector<1x1x256xi32>
    %c15_i32 = arith.constant 15 : i32
    %45 = vector.broadcast %c15_i32 : i32 to vector<1x1x256xi32>
    %46 = arith.cmpi eq, %44, %45 : vector<1x1x256xi32>
    %cst_17 = arith.constant 0.000000e+00 : f32
    %47 = vector.shape_cast %46 : vector<1x1x256xi1> to vector<1x1x256xi1>
    %48 = vector.broadcast %47 : vector<1x1x256xi1> to vector<2x4x256xi1>
    %49 = vector.broadcast %cst_17 : f32 to vector<2x4x256xf32>
    %50 = arith.select %48, %49, %27 : vector<2x4x256xi1>, vector<2x4x256xf32>
    %c0_i32_18 = arith.constant 0 : i32
    %51 = vector.broadcast %c0_i32_18 : i32 to vector<1x1x256xi32>
    %52 = arith.cmpi eq, %44, %51 : vector<1x1x256xi32>
    %cst_19 = arith.constant 0.000000e+00 : f32
    %53 = vector.shape_cast %52 : vector<1x1x256xi1> to vector<1x1x256xi1>
    %54 = vector.broadcast %53 : vector<1x1x256xi1> to vector<2x4x256xi1>
    %55 = vector.broadcast %cst_19 : f32 to vector<2x4x256xf32>
    %56 = arith.select %54, %55, %27 : vector<2x4x256xi1>, vector<2x4x256xf32>
    %cst_20 = arith.constant 0.000000e+00 : f32
    %57 = vector.broadcast %cst_20 : f32 to vector<3x2x4x128xf32>
    %c0_21 = arith.constant 0 : index
    %c0_22 = arith.constant 0 : index
    %c0_23 = arith.constant 0 : index
    %c0_24 = arith.constant 0 : index
    %58 = vector.load %arg5[%c0_21, %c0_22, %c0_23, %c0_24] : memref<3x2x4x512xf32, #tpu.memory_space<vmem>>, vector<3x2x4x128xf32>
    tpu.vector_store %arg5[%c0_21, %c0_22, %c0_23, %c0_24], %57 {strides = array<i32>} : memref<3x2x4x512xf32, #tpu.memory_space<vmem>>, vector<3x2x4x128xf32>,
    %c0_25 = arith.constant 0 : index
    %c0_26 = arith.constant 0 : index
    %c0_27 = arith.constant 0 : index
    %c384 = arith.constant 384 : index
    %59 = vector.load %arg5[%c0_25, %c0_26, %c0_27, %c384] : memref<3x2x4x512xf32, #tpu.memory_space<vmem>>, vector<3x2x4x128xf32>
    tpu.vector_store %arg5[%c0_25, %c0_26, %c0_27, %c384], %57 {strides = array<i32>} : memref<3x2x4x512xf32, #tpu.memory_space<vmem>>, vector<3x2x4x128xf32>,
    %c0_28 = arith.constant 0 : index
    %c0_29 = arith.constant 0 : index
    %c0_30 = arith.constant 0 : index
    %c128 = arith.constant 128 : index
    %60 = vector.load %arg5[%c0_28, %c0_29, %c0_30, %c128] : memref<3x2x4x512xf32, #tpu.memory_space<vmem>>, vector<1x2x4x256xf32>
    %61 = vector.shape_cast %60 : vector<1x2x4x256xf32> to vector<2x4x256xf32>
    %62 = vector.shape_cast %27 : vector<2x4x256xf32> to vector<1x2x4x256xf32>
    tpu.vector_store %arg5[%c0_28, %c0_29, %c0_30, %c128], %62 {strides = array<i32>} : memref<3x2x4x512xf32, #tpu.memory_space<vmem>>, vector<1x2x4x256xf32>,
    %c1 = arith.constant 1 : index
    %c0_31 = arith.constant 0 : index
    %c0_32 = arith.constant 0 : index
    %c128_33 = arith.constant 128 : index
    %63 = vector.load %arg5[%c1, %c0_31, %c0_32, %c128_33] : memref<3x2x4x512xf32, #tpu.memory_space<vmem>>, vector<1x2x4x256xf32>
    %64 = vector.shape_cast %63 : vector<1x2x4x256xf32> to vector<2x4x256xf32>
    %65 = vector.shape_cast %50 : vector<2x4x256xf32> to vector<1x2x4x256xf32>
    tpu.vector_store %arg5[%c1, %c0_31, %c0_32, %c128_33], %65 {strides = array<i32>} : memref<3x2x4x512xf32, #tpu.memory_space<vmem>>, vector<1x2x4x256xf32>,
    %c2 = arith.constant 2 : index
    %c0_34 = arith.constant 0 : index
    %c0_35 = arith.constant 0 : index
    %c128_36 = arith.constant 128 : index
    %66 = vector.load %arg5[%c2, %c0_34, %c0_35, %c128_36] : memref<3x2x4x512xf32, #tpu.memory_space<vmem>>, vector<1x2x4x256xf32>
    %67 = vector.shape_cast %66 : vector<1x2x4x256xf32> to vector<2x4x256xf32>
    %68 = vector.shape_cast %56 : vector<2x4x256xf32> to vector<1x2x4x256xf32>
    tpu.vector_store %arg5[%c2, %c0_34, %c0_35, %c128_36], %68 {strides = array<i32>} : memref<3x2x4x512xf32, #tpu.memory_space<vmem>>, vector<1x2x4x256xf32>,
    %c0_37 = arith.constant 0 : index
    %c0_38 = arith.constant 0 : index
    %c0_39 = arith.constant 0 : index
    %69 = vector.load %arg0[%c0_37, %c0_38, %c0_39] : memref<2x4x256xf32, #tpu.memory_space<vmem>>, vector<2x4x256xf32>
    %c1_40 = arith.constant 1 : index
    %c0_41 = arith.constant 0 : index
    %c0_42 = arith.constant 0 : index
    %c111 = arith.constant 111 : index
    %70 = vector.load %arg5[%c1_40, %c0_41, %c0_42, %c111] : memref<3x2x4x512xf32, #tpu.memory_space<vmem>>, vector<1x2x4x256xf32>
    %71 = vector.shape_cast %70 : vector<1x2x4x256xf32> to vector<2x4x256xf32>
    %c0_43 = arith.constant 0 : index
    %c0_44 = arith.constant 0 : index
    %c0_45 = arith.constant 0 : index
    %72 = vector.load %arg3[%c0_43, %c0_44, %c0_45] : memref<36x4x1xf32, #tpu.memory_space<vmem>>, vector<1x4x1xf32>
    %73 = vector.shape_cast %72 : vector<1x4x1xf32> to vector<4x1xf32>
    %74 = vector.extract_strided_slice %71 {offsets = [0, 0, 0], sizes = [2, 1, 256], strides = [1, 1, 1]} : vector<2x4x256xf32> to vector<2x1x256xf32>
    %75 = vector.shape_cast %73 : vector<4x1xf32> to vector<1x4x1xf32>
    %76 = vector.broadcast %74 : vector<2x1x256xf32> to vector<2x4x256xf32>
    %77 = vector.broadcast %75 : vector<1x4x1xf32> to vector<2x4x256xf32>
    %78 = arith.mulf %76, %77 : vector<2x4x256xf32>
    %79 = arith.addf %69, %78 : vector<2x4x256xf32>
    %c1_46 = arith.constant 1 : index
    %c0_47 = arith.constant 0 : index
    %c0_48 = arith.constant 0 : index
    %80 = vector.load %arg3[%c1_46, %c0_47, %c0_48] : memref<36x4x1xf32, #tpu.memory_space<vmem>>, vector<1x4x1xf32>
    %81 = vector.shape_cast %80 : vector<1x4x1xf32> to vector<4x1xf32>
    %82 = vector.extract_strided_slice %71 {offsets = [0, 1, 0], sizes = [2, 1, 256], strides = [1, 1, 1]} : vector<2x4x256xf32> to vector<2x1x256xf32>
    %83 = vector.shape_cast %81 : vector<4x1xf32> to vector<1x4x1xf32>
    %84 = vector.broadcast %82 : vector<2x1x256xf32> to vector<2x4x256xf32>
    %85 = vector.broadcast %83 : vector<1x4x1xf32> to vector<2x4x256xf32>
    %86 = arith.mulf %84, %85 : vector<2x4x256xf32>
    %87 = arith.addf %79, %86 : vector<2x4x256xf32>
    %c2_49 = arith.constant 2 : index
    %c0_50 = arith.constant 0 : index
    %c0_51 = arith.constant 0 : index
    %88 = vector.load %arg3[%c2_49, %c0_50, %c0_51] : memref<36x4x1xf32, #tpu.memory_space<vmem>>, vector<1x4x1xf32>
    %89 = vector.shape_cast %88 : vector<1x4x1xf32> to vector<4x1xf32>
    %90 = vector.extract_strided_slice %71 {offsets = [0, 2, 0], sizes = [2, 1, 256], strides = [1, 1, 1]} : vector<2x4x256xf32> to vector<2x1x256xf32>
    %91 = vector.shape_cast %89 : vector<4x1xf32> to vector<1x4x1xf32>
    %92 = vector.broadcast %90 : vector<2x1x256xf32> to vector<2x4x256xf32>
    %93 = vector.broadcast %91 : vector<1x4x1xf32> to vector<2x4x256xf32>
    %94 = arith.mulf %92, %93 : vector<2x4x256xf32>
    %95 = arith.addf %87, %94 : vector<2x4x256xf32>
    %c3 = arith.constant 3 : index
    %c0_52 = arith.constant 0 : index
    %c0_53 = arith.constant 0 : index
    %96 = vector.load %arg3[%c3, %c0_52, %c0_53] : memref<36x4x1xf32, #tpu.memory_space<vmem>>, vector<1x4x1xf32>
    %97 = vector.shape_cast %96 : vector<1x4x1xf32> to vector<4x1xf32>
    %98 = vector.extract_strided_slice %71 {offsets = [0, 3, 0], sizes = [2, 1, 256], strides = [1, 1, 1]} : vector<2x4x256xf32> to vector<2x1x256xf32>
    %99 = vector.shape_cast %97 : vector<4x1xf32> to vector<1x4x1xf32>
    %100 = vector.broadcast %98 : vector<2x1x256xf32> to vector<2x4x256xf32>
    %101 = vector.broadcast %99 : vector<1x4x1xf32> to vector<2x4x256xf32>
    %102 = arith.mulf %100, %101 : vector<2x4x256xf32>
    %103 = arith.addf %95, %102 : vector<2x4x256xf32>
    %c0_54 = arith.constant 0 : index
    %c0_55 = arith.constant 0 : index
    %c0_56 = arith.constant 0 : index
    %c112 = arith.constant 112 : index
    %104 = vector.load %arg5[%c0_54, %c0_55, %c0_56, %c112] : memref<3x2x4x512xf32, #tpu.memory_space<vmem>>, vector<1x2x4x256xf32>
    %105 = vector.shape_cast %104 : vector<1x2x4x256xf32> to vector<2x4x256xf32>
    %c4 = arith.constant 4 : index
    %c0_57 = arith.constant 0 : index
    %c0_58 = arith.constant 0 : index
    %106 = vector.load %arg3[%c4, %c0_57, %c0_58] : memref<36x4x1xf32, #tpu.memory_space<vmem>>, vector<1x4x1xf32>
    %107 = vector.shape_cast %106 : vector<1x4x1xf32> to vector<4x1xf32>
    %108 = vector.extract_strided_slice %105 {offsets = [0, 0, 0], sizes = [2, 1, 256], strides = [1, 1, 1]} : vector<2x4x256xf32> to vector<2x1x256xf32>
    %109 = vector.shape_cast %107 : vector<4x1xf32> to vector<1x4x1xf32>
    %110 = vector.broadcast %108 : vector<2x1x256xf32> to vector<2x4x256xf32>
    %111 = vector.broadcast %109 : vector<1x4x1xf32> to vector<2x4x256xf32>
    %112 = arith.mulf %110, %111 : vector<2x4x256xf32>
    %113 = arith.addf %103, %112 : vector<2x4x256xf32>
    %c5 = arith.constant 5 : index
    %c0_59 = arith.constant 0 : index
    %c0_60 = arith.constant 0 : index
    %114 = vector.load %arg3[%c5, %c0_59, %c0_60] : memref<36x4x1xf32, #tpu.memory_space<vmem>>, vector<1x4x1xf32>
    %115 = vector.shape_cast %114 : vector<1x4x1xf32> to vector<4x1xf32>
    %116 = vector.extract_strided_slice %105 {offsets = [0, 1, 0], sizes = [2, 1, 256], strides = [1, 1, 1]} : vector<2x4x256xf32> to vector<2x1x256xf32>
    %117 = vector.shape_cast %115 : vector<4x1xf32> to vector<1x4x1xf32>
    %118 = vector.broadcast %116 : vector<2x1x256xf32> to vector<2x4x256xf32>
    %119 = vector.broadcast %117 : vector<1x4x1xf32> to vector<2x4x256xf32>
    %120 = arith.mulf %118, %119 : vector<2x4x256xf32>
    %121 = arith.addf %113, %120 : vector<2x4x256xf32>
    %c6 = arith.constant 6 : index
    %c0_61 = arith.constant 0 : index
    %c0_62 = arith.constant 0 : index
    %122 = vector.load %arg3[%c6, %c0_61, %c0_62] : memref<36x4x1xf32, #tpu.memory_space<vmem>>, vector<1x4x1xf32>
    %123 = vector.shape_cast %122 : vector<1x4x1xf32> to vector<4x1xf32>
    %124 = vector.extract_strided_slice %105 {offsets = [0, 2, 0], sizes = [2, 1, 256], strides = [1, 1, 1]} : vector<2x4x256xf32> to vector<2x1x256xf32>
    %125 = vector.shape_cast %123 : vector<4x1xf32> to vector<1x4x1xf32>
    %126 = vector.broadcast %124 : vector<2x1x256xf32> to vector<2x4x256xf32>
    %127 = vector.broadcast %125 : vector<1x4x1xf32> to vector<2x4x256xf32>
    %128 = arith.mulf %126, %127 : vector<2x4x256xf32>
    %129 = arith.addf %121, %128 : vector<2x4x256xf32>
    %c7 = arith.constant 7 : index
    %c0_63 = arith.constant 0 : index
    %c0_64 = arith.constant 0 : index
    %130 = vector.load %arg3[%c7, %c0_63, %c0_64] : memref<36x4x1xf32, #tpu.memory_space<vmem>>, vector<1x4x1xf32>
    %131 = vector.shape_cast %130 : vector<1x4x1xf32> to vector<4x1xf32>
    %132 = vector.extract_strided_slice %105 {offsets = [0, 3, 0], sizes = [2, 1, 256], strides = [1, 1, 1]} : vector<2x4x256xf32> to vector<2x1x256xf32>
    %133 = vector.shape_cast %131 : vector<4x1xf32> to vector<1x4x1xf32>
    %134 = vector.broadcast %132 : vector<2x1x256xf32> to vector<2x4x256xf32>
    %135 = vector.broadcast %133 : vector<1x4x1xf32> to vector<2x4x256xf32>
    %136 = arith.mulf %134, %135 : vector<2x4x256xf32>
    %137 = arith.addf %129, %136 : vector<2x4x256xf32>
    %c2_65 = arith.constant 2 : index
    %c0_66 = arith.constant 0 : index
    %c0_67 = arith.constant 0 : index
    %c113 = arith.constant 113 : index
    %138 = vector.load %arg5[%c2_65, %c0_66, %c0_67, %c113] : memref<3x2x4x512xf32, #tpu.memory_space<vmem>>, vector<1x2x4x256xf32>
    %139 = vector.shape_cast %138 : vector<1x2x4x256xf32> to vector<2x4x256xf32>
    %c8 = arith.constant 8 : index
    %c0_68 = arith.constant 0 : index
    %c0_69 = arith.constant 0 : index
    %140 = vector.load %arg3[%c8, %c0_68, %c0_69] : memref<36x4x1xf32, #tpu.memory_space<vmem>>, vector<1x4x1xf32>
    %141 = vector.shape_cast %140 : vector<1x4x1xf32> to vector<4x1xf32>
    %142 = vector.extract_strided_slice %139 {offsets = [0, 0, 0], sizes = [2, 1, 256], strides = [1, 1, 1]} : vector<2x4x256xf32> to vector<2x1x256xf32>
    %143 = vector.shape_cast %141 : vector<4x1xf32> to vector<1x4x1xf32>
    %144 = vector.broadcast %142 : vector<2x1x256xf32> to vector<2x4x256xf32>
    %145 = vector.broadcast %143 : vector<1x4x1xf32> to vector<2x4x256xf32>
    %146 = arith.mulf %144, %145 : vector<2x4x256xf32>
    %147 = arith.addf %137, %146 : vector<2x4x256xf32>
    %c9 = arith.constant 9 : index
    %c0_70 = arith.constant 0 : index
    %c0_71 = arith.constant 0 : index
    %148 = vector.load %arg3[%c9, %c0_70, %c0_71] : memref<36x4x1xf32, #tpu.memory_space<vmem>>, vector<1x4x1xf32>
    %149 = vector.shape_cast %148 : vector<1x4x1xf32> to vector<4x1xf32>
    %150 = vector.extract_strided_slice %139 {offsets = [0, 1, 0], sizes = [2, 1, 256], strides = [1, 1, 1]} : vector<2x4x256xf32> to vector<2x1x256xf32>
    %151 = vector.shape_cast %149 : vector<4x1xf32> to vector<1x4x1xf32>
    %152 = vector.broadcast %150 : vector<2x1x256xf32> to vector<2x4x256xf32>
    %153 = vector.broadcast %151 : vector<1x4x1xf32> to vector<2x4x256xf32>
    %154 = arith.mulf %152, %153 : vector<2x4x256xf32>
    %155 = arith.addf %147, %154 : vector<2x4x256xf32>
    %c10 = arith.constant 10 : index
    %c0_72 = arith.constant 0 : index
    %c0_73 = arith.constant 0 : index
    %156 = vector.load %arg3[%c10, %c0_72, %c0_73] : memref<36x4x1xf32, #tpu.memory_space<vmem>>, vector<1x4x1xf32>
    %157 = vector.shape_cast %156 : vector<1x4x1xf32> to vector<4x1xf32>
    %158 = vector.extract_strided_slice %139 {offsets = [0, 2, 0], sizes = [2, 1, 256], strides = [1, 1, 1]} : vector<2x4x256xf32> to vector<2x1x256xf32>
    %159 = vector.shape_cast %157 : vector<4x1xf32> to vector<1x4x1xf32>
    %160 = vector.broadcast %158 : vector<2x1x256xf32> to vector<2x4x256xf32>
    %161 = vector.broadcast %159 : vector<1x4x1xf32> to vector<2x4x256xf32>
    %162 = arith.mulf %160, %161 : vector<2x4x256xf32>
    %163 = arith.addf %155, %162 : vector<2x4x256xf32>
    %c11 = arith.constant 11 : index
    %c0_74 = arith.constant 0 : index
    %c0_75 = arith.constant 0 : index
    %164 = vector.load %arg3[%c11, %c0_74, %c0_75] : memref<36x4x1xf32, #tpu.memory_space<vmem>>, vector<1x4x1xf32>
    %165 = vector.shape_cast %164 : vector<1x4x1xf32> to vector<4x1xf32>
    %166 = vector.extract_strided_slice %139 {offsets = [0, 3, 0], sizes = [2, 1, 256], strides = [1, 1, 1]} : vector<2x4x256xf32> to vector<2x1x256xf32>
    %167 = vector.shape_cast %165 : vector<4x1xf32> to vector<1x4x1xf32>
    %168 = vector.broadcast %166 : vector<2x1x256xf32> to vector<2x4x256xf32>
    %169 = vector.broadcast %167 : vector<1x4x1xf32> to vector<2x4x256xf32>
    %170 = arith.mulf %168, %169 : vector<2x4x256xf32>
    %171 = arith.addf %163, %170 : vector<2x4x256xf32>
    %c1_76 = arith.constant 1 : index
    %c0_77 = arith.constant 0 : index
    %c0_78 = arith.constant 0 : index
    %c127 = arith.constant 127 : index
    %172 = vector.load %arg5[%c1_76, %c0_77, %c0_78, %c127] : memref<3x2x4x512xf32, #tpu.memory_space<vmem>>, vector<1x2x4x256xf32>
    %173 = vector.shape_cast %172 : vector<1x2x4x256xf32> to vector<2x4x256xf32>
    %c12 = arith.constant 12 : index
    %c0_79 = arith.constant 0 : index
    %c0_80 = arith.constant 0 : index
    %174 = vector.load %arg3[%c12, %c0_79, %c0_80] : memref<36x4x1xf32, #tpu.memory_space<vmem>>, vector<1x4x1xf32>
    %175 = vector.shape_cast %174 : vector<1x4x1xf32> to vector<4x1xf32>
    %176 = vector.extract_strided_slice %173 {offsets = [0, 0, 0], sizes = [2, 1, 256], strides = [1, 1, 1]} : vector<2x4x256xf32> to vector<2x1x256xf32>
    %177 = vector.shape_cast %175 : vector<4x1xf32> to vector<1x4x1xf32>
    %178 = vector.broadcast %176 : vector<2x1x256xf32> to vector<2x4x256xf32>
    %179 = vector.broadcast %177 : vector<1x4x1xf32> to vector<2x4x256xf32>
    %180 = arith.mulf %178, %179 : vector<2x4x256xf32>
    %181 = arith.addf %171, %180 : vector<2x4x256xf32>
    %c13 = arith.constant 13 : index
    %c0_81 = arith.constant 0 : index
    %c0_82 = arith.constant 0 : index
    %182 = vector.load %arg3[%c13, %c0_81, %c0_82] : memref<36x4x1xf32, #tpu.memory_space<vmem>>, vector<1x4x1xf32>
    %183 = vector.shape_cast %182 : vector<1x4x1xf32> to vector<4x1xf32>
    %184 = vector.extract_strided_slice %173 {offsets = [0, 1, 0], sizes = [2, 1, 256], strides = [1, 1, 1]} : vector<2x4x256xf32> to vector<2x1x256xf32>
    %185 = vector.shape_cast %183 : vector<4x1xf32> to vector<1x4x1xf32>
    %186 = vector.broadcast %184 : vector<2x1x256xf32> to vector<2x4x256xf32>
    %187 = vector.broadcast %185 : vector<1x4x1xf32> to vector<2x4x256xf32>
    %188 = arith.mulf %186, %187 : vector<2x4x256xf32>
    %189 = arith.addf %181, %188 : vector<2x4x256xf32>
    %c14 = arith.constant 14 : index
    %c0_83 = arith.constant 0 : index
    %c0_84 = arith.constant 0 : index
    %190 = vector.load %arg3[%c14, %c0_83, %c0_84] : memref<36x4x1xf32, #tpu.memory_space<vmem>>, vector<1x4x1xf32>
    %191 = vector.shape_cast %190 : vector<1x4x1xf32> to vector<4x1xf32>
    %192 = vector.extract_strided_slice %173 {offsets = [0, 2, 0], sizes = [2, 1, 256], strides = [1, 1, 1]} : vector<2x4x256xf32> to vector<2x1x256xf32>
    %193 = vector.shape_cast %191 : vector<4x1xf32> to vector<1x4x1xf32>
    %194 = vector.broadcast %192 : vector<2x1x256xf32> to vector<2x4x256xf32>
    %195 = vector.broadcast %193 : vector<1x4x1xf32> to vector<2x4x256xf32>
    %196 = arith.mulf %194, %195 : vector<2x4x256xf32>
    %197 = arith.addf %189, %196 : vector<2x4x256xf32>
    %c15 = arith.constant 15 : index
    %c0_85 = arith.constant 0 : index
    %c0_86 = arith.constant 0 : index
    %198 = vector.load %arg3[%c15, %c0_85, %c0_86] : memref<36x4x1xf32, #tpu.memory_space<vmem>>, vector<1x4x1xf32>
    %199 = vector.shape_cast %198 : vector<1x4x1xf32> to vector<4x1xf32>
    %200 = vector.extract_strided_slice %173 {offsets = [0, 3, 0], sizes = [2, 1, 256], strides = [1, 1, 1]} : vector<2x4x256xf32> to vector<2x1x256xf32>
    %201 = vector.shape_cast %199 : vector<4x1xf32> to vector<1x4x1xf32>
    %202 = vector.broadcast %200 : vector<2x1x256xf32> to vector<2x4x256xf32>
    %203 = vector.broadcast %201 : vector<1x4x1xf32> to vector<2x4x256xf32>
    %204 = arith.mulf %202, %203 : vector<2x4x256xf32>
    %205 = arith.addf %197, %204 : vector<2x4x256xf32>
    %c0_87 = arith.constant 0 : index
    %c0_88 = arith.constant 0 : index
    %c0_89 = arith.constant 0 : index
    %c128_90 = arith.constant 128 : index
    %206 = vector.load %arg5[%c0_87, %c0_88, %c0_89, %c128_90] : memref<3x2x4x512xf32, #tpu.memory_space<vmem>>, vector<1x2x4x256xf32>
    %207 = vector.shape_cast %206 : vector<1x2x4x256xf32> to vector<2x4x256xf32>
    %c16 = arith.constant 16 : index
    %c0_91 = arith.constant 0 : index
    %c0_92 = arith.constant 0 : index
    %208 = vector.load %arg3[%c16, %c0_91, %c0_92] : memref<36x4x1xf32, #tpu.memory_space<vmem>>, vector<1x4x1xf32>
    %209 = vector.shape_cast %208 : vector<1x4x1xf32> to vector<4x1xf32>
    %210 = vector.extract_strided_slice %207 {offsets = [0, 0, 0], sizes = [2, 1, 256], strides = [1, 1, 1]} : vector<2x4x256xf32> to vector<2x1x256xf32>
    %211 = vector.shape_cast %209 : vector<4x1xf32> to vector<1x4x1xf32>
    %212 = vector.broadcast %210 : vector<2x1x256xf32> to vector<2x4x256xf32>
    %213 = vector.broadcast %211 : vector<1x4x1xf32> to vector<2x4x256xf32>
    %214 = arith.mulf %212, %213 : vector<2x4x256xf32>
    %215 = arith.addf %205, %214 : vector<2x4x256xf32>
    %c17 = arith.constant 17 : index
    %c0_93 = arith.constant 0 : index
    %c0_94 = arith.constant 0 : index
    %216 = vector.load %arg3[%c17, %c0_93, %c0_94] : memref<36x4x1xf32, #tpu.memory_space<vmem>>, vector<1x4x1xf32>
    %217 = vector.shape_cast %216 : vector<1x4x1xf32> to vector<4x1xf32>
    %218 = vector.extract_strided_slice %207 {offsets = [0, 1, 0], sizes = [2, 1, 256], strides = [1, 1, 1]} : vector<2x4x256xf32> to vector<2x1x256xf32>
    %219 = vector.shape_cast %217 : vector<4x1xf32> to vector<1x4x1xf32>
    %220 = vector.broadcast %218 : vector<2x1x256xf32> to vector<2x4x256xf32>
    %221 = vector.broadcast %219 : vector<1x4x1xf32> to vector<2x4x256xf32>
    %222 = arith.mulf %220, %221 : vector<2x4x256xf32>
    %223 = arith.addf %215, %222 : vector<2x4x256xf32>
    %c18 = arith.constant 18 : index
    %c0_95 = arith.constant 0 : index
    %c0_96 = arith.constant 0 : index
    %224 = vector.load %arg3[%c18, %c0_95, %c0_96] : memref<36x4x1xf32, #tpu.memory_space<vmem>>, vector<1x4x1xf32>
    %225 = vector.shape_cast %224 : vector<1x4x1xf32> to vector<4x1xf32>
    %226 = vector.extract_strided_slice %207 {offsets = [0, 2, 0], sizes = [2, 1, 256], strides = [1, 1, 1]} : vector<2x4x256xf32> to vector<2x1x256xf32>
    %227 = vector.shape_cast %225 : vector<4x1xf32> to vector<1x4x1xf32>
    %228 = vector.broadcast %226 : vector<2x1x256xf32> to vector<2x4x256xf32>
    %229 = vector.broadcast %227 : vector<1x4x1xf32> to vector<2x4x256xf32>
    %230 = arith.mulf %228, %229 : vector<2x4x256xf32>
    %231 = arith.addf %223, %230 : vector<2x4x256xf32>
    %c19 = arith.constant 19 : index
    %c0_97 = arith.constant 0 : index
    %c0_98 = arith.constant 0 : index
    %232 = vector.load %arg3[%c19, %c0_97, %c0_98] : memref<36x4x1xf32, #tpu.memory_space<vmem>>, vector<1x4x1xf32>
    %233 = vector.shape_cast %232 : vector<1x4x1xf32> to vector<4x1xf32>
    %234 = vector.extract_strided_slice %207 {offsets = [0, 3, 0], sizes = [2, 1, 256], strides = [1, 1, 1]} : vector<2x4x256xf32> to vector<2x1x256xf32>
    %235 = vector.shape_cast %233 : vector<4x1xf32> to vector<1x4x1xf32>
    %236 = vector.broadcast %234 : vector<2x1x256xf32> to vector<2x4x256xf32>
    %237 = vector.broadcast %235 : vector<1x4x1xf32> to vector<2x4x256xf32>
    %238 = arith.mulf %236, %237 : vector<2x4x256xf32>
    %239 = arith.addf %231, %238 : vector<2x4x256xf32>
    %c2_99 = arith.constant 2 : index
    %c0_100 = arith.constant 0 : index
    %c0_101 = arith.constant 0 : index
    %c129 = arith.constant 129 : index
    %240 = vector.load %arg5[%c2_99, %c0_100, %c0_101, %c129] : memref<3x2x4x512xf32, #tpu.memory_space<vmem>>, vector<1x2x4x256xf32>
    %241 = vector.shape_cast %240 : vector<1x2x4x256xf32> to vector<2x4x256xf32>
    %c20 = arith.constant 20 : index
    %c0_102 = arith.constant 0 : index
    %c0_103 = arith.constant 0 : index
    %242 = vector.load %arg3[%c20, %c0_102, %c0_103] : memref<36x4x1xf32, #tpu.memory_space<vmem>>, vector<1x4x1xf32>
    %243 = vector.shape_cast %242 : vector<1x4x1xf32> to vector<4x1xf32>
    %244 = vector.extract_strided_slice %241 {offsets = [0, 0, 0], sizes = [2, 1, 256], strides = [1, 1, 1]} : vector<2x4x256xf32> to vector<2x1x256xf32>
    %245 = vector.shape_cast %243 : vector<4x1xf32> to vector<1x4x1xf32>
    %246 = vector.broadcast %244 : vector<2x1x256xf32> to vector<2x4x256xf32>
    %247 = vector.broadcast %245 : vector<1x4x1xf32> to vector<2x4x256xf32>
    %248 = arith.mulf %246, %247 : vector<2x4x256xf32>
    %249 = arith.addf %239, %248 : vector<2x4x256xf32>
    %c21 = arith.constant 21 : index
    %c0_104 = arith.constant 0 : index
    %c0_105 = arith.constant 0 : index
    %250 = vector.load %arg3[%c21, %c0_104, %c0_105] : memref<36x4x1xf32, #tpu.memory_space<vmem>>, vector<1x4x1xf32>
    %251 = vector.shape_cast %250 : vector<1x4x1xf32> to vector<4x1xf32>
    %252 = vector.extract_strided_slice %241 {offsets = [0, 1, 0], sizes = [2, 1, 256], strides = [1, 1, 1]} : vector<2x4x256xf32> to vector<2x1x256xf32>
    %253 = vector.shape_cast %251 : vector<4x1xf32> to vector<1x4x1xf32>
    %254 = vector.broadcast %252 : vector<2x1x256xf32> to vector<2x4x256xf32>
    %255 = vector.broadcast %253 : vector<1x4x1xf32> to vector<2x4x256xf32>
    %256 = arith.mulf %254, %255 : vector<2x4x256xf32>
    %257 = arith.addf %249, %256 : vector<2x4x256xf32>
    %c22 = arith.constant 22 : index
    %c0_106 = arith.constant 0 : index
    %c0_107 = arith.constant 0 : index
    %258 = vector.load %arg3[%c22, %c0_106, %c0_107] : memref<36x4x1xf32, #tpu.memory_space<vmem>>, vector<1x4x1xf32>
    %259 = vector.shape_cast %258 : vector<1x4x1xf32> to vector<4x1xf32>
    %260 = vector.extract_strided_slice %241 {offsets = [0, 2, 0], sizes = [2, 1, 256], strides = [1, 1, 1]} : vector<2x4x256xf32> to vector<2x1x256xf32>
    %261 = vector.shape_cast %259 : vector<4x1xf32> to vector<1x4x1xf32>
    %262 = vector.broadcast %260 : vector<2x1x256xf32> to vector<2x4x256xf32>
    %263 = vector.broadcast %261 : vector<1x4x1xf32> to vector<2x4x256xf32>
    %264 = arith.mulf %262, %263 : vector<2x4x256xf32>
    %265 = arith.addf %257, %264 : vector<2x4x256xf32>
    %c23 = arith.constant 23 : index
    %c0_108 = arith.constant 0 : index
    %c0_109 = arith.constant 0 : index
    %266 = vector.load %arg3[%c23, %c0_108, %c0_109] : memref<36x4x1xf32, #tpu.memory_space<vmem>>, vector<1x4x1xf32>
    %267 = vector.shape_cast %266 : vector<1x4x1xf32> to vector<4x1xf32>
    %268 = vector.extract_strided_slice %241 {offsets = [0, 3, 0], sizes = [2, 1, 256], strides = [1, 1, 1]} : vector<2x4x256xf32> to vector<2x1x256xf32>
    %269 = vector.shape_cast %267 : vector<4x1xf32> to vector<1x4x1xf32>
    %270 = vector.broadcast %268 : vector<2x1x256xf32> to vector<2x4x256xf32>
    %271 = vector.broadcast %269 : vector<1x4x1xf32> to vector<2x4x256xf32>
    %272 = arith.mulf %270, %271 : vector<2x4x256xf32>
    %273 = arith.addf %265, %272 : vector<2x4x256xf32>
    %c1_110 = arith.constant 1 : index
    %c0_111 = arith.constant 0 : index
    %c0_112 = arith.constant 0 : index
    %c143 = arith.constant 143 : index
    %274 = vector.load %arg5[%c1_110, %c0_111, %c0_112, %c143] : memref<3x2x4x512xf32, #tpu.memory_space<vmem>>, vector<1x2x4x256xf32>
    %275 = vector.shape_cast %274 : vector<1x2x4x256xf32> to vector<2x4x256xf32>
    %c24 = arith.constant 24 : index
    %c0_113 = arith.constant 0 : index
    %c0_114 = arith.constant 0 : index
    %276 = vector.load %arg3[%c24, %c0_113, %c0_114] : memref<36x4x1xf32, #tpu.memory_space<vmem>>, vector<1x4x1xf32>
    %277 = vector.shape_cast %276 : vector<1x4x1xf32> to vector<4x1xf32>
    %278 = vector.extract_strided_slice %275 {offsets = [0, 0, 0], sizes = [2, 1, 256], strides = [1, 1, 1]} : vector<2x4x256xf32> to vector<2x1x256xf32>
    %279 = vector.shape_cast %277 : vector<4x1xf32> to vector<1x4x1xf32>
    %280 = vector.broadcast %278 : vector<2x1x256xf32> to vector<2x4x256xf32>
    %281 = vector.broadcast %279 : vector<1x4x1xf32> to vector<2x4x256xf32>
    %282 = arith.mulf %280, %281 : vector<2x4x256xf32>
    %283 = arith.addf %273, %282 : vector<2x4x256xf32>
    %c25 = arith.constant 25 : index
    %c0_115 = arith.constant 0 : index
    %c0_116 = arith.constant 0 : index
    %284 = vector.load %arg3[%c25, %c0_115, %c0_116] : memref<36x4x1xf32, #tpu.memory_space<vmem>>, vector<1x4x1xf32>
    %285 = vector.shape_cast %284 : vector<1x4x1xf32> to vector<4x1xf32>
    %286 = vector.extract_strided_slice %275 {offsets = [0, 1, 0], sizes = [2, 1, 256], strides = [1, 1, 1]} : vector<2x4x256xf32> to vector<2x1x256xf32>
    %287 = vector.shape_cast %285 : vector<4x1xf32> to vector<1x4x1xf32>
    %288 = vector.broadcast %286 : vector<2x1x256xf32> to vector<2x4x256xf32>
    %289 = vector.broadcast %287 : vector<1x4x1xf32> to vector<2x4x256xf32>
    %290 = arith.mulf %288, %289 : vector<2x4x256xf32>
    %291 = arith.addf %283, %290 : vector<2x4x256xf32>
    %c26 = arith.constant 26 : index
    %c0_117 = arith.constant 0 : index
    %c0_118 = arith.constant 0 : index
    %292 = vector.load %arg3[%c26, %c0_117, %c0_118] : memref<36x4x1xf32, #tpu.memory_space<vmem>>, vector<1x4x1xf32>
    %293 = vector.shape_cast %292 : vector<1x4x1xf32> to vector<4x1xf32>
    %294 = vector.extract_strided_slice %275 {offsets = [0, 2, 0], sizes = [2, 1, 256], strides = [1, 1, 1]} : vector<2x4x256xf32> to vector<2x1x256xf32>
    %295 = vector.shape_cast %293 : vector<4x1xf32> to vector<1x4x1xf32>
    %296 = vector.broadcast %294 : vector<2x1x256xf32> to vector<2x4x256xf32>
    %297 = vector.broadcast %295 : vector<1x4x1xf32> to vector<2x4x256xf32>
    %298 = arith.mulf %296, %297 : vector<2x4x256xf32>
    %299 = arith.addf %291, %298 : vector<2x4x256xf32>
    %c27 = arith.constant 27 : index
    %c0_119 = arith.constant 0 : index
    %c0_120 = arith.constant 0 : index
    %300 = vector.load %arg3[%c27, %c0_119, %c0_120] : memref<36x4x1xf32, #tpu.memory_space<vmem>>, vector<1x4x1xf32>
    %301 = vector.shape_cast %300 : vector<1x4x1xf32> to vector<4x1xf32>
    %302 = vector.extract_strided_slice %275 {offsets = [0, 3, 0], sizes = [2, 1, 256], strides = [1, 1, 1]} : vector<2x4x256xf32> to vector<2x1x256xf32>
    %303 = vector.shape_cast %301 : vector<4x1xf32> to vector<1x4x1xf32>
    %304 = vector.broadcast %302 : vector<2x1x256xf32> to vector<2x4x256xf32>
    %305 = vector.broadcast %303 : vector<1x4x1xf32> to vector<2x4x256xf32>
    %306 = arith.mulf %304, %305 : vector<2x4x256xf32>
    %307 = arith.addf %299, %306 : vector<2x4x256xf32>
    %c0_121 = arith.constant 0 : index
    %c0_122 = arith.constant 0 : index
    %c0_123 = arith.constant 0 : index
    %c144 = arith.constant 144 : index
    %308 = vector.load %arg5[%c0_121, %c0_122, %c0_123, %c144] : memref<3x2x4x512xf32, #tpu.memory_space<vmem>>, vector<1x2x4x256xf32>
    %309 = vector.shape_cast %308 : vector<1x2x4x256xf32> to vector<2x4x256xf32>
    %c28 = arith.constant 28 : index
    %c0_124 = arith.constant 0 : index
    %c0_125 = arith.constant 0 : index
    %310 = vector.load %arg3[%c28, %c0_124, %c0_125] : memref<36x4x1xf32, #tpu.memory_space<vmem>>, vector<1x4x1xf32>
    %311 = vector.shape_cast %310 : vector<1x4x1xf32> to vector<4x1xf32>
    %312 = vector.extract_strided_slice %309 {offsets = [0, 0, 0], sizes = [2, 1, 256], strides = [1, 1, 1]} : vector<2x4x256xf32> to vector<2x1x256xf32>
    %313 = vector.shape_cast %311 : vector<4x1xf32> to vector<1x4x1xf32>
    %314 = vector.broadcast %312 : vector<2x1x256xf32> to vector<2x4x256xf32>
    %315 = vector.broadcast %313 : vector<1x4x1xf32> to vector<2x4x256xf32>
    %316 = arith.mulf %314, %315 : vector<2x4x256xf32>
    %317 = arith.addf %307, %316 : vector<2x4x256xf32>
    %c29 = arith.constant 29 : index
    %c0_126 = arith.constant 0 : index
    %c0_127 = arith.constant 0 : index
    %318 = vector.load %arg3[%c29, %c0_126, %c0_127] : memref<36x4x1xf32, #tpu.memory_space<vmem>>, vector<1x4x1xf32>
    %319 = vector.shape_cast %318 : vector<1x4x1xf32> to vector<4x1xf32>
    %320 = vector.extract_strided_slice %309 {offsets = [0, 1, 0], sizes = [2, 1, 256], strides = [1, 1, 1]} : vector<2x4x256xf32> to vector<2x1x256xf32>
    %321 = vector.shape_cast %319 : vector<4x1xf32> to vector<1x4x1xf32>
    %322 = vector.broadcast %320 : vector<2x1x256xf32> to vector<2x4x256xf32>
    %323 = vector.broadcast %321 : vector<1x4x1xf32> to vector<2x4x256xf32>
    %324 = arith.mulf %322, %323 : vector<2x4x256xf32>
    %325 = arith.addf %317, %324 : vector<2x4x256xf32>
    %c30 = arith.constant 30 : index
    %c0_128 = arith.constant 0 : index
    %c0_129 = arith.constant 0 : index
    %326 = vector.load %arg3[%c30, %c0_128, %c0_129] : memref<36x4x1xf32, #tpu.memory_space<vmem>>, vector<1x4x1xf32>
    %327 = vector.shape_cast %326 : vector<1x4x1xf32> to vector<4x1xf32>
    %328 = vector.extract_strided_slice %309 {offsets = [0, 2, 0], sizes = [2, 1, 256], strides = [1, 1, 1]} : vector<2x4x256xf32> to vector<2x1x256xf32>
    %329 = vector.shape_cast %327 : vector<4x1xf32> to vector<1x4x1xf32>
    %330 = vector.broadcast %328 : vector<2x1x256xf32> to vector<2x4x256xf32>
    %331 = vector.broadcast %329 : vector<1x4x1xf32> to vector<2x4x256xf32>
    %332 = arith.mulf %330, %331 : vector<2x4x256xf32>
    %333 = arith.addf %325, %332 : vector<2x4x256xf32>
    %c31 = arith.constant 31 : index
    %c0_130 = arith.constant 0 : index
    %c0_131 = arith.constant 0 : index
    %334 = vector.load %arg3[%c31, %c0_130, %c0_131] : memref<36x4x1xf32, #tpu.memory_space<vmem>>, vector<1x4x1xf32>
    %335 = vector.shape_cast %334 : vector<1x4x1xf32> to vector<4x1xf32>
    %336 = vector.extract_strided_slice %309 {offsets = [0, 3, 0], sizes = [2, 1, 256], strides = [1, 1, 1]} : vector<2x4x256xf32> to vector<2x1x256xf32>
    %337 = vector.shape_cast %335 : vector<4x1xf32> to vector<1x4x1xf32>
    %338 = vector.broadcast %336 : vector<2x1x256xf32> to vector<2x4x256xf32>
    %339 = vector.broadcast %337 : vector<1x4x1xf32> to vector<2x4x256xf32>
    %340 = arith.mulf %338, %339 : vector<2x4x256xf32>
    %341 = arith.addf %333, %340 : vector<2x4x256xf32>
    %c2_132 = arith.constant 2 : index
    %c0_133 = arith.constant 0 : index
    %c0_134 = arith.constant 0 : index
    %c145 = arith.constant 145 : index
    %342 = vector.load %arg5[%c2_132, %c0_133, %c0_134, %c145] : memref<3x2x4x512xf32, #tpu.memory_space<vmem>>, vector<1x2x4x256xf32>
    %343 = vector.shape_cast %342 : vector<1x2x4x256xf32> to vector<2x4x256xf32>
    %c32 = arith.constant 32 : index
    %c0_135 = arith.constant 0 : index
    %c0_136 = arith.constant 0 : index
    %344 = vector.load %arg3[%c32, %c0_135, %c0_136] : memref<36x4x1xf32, #tpu.memory_space<vmem>>, vector<1x4x1xf32>
    %345 = vector.shape_cast %344 : vector<1x4x1xf32> to vector<4x1xf32>
    %346 = vector.extract_strided_slice %343 {offsets = [0, 0, 0], sizes = [2, 1, 256], strides = [1, 1, 1]} : vector<2x4x256xf32> to vector<2x1x256xf32>
    %347 = vector.shape_cast %345 : vector<4x1xf32> to vector<1x4x1xf32>
    %348 = vector.broadcast %346 : vector<2x1x256xf32> to vector<2x4x256xf32>
    %349 = vector.broadcast %347 : vector<1x4x1xf32> to vector<2x4x256xf32>
    %350 = arith.mulf %348, %349 : vector<2x4x256xf32>
    %351 = arith.addf %341, %350 : vector<2x4x256xf32>
    %c33 = arith.constant 33 : index
    %c0_137 = arith.constant 0 : index
    %c0_138 = arith.constant 0 : index
    %352 = vector.load %arg3[%c33, %c0_137, %c0_138] : memref<36x4x1xf32, #tpu.memory_space<vmem>>, vector<1x4x1xf32>
    %353 = vector.shape_cast %352 : vector<1x4x1xf32> to vector<4x1xf32>
    %354 = vector.extract_strided_slice %343 {offsets = [0, 1, 0], sizes = [2, 1, 256], strides = [1, 1, 1]} : vector<2x4x256xf32> to vector<2x1x256xf32>
    %355 = vector.shape_cast %353 : vector<4x1xf32> to vector<1x4x1xf32>
    %356 = vector.broadcast %354 : vector<2x1x256xf32> to vector<2x4x256xf32>
    %357 = vector.broadcast %355 : vector<1x4x1xf32> to vector<2x4x256xf32>
    %358 = arith.mulf %356, %357 : vector<2x4x256xf32>
    %359 = arith.addf %351, %358 : vector<2x4x256xf32>
    %c34 = arith.constant 34 : index
    %c0_139 = arith.constant 0 : index
    %c0_140 = arith.constant 0 : index
    %360 = vector.load %arg3[%c34, %c0_139, %c0_140] : memref<36x4x1xf32, #tpu.memory_space<vmem>>, vector<1x4x1xf32>
    %361 = vector.shape_cast %360 : vector<1x4x1xf32> to vector<4x1xf32>
    %362 = vector.extract_strided_slice %343 {offsets = [0, 2, 0], sizes = [2, 1, 256], strides = [1, 1, 1]} : vector<2x4x256xf32> to vector<2x1x256xf32>
    %363 = vector.shape_cast %361 : vector<4x1xf32> to vector<1x4x1xf32>
    %364 = vector.broadcast %362 : vector<2x1x256xf32> to vector<2x4x256xf32>
    %365 = vector.broadcast %363 : vector<1x4x1xf32> to vector<2x4x256xf32>
    %366 = arith.mulf %364, %365 : vector<2x4x256xf32>
    %367 = arith.addf %359, %366 : vector<2x4x256xf32>
    %c35 = arith.constant 35 : index
    %c0_141 = arith.constant 0 : index
    %c0_142 = arith.constant 0 : index
    %368 = vector.load %arg3[%c35, %c0_141, %c0_142] : memref<36x4x1xf32, #tpu.memory_space<vmem>>, vector<1x4x1xf32>
    %369 = vector.shape_cast %368 : vector<1x4x1xf32> to vector<4x1xf32>
    %370 = vector.extract_strided_slice %343 {offsets = [0, 3, 0], sizes = [2, 1, 256], strides = [1, 1, 1]} : vector<2x4x256xf32> to vector<2x1x256xf32>
    %371 = vector.shape_cast %369 : vector<4x1xf32> to vector<1x4x1xf32>
    %372 = vector.broadcast %370 : vector<2x1x256xf32> to vector<2x4x256xf32>
    %373 = vector.broadcast %371 : vector<1x4x1xf32> to vector<2x4x256xf32>
    %374 = arith.mulf %372, %373 : vector<2x4x256xf32>
    %375 = arith.addf %367, %374 : vector<2x4x256xf32>
    %c0_143 = arith.constant 0 : index
    %c0_144 = arith.constant 0 : index
    %c0_145 = arith.constant 0 : index
    %376 = vector.load %arg4[%c0_143, %c0_144, %c0_145] : memref<2x4x256xf32, #tpu.memory_space<vmem>>, vector<2x4x256xf32>
    tpu.vector_store %arg4[%c0_143, %c0_144, %c0_145], %375 {strides = array<i32>} : memref<2x4x256xf32, #tpu.memory_space<vmem>>, vector<2x4x256xf32>,
    return
  }
}

</mosaic_0001>

<bundles_post_ra>
// kernel: tpu_custom_call.1
= control target key start
LH: loop header
LB: loop body
LE: loop exit
PB: predicated region body
PF: predicated region fallthrough
CT: control target
= control target key end

     0   :  { %v3625_v2 = vmov 0   ;;  %vm26_vm0 = vcmask 1043456   ;;  %s5368_s0 = inlined_call_operand.vmem [shape: f32[2,4,256], index: 0, kind: input, shape index: {}]   ;;  %s5369_s1 = inlined_call_operand.vmem [shape: f32[1,4,1], index: 1, kind: input, shape index: {}]   ;;  %s5370_s2 = inlined_call_operand.vmem [shape: f32[1,4,1], index: 2, kind: input, shape index: {}]   ;;  %s5371_s3 = inlined_call_operand.vmem [shape: f32[36,4,1], index: 3, kind: input, shape index: {}]   ;;  %s5372_s4 = inlined_call_operand.hbm [shape: f32[2,4,256], index: 4, kind: output, shape index: {}]  }
   0x1   :  { %v3547_v0 = vld [vmem:[%s5371_s3 + $0x4] sm:$0xf]  ;;  %3597 = vset.pattern.permute.xlu1 %v3625_v2  ;;  %v3675_v3 = vld [vmem:[%s5368_s0 + $0x8] sm:$0xff]  ;;  %3596 = vset.pattern.permute.xlu0 %v3625_v2  ;;  %v3551_v26 = vld [vmem:[%s5371_s3 + $0x14] sm:$0xf] }
   0x2   :  { %v3670_v1 = vld [vmem:[%s5368_s0] sm:$0xff]  ;;  %347 = vperm.xlu1 %3597, %v3547_v0   ;;  %v23_v6 = vcombine.high %v3675_v3, %v3675_v3  ;;  %v37_v8 = vmul.f32 %v3675_v3, %v3675_v3  ;;  %v3548_v9 = vld [vmem:[%s5371_s3 + $0x8] sm:$0xf]  ;;  %v30_v11 = vsel %vm26_vm0, %v3675_v3, 0.0  ;;  %v3549_v21 = vld [vmem:[%s5371_s3 + $0xc] sm:$0xf] }
   0x3   :  { %v22_v4 = vcombine.high %v3670_v1, %v3670_v1  ;;  %v36_v5 = vmul.f32 %v3670_v1, %v3670_v1  ;;  %v27_v7 = vsel %vm26_vm0, %v3670_v1, 0.0 }
   0x4   :  { %v41_v15 = vcombine.high %v37_v8, %v37_v8  ;;  %v32_v16 = vsel %vm26_vm0, %v23_v6, 0.0  ;;  %v47_v18 = vsel %vm26_vm0, %v37_v8, 0.0 }
   0x5   :  { %v28_v10 = vsel %vm26_vm0, %v22_v4, 0.0  ;;  %v40_v12 = vcombine.high %v36_v5, %v36_v5  ;;  %v44_v13 = vsel %vm26_vm0, %v36_v5, 0.0 }
   0x6   :  { %v29_v14 = vadd.f32 %v28_v10, %v27_v7  ;;  %442 = vperm.xlu1 %3597, %v3548_v9   ;;  %v49_v22 = vsel %vm26_vm0, %v41_v15, 0.0 }
   0x7   :  { %v45_v17 = vsel %vm26_vm0, %v40_v12, 0.0 }
   0x8   :  { %v31_v19 = vadd.f32 %v30_v11, %v29_v14  ;;  %v46_v20 = vadd.f32 %v45_v17, %v44_v13 }
   0xa   :  { %v33_v23 = vadd.f32 %v32_v16, %v31_v19  ;;  %v48_v24 = vadd.f32 %v47_v18, %v46_v20  ;;  %537 = vperm.xlu1 %3597, %v3549_v21  }
   0xc   :  { %34 = vadd.xlane.f32.xlu0 %v33_v23  ;;  %v50_v25 = vadd.f32 %v49_v22, %v48_v24 }
   0xe   :  { %736 = vperm.xlu1 %3597, %v3551_v26  }
  0x10   :  { %51 = vadd.xlane.f32.xlu0 %v50_v25 }
  0x11   :  { %9 = vsyncpa [#allocation4], 0  ;;  %v3553_v27 = vld [vmem:[%s5371_s3 + $0x1c] sm:$0xf]  ;;  %v3555_v28 = vld [vmem:[%s5371_s3 + $0x24] sm:$0xf]  ;;  %v5373_v6 = vlaneseq }
  0x12   :  { %926 = vperm.xlu1 %3597, %v3553_v27   ;;  %v3557_v29 = vld [vmem:[%s5371_s3 + $0x2c] sm:$0xf]  ;;  %v3559_v30 = vld [vmem:[%s5371_s3 + $0x34] sm:$0xf]  ;;  %v3626_v31 = vmov 0.0   ;;  %s3628_s13 = smov 113  }
  0x13   :  { %158 = vst [vmem:[#allocation2 + $0x4c] sm:$0xf] %v3626_v31  ;;  %148 = vst [vmem:[#allocation2] sm:$0xf] %v3626_v31  ;;  %v3561_v32 = vld [vmem:[%s5371_s3 + $0x3c] sm:$0xf] }
  0x14   :  { %149 = vst [vmem:[#allocation2 + $0x10] sm:$0xf] %v3626_v31  ;;  %150 = vst [vmem:[#allocation2 + $0x20] sm:$0xf] %v3626_v31  ;;  %v190_v33 = vld [vmem:[%s5371_s3] sm:$0xf] }
  0x15   :  { %151 = vst [vmem:[#allocation2 + $0x30] sm:$0xf] %v3626_v31  ;;  %152 = vst [vmem:[#allocation2 + $0x40] sm:$0xf] %v3626_v31  ;;  %v3563_v34 = vld [vmem:[%s5371_s3 + $0x44] sm:$0xf] }
  0x16   :  { %1125 = vperm.xlu1 %3597, %v3555_v28   ;;  %153 = vst [vmem:[#allocation2 + $0x50] sm:$0xf] %v3626_v31  ;;  %154 = vst [vmem:[#allocation2 + $0xc] sm:$0xf] %v3626_v31  ;;  %v3550_v35 = vld [vmem:[%s5371_s3 + $0x10] sm:$0xf] }
  0x17   :  { %155 = vst [vmem:[#allocation2 + $0x1c] sm:$0xf] %v3626_v31  ;;  %156 = vst [vmem:[#allocation2 + $0x2c] sm:$0xf] %v3626_v31  ;;  %v3565_v36 = vld [vmem:[%s5371_s3 + $0x4c] sm:$0xf] }
  0x18   :  { %157 = vst [vmem:[#allocation2 + $0x3c] sm:$0xf] %v3626_v31  ;;  %159 = vst [vmem:[#allocation2 + $0x5c] sm:$0xf] %v3626_v31  ;;  %v3552_v37 = vld [vmem:[%s5371_s3 + $0x18] sm:$0xf] }
  0x19   :  { %v3567_v38 = vld [vmem:[%s5371_s3 + $0x54] sm:$0xf]  ;;  %v3554_v39 = vld [vmem:[%s5371_s3 + $0x20] sm:$0xf]  ;;  %v3569_v40 = vld [vmem:[%s5371_s3 + $0x5c] sm:$0xf] }
  0x1a   :  { %1315 = vperm.xlu1 %3597, %v3557_v29   ;;  %v3556_v41 = vld [vmem:[%s5371_s3 + $0x28] sm:$0xf]  ;;  %v3571_v42 = vld [vmem:[%s5371_s3 + $0x64] sm:$0xf]  ;;  %v3558_v43 = vld [vmem:[%s5371_s3 + $0x30] sm:$0xf] }
  0x1b   :  { %v3573_v44 = vld [vmem:[%s5371_s3 + $0x6c] sm:$0xf]  ;;  %v3560_v45 = vld [vmem:[%s5371_s3 + $0x38] sm:$0xf]  ;;  %v3575_v46 = vld [vmem:[%s5371_s3 + $0x74] sm:$0xf] }
  0x1c   :  { %v3562_v47 = vld [vmem:[%s5371_s3 + $0x40] sm:$0xf]  ;;  %v3577_v48 = vld [vmem:[%s5371_s3 + $0x7c] sm:$0xf]  ;;  %v3564_v49 = vld [vmem:[%s5371_s3 + $0x48] sm:$0xf] }
  0x1d   :  { %v3579_v50 = vld [vmem:[%s5371_s3 + $0x84] sm:$0xf]  ;;  %v3566_v51 = vld [vmem:[%s5371_s3 + $0x50] sm:$0xf]  ;;  %v3581_v52 = vld [vmem:[%s5371_s3 + $0x8c] sm:$0xf] }
  0x1e   :  { %1514 = vperm.xlu1 %3597, %v3559_v30   ;;  %v3568_v53 = vld [vmem:[%s5371_s3 + $0x58] sm:$0xf]  ;;  %v3570_v54 = vld [vmem:[%s5371_s3 + $0x60] sm:$0xf]  ;;  %v3572_v55 = vld [vmem:[%s5371_s3 + $0x68] sm:$0xf] }
  0x1f   :  { %v3574_v56 = vld [vmem:[%s5371_s3 + $0x70] sm:$0xf]  ;;  %v3576_v57 = vld [vmem:[%s5371_s3 + $0x78] sm:$0xf]  ;;  %v3578_v58 = vld [vmem:[%s5371_s3 + $0x80] sm:$0xf] }
  0x20   :  { %v3580_v59 = vld [vmem:[%s5371_s3 + $0x88] sm:$0xf]  ;;  %v3819_v8 = vshrl.u32 %v5373_v6, 7  ;;  %v1974_v13 = vld [vmem:[#allocation2 + $0x4c] sm:$0xf]  ;;  %s3627_s3 = smov 127  }
  0x21   :  { %v1976_v17 = vld [vmem:[#allocation2 + $0x5c] sm:$0xf]  ;;  %s3629_s14 = smov 112   ;;  %s3630_s17 = smov 111   ;;  %vm670_vm5 = vcmask 130048   ;;  %vm281_vm6 = vcmask 138240  }
  0x22   :  { %1704 = vperm.xlu1 %3597, %v3561_v32   ;;  %v3826_v11 = vsub.s32 1, %v3819_v8  ;;  %v3840_v21 = vsub.s32 3, %v3819_v8  ;;  %s3634_s20 = smov 15   ;;  %s3635_s21 = smov 1   ;;  %vm1059_vm7 = vcmask 121856   ;;  %vm1448_vm8 = vcmask 7168  }
  0x23   :  { %vm2069_vm9 = vcmask 1039360   ;;  %vm2458_vm10 = vcmask 924672   ;;  %vm2847_vm11 = vcmask 916480   ;;  %vm3236_vm12 = vcmask 908288  }
  0x24   :  { %5410 = vst [vmem:[#allocation6_spill] sm:$0xff] %v3826_v11  ;;  %v2090_v15 = vrot.slane %v1974_v13, %v3826_v11  ;;  %v2102_v20 = vrot.slane %v1976_v17, %v3826_v11  ;;  %v2280_v26 = vrot.slane %v1974_v13, %v3840_v21  ;;  %v2292_v30 = vrot.slane %v1976_v17, %v3840_v21 }
  0x26   :  { %251 = vperm.xlu0 %3596, %v190_v33   ;;  %1842 = vperm.xlu1 %3597, %v3563_v34   ;;  %v2120_v19 = vrot.slane %v2090_v15, %v3826_v11  ;;  %v2132_v25 = vrot.slane %v2102_v20, %v3826_v11  ;;  %v2310_v29 = vrot.slane %v2280_v26, %v3840_v21 }
  0x27   :  { %v2322_v34 = vrot.slane %v2292_v30, %v3840_v21 }
  0x2a   :  { %640 = vperm.xlu0 %3596, %v3550_v35   ;;  %1956 = vperm.xlu1 %3597, %v3565_v36  }
  0x2e   :  { %831 = vperm.xlu0 %3596, %v3552_v37   ;;  %2135 = vperm.xlu1 %3597, %v3567_v38   ;;  %v3870_v38 = vsub.s32 0, %v3819_v8 }
  0x30   :  { %5413 = vst [vmem:[#allocation9_spill] sm:$0xff] %v3870_v38 }
  0x32   :  { %1029 = vperm.xlu0 %3596, %v3554_v39   ;;  %2325 = vperm.xlu1 %3597, %v3569_v40   ;;  %v1994_v40 = vrot.slane %v1974_v13, %v3870_v38 }
  0x36   :  { %1220 = vperm.xlu0 %3596, %v3556_v41   ;;  %2524 = vperm.xlu1 %3597, %v3571_v42   ;;  %v2024_v42 = vrot.slane %v1994_v40, %v3870_v38 }
  0x3a   :  { %1418 = vperm.xlu0 %3596, %v3558_v43   ;;  %2714 = vperm.xlu1 %3597, %v3573_v44   ;;  %v2006_v43 = vrot.slane %v1976_v17, %v3870_v38  ;;  %v3880_v44 = vsub.s32 2, %v3819_v8 }
  0x3c   :  { %5416 = vst [vmem:[#allocation12_spill] sm:$0xff] %v3880_v44 }
  0x3e   :  { %1609 = vperm.xlu0 %3596, %v3560_v45   ;;  %2913 = vperm.xlu1 %3597, %v3575_v46   ;;  %v2363_v46 = vld [vmem:[#allocation2 + $0x2c] sm:$0xf] }
  0x42   :  { %1785 = vperm.xlu0 %3596, %v3562_v47   ;;  %3103 = vperm.xlu1 %3597, %v3577_v48   ;;  %v2036_v48 = vrot.slane %v2006_v43, %v3870_v38 }
  0x46   :  { %1899 = vperm.xlu0 %3596, %v3564_v49   ;;  %3302 = vperm.xlu1 %3597, %v3579_v50   ;;  %v2185_v49 = vrot.slane %v1974_v13, %v3880_v44  ;;  %v2383_v50 = vrot.slane %v2363_v46, %v3870_v38 }
  0x4a   :  { %2039 = vperm.xlu0 %3596, %v3566_v51   ;;  %3492 = vperm.xlu1 %3597, %v3581_v52   ;;  %v2197_v52 = vrot.slane %v1976_v17, %v3880_v44 }
  0x4c   :  { %v2227_v17 = vrot.slane %v2197_v52, %v3880_v44 }
  0x4e   :  { %2230 = vperm.xlu0 %3596, %v3568_v53   ;;  %v2365_v53 = vld [vmem:[#allocation2 + $0x3c] sm:$0xf] }
  0x4f   :  { %v2491_v26 = vrot.slane %v2365_v53, %v3826_v11  ;;  %v2586_v40 = vrot.slane %v2365_v53, %v3880_v44  ;;  %v2681_v52 = vrot.slane %v2365_v53, %v3840_v21 }
  0x51   :  { %v2521_v30 = vrot.slane %v2491_v26, %v3826_v11 }
  0x52   :  { %2428 = vperm.xlu0 %3596, %v3570_v54  }
  0x56   :  { %2619 = vperm.xlu0 %3596, %v3572_v55   ;;  %v2215_v55 = vrot.slane %v2185_v49, %v3880_v44 }
  0x5a   :  { %2817 = vperm.xlu0 %3596, %v3574_v56   ;;  %v2413_v56 = vrot.slane %v2383_v50, %v3870_v38 }
  0x5e   :  { %3008 = vperm.xlu0 %3596, %v3576_v57   ;;  %v2395_v57 = vrot.slane %v2365_v53, %v3870_v38 }
  0x62   :  { %3206 = vperm.xlu0 %3596, %v3578_v58  }
  0x66   :  { %3397 = vperm.xlu0 %3596, %v3580_v59   ;;  %v2479_v59 = vrot.slane %v2363_v46, %v3826_v11 }
  0x7d   :  { %v3800_v60 = vpop.permute.xlu1 %347 }
  0x81   :  { %v3802_v61 = vpop.permute.xlu1 %442 }
  0x85   :  { %v3804_v62 = vpop.permute.xlu1 %537 }
  0x89   :  { %v3806_v63 = vpop.permute.xlu1 %736 }
  0x8d   :  { %v3808_v0 = vpop.permute.xlu1 %926 }
  0x91   :  { %v3810_v2 = vpop.permute.xlu1 %1125 }
  0x95   :  { %v3812_v4 = vpop.xlane.xlu0 %34  ;;  %v3814_v5 = vpop.permute.xlu1 %1315 }
  0x99   :  { %v3816_v7 = vpop.permute.xlu1 %1514  ;;  %v3821_v9 = vpop.xlane.xlu0 %51 }
  0x9a   :  { %v54_v26 = vmul.f32 0.001953125, %v3821_v9 }
  0x9d   :  { %v3823_v10 = vpop.permute.xlu1 %1704 }
  0xa1   :  { %v3828_v12 = vpop.permute.xlu0 %251  ;;  %v3830_v14 = vpop.permute.xlu1 %1842 }
  0xa2   :  { %5411 = vst [vmem:[#allocation7_spill] sm:$0xff] %v3830_v14 }
  0xa5   :  { %v3833_v16 = vpop.permute.xlu0 %640  ;;  %v3835_v18 = vpop.permute.xlu1 %1956 }
  0xa6   :  { %5412 = vst [vmem:[#allocation8_spill] sm:$0xff] %v3835_v18 }
  0xa9   :  { %v3842_v22 = vpop.permute.xlu0 %831  ;;  %v3844_v23 = vpop.permute.xlu1 %2135 }
  0xaa   :  { %v2140_v24 = vmul.f32 %v3844_v23, %v2120_v19  ;;  %v2143_v28 = vmul.f32 %v3844_v23, %v2132_v25  ;;  %v2425_v19 = vrot.slane %v2395_v57, %v3870_v38  ;;  %v2509_v25 = vrot.slane %v2479_v59, %v3826_v11 }
  0xab   :  { %v2711_v57 = vrot.slane %v2681_v52, %v3840_v21 }
  0xac   :  { %2154 = vrot.lane.b32.xlu1 %v2140_v24, %s3627_s3 }
  0xad   :  { %v3849_v27 = vpop.permute.xlu0 %1029  ;;  %v3855_v31 = vpop.permute.xlu1 %2325 }
  0xae   :  { %v2330_v33 = vmul.f32 %v3855_v31, %v2310_v29  ;;  %v2333_v36 = vmul.f32 %v3855_v31, %v2322_v34 }
  0xb0   :  { %2158 = vrot.lane.b32.xlu1 %v2143_v28, %s3627_s3 }
  0xb1   :  { %v3857_v32 = vpop.permute.xlu0 %1220  ;;  %v3910_v28 = vpop.permute.xlu1 %2524 }
  0xb2   :  { %5418 = vst [vmem:[#allocation14_spill] sm:$0xff] %v3910_v28  ;;  %v2529_v29 = vmul.f32 %v3910_v28, %v2509_v25  ;;  %v2532_v34 = vmul.f32 %v3910_v28, %v2521_v30  ;;  %v53_v25 = vmul.f32 0.001953125, %v3812_v4 }
  0xb4   :  { %2344 = vrot.lane.b32.xlu1 %v2330_v33, %s3627_s3  ;;  %v2574_v33 = vrot.slane %v2363_v46, %v3880_v44 }
  0xb5   :  { %v3862_v35 = vpop.permute.xlu0 %1418 }
  0xb8   :  { %2348 = vrot.lane.b32.xlu1 %v2333_v36, %s3627_s3  ;;  %v2604_v36 = vrot.slane %v2574_v33, %v3880_v44 }
  0xb9   :  { %v3866_v37 = vpop.permute.xlu0 %1609 }
  0xbd   :  { %v3872_v39 = vpop.permute.xlu0 %1785 }
  0xbe   :  { %5414 = vst [vmem:[#allocation10_spill] sm:$0xff] %v3872_v39 }
  0xc1   :  { %v3875_v41 = vpop.permute.xlu0 %1899 }
  0xc2   :  { %5415 = vst [vmem:[#allocation11_spill] sm:$0xff] %v3875_v41 }
  0xc5   :  { %v3882_v45 = vpop.permute.xlu0 %2039 }
  0xc6   :  { %v2044_v47 = vmul.f32 %v3882_v45, %v2024_v42  ;;  %v2047_v54 = vmul.f32 %v3882_v45, %v2036_v48  ;;  %v2669_v48 = vrot.slane %v2363_v46, %v3840_v21  ;;  %v2754_v46 = vld [vmem:[#allocation2 + $0x1c] sm:$0xf] }
  0xc7   :  { %v2784_v53 = vrot.slane %v2754_v46, %v3870_v38  ;;  %v2880_v33 = vrot.slane %v2754_v46, %v3826_v11 }
  0xc8   :  { %2058 = vrot.lane.b32.xlu0 %v2044_v47, %s3627_s3  ;;  %v2616_v47 = vrot.slane %v2586_v40, %v3880_v44  ;;  %v2699_v50 = vrot.slane %v2669_v48, %v3840_v21 }
  0xc9   :  { %v3889_v51 = vpop.permute.xlu0 %2230  ;;  %v2910_v4 = vrot.slane %v2880_v33, %v3826_v11 }
  0xca   :  { %v2235_v13 = vmul.f32 %v3889_v51, %v2215_v55  ;;  %v2238_v20 = vmul.f32 %v3889_v51, %v2227_v17  ;;  %v2752_v55 = vld [vmem:[#allocation2 + $0xc] sm:$0xf] }
  0xcb   :  { %v2772_v59 = vrot.slane %v2752_v55, %v3870_v38 }
  0xcc   :  { %2062 = vrot.lane.b32.xlu0 %v2047_v54, %s3627_s3  ;;  %v3931_v54 = vpop.permute.xlu1 %2714 }
  0xcd   :  { %v3897_v58 = vpop.permute.xlu0 %2428  ;;  %5420 = vst [vmem:[#allocation16_spill] sm:$0xff] %v3931_v54 }
  0xce   :  { %5417 = vst [vmem:[#allocation13_spill] sm:$0xff] %v3897_v58  ;;  %v2433_v15 = vmul.f32 %v3897_v58, %v2413_v56  ;;  %v2436_v24 = vmul.f32 %v3897_v58, %v2425_v19  ;;  %v2719_v56 = vmul.f32 %v3931_v54, %v2699_v50  ;;  %v2975_v50 = vrot.slane %v2754_v46, %v3880_v44 }
  0xd0   :  { %2249 = vrot.lane.b32.xlu0 %v2235_v13, %s3627_s3  ;;  %2447 = vrot.lane.b32.xlu1 %v2433_v15, %s3628_s13  ;;  %v2722_v13 = vmul.f32 %v3931_v54, %v2711_v57  ;;  %v2802_v15 = vrot.slane %v2772_v59, %v3870_v38  ;;  %v3005_v57 = vrot.slane %v2975_v50, %v3880_v44 }
  0xd1   :  { %v3921_v42 = vpop.permute.xlu0 %2619  ;;  %v3058_v59 = vrot.slane %v2752_v55, %v3840_v21 }
  0xd2   :  { %5419 = vst [vmem:[#allocation15_spill] sm:$0xff] %v3921_v42  ;;  %v2624_v43 = vmul.f32 %v3921_v42, %v2604_v36  ;;  %v2627_v49 = vmul.f32 %v3921_v42, %v2616_v47  ;;  %v55_v36 = vmul.f32 %v53_v25, %v53_v25  ;;  %v2963_v47 = vrot.slane %v2752_v55, %v3880_v44 }
  0xd4   :  { %2253 = vrot.lane.b32.xlu0 %v2238_v20, %s3627_s3  ;;  %2451 = vrot.lane.b32.xlu1 %v2436_v24, %s3628_s13  ;;  %v2814_v20 = vrot.slane %v2784_v53, %v3870_v38  ;;  %v2868_v24 = vrot.slane %v2752_v55, %v3826_v11  ;;  %v56_v40 = vsub.f32 %v54_v26, %v55_v36 }
  0xd5   :  { %v3941_v17 = vpop.permute.xlu0 %2817  ;;  %v3070_v53 = vrot.slane %v2754_v46, %v3840_v21  ;;  %v58_v46 = vld [vmem:[%s5369_s1] sm:$0xf]  ;;  %s3632_s1 = smov 16  }
  0xd6   :  { %v2822_v19 = vmul.f32 %v3941_v17, %v2802_v15  ;;  %v2898_v30 = vrot.slane %v2868_v24, %v3826_v11  ;;  %v57_v9 = vmax.f32 %v56_v40, 0.0  ;;  %v3088_v15 = vrot.slane %v3058_v59, %v3840_v21 }
  0xd7   :  { %v3100_v26 = vrot.slane %v3070_v53, %v3840_v21 }
  0xd8   :  { %2543 = vrot.lane.b32.xlu1 %v2529_v29, %s3628_s13  ;;  %v2825_v29 = vmul.f32 %v3941_v17, %v2814_v20  ;;  %3600 = vrsqrt.f32 %v57_v9  ;;  %v3141_v20 = vld [vmem:[#allocation2 + $0x4c] sm:$0xf] }
  0xd9   :  { %v3963_v52 = vpop.permute.xlu0 %3008 }
  0xdc   :  { %2547 = vrot.lane.b32.xlu1 %v2532_v34, %s3628_s13  ;;  %v3953_v34 = vpop.permute.xlu1 %2913 }
  0xdd   :  { %v2921_v48 = vmul.f32 %v3953_v34, %v2910_v4  ;;  %v3982_v36 = vpop.permute.xlu0 %3206 }
  0xde   :  { %5421 = vst [vmem:[#allocation17_spill] sm:$0xff] %v3982_v36 }
  0xe0   :  { %2638 = vrot.lane.b32.xlu1 %v2624_v43, %s3628_s13  ;;  %v2918_v43 = vmul.f32 %v3953_v34, %v2898_v30 }
  0xe4   :  { %2642 = vrot.lane.b32.xlu1 %v2627_v49, %s3628_s13  ;;  %v2993_v49 = vrot.slane %v2963_v47, %v3880_v44  ;;  %v62_v47 = vld [vmem:[%s5370_s2] sm:$0xf]  ;;  %s3633_s2 = smov 17  }
  0xe5   :  { %v3601_v33 = vpop.eup %3600 }
  0xe8   :  { %2733 = vrot.lane.b32.xlu1 %v2719_v56, %s3628_s13  ;;  %v3013_v56 = vmul.f32 %v3963_v52, %v2993_v49 }
  0xec   :  { %2737 = vrot.lane.b32.xlu1 %v2722_v13, %s3628_s13  ;;  %v3016_v13 = vmul.f32 %v3963_v52, %v3005_v57 }
  0xf0   :  { %2836 = vrot.lane.b32.xlu1 %v2822_v19, %s3629_s14  ;;  %v3973_v19 = vpop.permute.xlu1 %3103 }
  0xf1   :  { %v3108_v24 = vmul.f32 %v3973_v19, %v3088_v15  ;;  %v3111_v55 = vmul.f32 %v3973_v19, %v3100_v26 }
  0xf4   :  { %2840 = vrot.lane.b32.xlu1 %v2825_v29, %s3629_s14  ;;  %v3161_v29 = vrot.slane %v3141_v20, %v3870_v38 }
  0xf6   :  { %v3191_v30 = vrot.slane %v3161_v29, %v3870_v38 }
  0xf8   :  { %2932 = vrot.lane.b32.xlu1 %v2918_v43, %s3629_s14  ;;  %v3211_v40 = vmul.f32 %v3982_v36, %v3191_v30  ;;  %v61_v43 = vmul.f32 %v3601_v33, %v58_v46 }
  0xfa   :  { %v63_v4 = vmul.f32 %v61_v43, %v53_v25 }
  0xfc   :  { %2936 = vrot.lane.b32.xlu1 %v2921_v48, %s3629_s14  ;;  %v64_v9 = vsub.f32 %v62_v47, %v63_v4  ;;  %v3993_v48 = vpop.permute.xlu1 %3302  ;;  %v3631_v47 = vmov 839922192  }
  0xfd   :  { %5422 = vst [vmem:[#allocation18_spill] sm:$0xff] %v3993_v48 }
 0x100   :  { %3027 = vrot.lane.b32.xlu1 %v3013_v56, %s3629_s14  ;;  %v3995_v49 = vpop.permute.xlu1 %3492 }
 0x104   :  { %3031 = vrot.lane.b32.xlu1 %v3016_v13, %s3629_s14 }
 0x108   :  { %3122 = vrot.lane.b32.xlu1 %v3108_v24, %s3629_s14 }
 0x10c   :  { %3126 = vrot.lane.b32.xlu1 %v3111_v55, %s3629_s14 }
 0x110   :  { %3225 = vrot.lane.b32.xlu1 %v3211_v40, %s3630_s17 }
 0x114   :  { %67 = vperm.xlu1 %3597, %v61_v43  }
 0x118   :  { %81 = vperm.xlu1 %3597, %v64_v9   ;;  %v70_v9 = vunpack.c.l.s4 %v3631_v47 }
 0x11e   :  { %v3997_v50 = vpop.permute.xlu1 %2154 }
 0x11f   :  { %5423 = vst [vmem:[#allocation19_spill] sm:$0xff] %v3997_v50 }
 0x122   :  { %v3999_v56 = vpop.permute.xlu1 %2158 }
 0x123   :  { %5424 = vst [vmem:[#allocation20_spill] sm:$0xff] %v3999_v56 }
 0x126   :  { %v4001_v57 = vpop.permute.xlu1 %2344 }
 0x127   :  { %5425 = vst [vmem:[#allocation21_spill] sm:$0xff] %v4001_v57 }
 0x12a   :  { %v4003_v59 = vpop.permute.xlu1 %2348 }
 0x12b   :  { %5426 = vst [vmem:[#allocation22_spill] sm:$0xff] %v4003_v59 }
 0x142   :  { %v4005_v25 = vpop.permute.xlu1 %2447 }
 0x143   :  { %5427 = vst [vmem:[#allocation23_spill] sm:$0xff] %v4005_v25 }
 0x146   :  { %v4007_v13 = vpop.permute.xlu1 %2451 }
 0x147   :  { %5428 = vst [vmem:[#allocation24_spill] sm:$0xff] %v4007_v13 }
 0x14a   :  { %v4009_v15 = vpop.permute.xlu1 %2543 }
 0x14b   :  { %5429 = vst [vmem:[#allocation25_spill] sm:$0xff] %v4009_v15 }
 0x14e   :  { %v4011_v53 = vpop.permute.xlu1 %2547 }
 0x14f   :  { %5430 = vst [vmem:[#allocation26_spill] sm:$0xff] %v4011_v53 }
 0x152   :  { %v4013_v20 = vpop.permute.xlu1 %2638 }
 0x153   :  { %5431 = vst [vmem:[#allocation27_spill] sm:$0xff] %v4013_v20 }
 0x156   :  { %v4015_v24 = vpop.permute.xlu1 %2642 }
 0x157   :  { %5432 = vst [vmem:[#allocation28_spill] sm:$0xff] %v4015_v24 }
 0x15a   :  { %v4017_v26 = vpop.permute.xlu1 %2733 }
 0x15b   :  { %5433 = vst [vmem:[#allocation29_spill] sm:$0xff] %v4017_v26  ;;  %v71_v26 = vunpack.c.0.s8 %v70_v9 }
 0x15e   :  { %v4019_v29 = vpop.permute.xlu1 %2737 }
 0x15f   :  { %5434 = vst [vmem:[#allocation30_spill] sm:$0xff] %v4019_v29 }
 0x162   :  { %v4021_v55 = vpop.permute.xlu1 %2836 }
 0x163   :  { %5435 = vst [vmem:[#allocation31_spill] sm:$0xff] %v4021_v55  ;;  %v74_v55 = vsub.s32 %v71_v26, %v3819_v8 }
 0x166   :  { %v4023_v30 = vpop.permute.xlu1 %2840 }
 0x167   :  { %5436 = vst [vmem:[#allocation32_spill] sm:$0xff] %v4023_v30  ;;  %v5444_v30 = vlaneseq }
 0x169   :  { %v96_v24 = vand.u32 127, %v5444_v30 }
 0x16a   :  { %v4025_v33 = vpop.permute.xlu1 %2932 }
 0x16b   :  { %5437 = vst [vmem:[#allocation33_spill] sm:$0xff] %v4025_v33 }
 0x16e   :  { %v4027_v46 = vpop.permute.xlu1 %2936 }
 0x16f   :  { %5438 = vst [vmem:[#allocation34_spill] sm:$0xff] %v4027_v46  ;;  %v97_v46 = vadd.s32 128, %v96_v24 }
 0x171   :  { %v109_v47 = vand.u32 15, %v97_v46 }
 0x172   :  { %v4029_v40 = vpop.permute.xlu1 %3027 }
 0x173   :  { %5439 = vst [vmem:[#allocation35_spill] sm:$0xff] %v4029_v40  ;;  %vm123_vm3 = vcmp.eq.s32.totalorder %v109_v47, 15  ;;  %vm4055_vm4 = vcmp.eq.s32.totalorder %v109_v47, 0 }
 0x176   :  { %v4031_v43 = vpop.permute.xlu1 %3031 }
 0x177   :  { %5440 = vst [vmem:[#allocation36_spill] sm:$0xff] %v4031_v43 }
 0x17a   :  { %v4033_v4 = vpop.permute.xlu1 %3122 }
 0x17b   :  { %5441 = vst [vmem:[#allocation37_spill] sm:$0xff] %v4033_v4  ;;  %v102_v4 = vand.u32 15, %v96_v24 }
 0x17d   :  { %vm4043_vm1 = vcmp.eq.s32.totalorder %v102_v4, 15  ;;  %vm4047_vm2 = vcmp.eq.s32.totalorder %v102_v4, 0 }
 0x17e   :  { %v4035_v6 = vpop.permute.xlu1 %3126 }
 0x17f   :  { %5442 = vst [vmem:[#allocation38_spill] sm:$0xff] %v4035_v6 }
 0x182   :  { %v4037_v29 = vpop.permute.xlu1 %3225 }
 0x183   :  { %5443 = vst [vmem:[#allocation39_spill] sm:$0xff] %v4037_v29 }
 0x18f   :  { %v68_v33 = vpop.permute.xlu1 %67 }
 0x190   :  { %v75_v20 = vrot.slane %v68_v33, %v74_v55 }
 0x192   :  { %v77_v40 = vmul.f32 %v75_v20, %v3670_v1  ;;  %v78_v43 = vmul.f32 %v75_v20, %v3675_v3 }
 0x193   :  { %v82_v53 = vpop.permute.xlu1 %81 }
 0x194   :  { %v89_v15 = vrot.slane %v82_v53, %v74_v55 }
 0x196   :  { %v91_v13 = vadd.f32 %v89_v15, %v77_v40  ;;  %v92_v6 = vadd.f32 %v89_v15, %v78_v43 }
 0x198   :  { %v4051_v30 = vmax.f32 %v91_v13, 0.0  ;;  %v4053_v33 = vmax.f32 %v92_v6, 0.0 }
 0x19a   :  { %v130_v3 = vcombine.high %v4051_v30, %v4051_v30  ;;  %v131_v15 = vcombine.high %v4053_v33, %v4053_v33  ;;  %160 = vst [vmem:[#allocation2 + $0x4] sm:$0xff] %v4051_v30  ;;  %161 = vst [vmem:[#allocation2 + $0x14] sm:$0xff] %v4053_v33  ;;  %v134_v6 = vsel %vm4043_vm1, 0.0, %v4051_v30  ;;  %v136_v13 = vsel %vm4043_vm1, 0.0, %v4053_v33 }
 0x19b   :  { %v144_v53 = vsel %vm4047_vm2, 0.0, %v4051_v30  ;;  %v146_v20 = vsel %vm4047_vm2, 0.0, %v4053_v33 }
 0x19c   :  { %v135_v24 = vsel %vm123_vm3, 0.0, %v130_v3  ;;  %v137_v55 = vsel %vm123_vm3, 0.0, %v131_v15  ;;  %v145_v46 = vsel %vm4055_vm4, 0.0, %v130_v3  ;;  %v147_v40 = vsel %vm4055_vm4, 0.0, %v131_v15 }
 0x19d   :  { %v166_v43 = vcombine.low %v134_v6, %v135_v24  ;;  %v167_v4 = vcombine.low %v136_v13, %v137_v55  ;;  %v177_v47 = vcombine.low %v144_v53, %v145_v46  ;;  %v178_v9 = vcombine.low %v146_v20, %v147_v40 }
 0x19e   :  { %v4090_v53 = vsub.s32 5, %v3819_v8 }
 0x19f   :  { %171 = vst [vmem:[#allocation2 + $0x24] sm:$0xff] %v166_v43  ;;  %172 = vst [vmem:[#allocation2 + $0x34] sm:$0xff] %v167_v4  ;;  %v4099_v43 = vsub.s32 4, %v3819_v8 }
 0x1a0   :  { %182 = vst [vmem:[#allocation2 + $0x44] sm:$0xff] %v177_v47  ;;  %183 = vst [vmem:[#allocation2 + $0x54] sm:$0xff] %v178_v9 }
 0x1a1   :  { %v575_v29 = vld [vmem:[#allocation2 + $0x8] sm:$0xf]  ;;  %v577_v25 = vld [vmem:[#allocation2 + $0x18] sm:$0xf]  ;;  %5451 = vst [vmem:[#allocation40_spill] sm:$0xff] %v4090_v53  ;;  %v4092_v20 = vld [vmem:[#allocation2] sm:$0xff] }
 0x1a2   :  { %v691_v26 = vrot.slane %v575_v29, %v3826_v11  ;;  %v595_v59 = vrot.slane %v575_v29, %v3870_v38  ;;  %v703_v57 = vrot.slane %v577_v25, %v3826_v11  ;;  %v607_v3 = vrot.slane %v577_v25, %v3870_v38  ;;  %5452 = vst [vmem:[#allocation41_spill] sm:$0xff] %v4099_v43 }
 0x1a3   :  { %v881_v6 = vrot.slane %v575_v29, %v3840_v21  ;;  %v786_v13 = vrot.slane %v575_v29, %v3880_v44  ;;  %v683_v29 = vrot.slane %v4092_v20, %v3826_v11  ;;  %v687_v4 = vrot.slane %v4092_v20, %v4090_v53 }
 0x1a4   :  { %v721_v1 = vrot.slane %v691_v26, %v3826_v11  ;;  %v625_v15 = vrot.slane %v595_v59, %v3870_v38  ;;  %v733_v46 = vrot.slane %v703_v57, %v3826_v11  ;;  %v637_v40 = vrot.slane %v607_v3, %v3870_v38  ;;  %v4101_v59 = vld [vmem:[#allocation2 + $0x10] sm:$0xff] }
 0x1a5   :  { %v587_v57 = vrot.slane %v4092_v20, %v3870_v38  ;;  %v911_v47 = vrot.slane %v881_v6, %v3840_v21  ;;  %v893_v9 = vrot.slane %v577_v25, %v3840_v21  ;;  %v798_v26 = vrot.slane %v577_v25, %v3880_v44 }
 0x1a6   :  { %v741_v24 = vmul.f32 %v3806_v63, %v721_v1  ;;  %v645_v55 = vmul.f32 %v3833_v16, %v625_v15  ;;  %v591_v3 = vrot.slane %v4092_v20, %v4099_v43  ;;  %v744_v1 = vmul.f32 %v3806_v63, %v733_v46 }
 0x1a7   :  { %v648_v15 = vmul.f32 %v3833_v16, %v637_v40  ;;  %v713_v56 = vrot.slane %v683_v29, %v3826_v11  ;;  %v717_v6 = vrot.slane %v687_v4, %v3826_v11  ;;  %v699_v50 = vrot.slane %v4101_v59, %v4090_v53 }
 0x1a8   :  { %755 = vrot.lane.b32.xlu1 %v741_v24, %s3632_s1  ;;  %659 = vrot.lane.b32.xlu0 %v645_v55, %s3632_s1  ;;  %v816_v24 = vrot.slane %v786_v13, %v3880_v44  ;;  %v695_v55 = vrot.slane %v4101_v59, %v3826_v11  ;;  %v599_v25 = vrot.slane %v4101_v59, %v3870_v38  ;;  %v4135_v4 = vsub.s32 7, %v3819_v8 }
 0x1a9   :  { %v617_v46 = vrot.slane %v587_v57, %v3870_v38  ;;  %v621_v13 = vrot.slane %v591_v3, %v3870_v38  ;;  %v603_v40 = vrot.slane %v4101_v59, %v4099_v43  ;;  %v923_v29 = vrot.slane %v893_v9, %v3840_v21 }
 0x1aa   :  { %v931_v18 = vmul.f32 %v3808_v0, %v911_v47  ;;  %v836_v41 = vmul.f32 %v3842_v22, %v816_v24  ;;  %v739_v57 = vmul.f32 %v3806_v63, %v713_v56  ;;  %v740_v3 = vmul.f32 %v3806_v63, %v717_v6 }
 0x1ab   :  { %v729_v14 = vrot.slane %v699_v50, %v3826_v11  ;;  %v629_v39 = vrot.slane %v599_v25, %v3870_v38  ;;  %v643_v47 = vmul.f32 %v3833_v16, %v617_v46  ;;  %v644_v9 = vmul.f32 %v3833_v16, %v621_v13 }
 0x1ac   :  { %759 = vrot.lane.b32.xlu1 %v744_v1, %s3632_s1  ;;  %663 = vrot.lane.b32.xlu0 %v648_v15, %s3632_s1  ;;  %v828_v1 = vrot.slane %v798_v26, %v3880_v44  ;;  %v725_v15 = vrot.slane %v695_v55, %v3826_v11  ;;  %v633_v26 = vrot.slane %v603_v40, %v3870_v38  ;;  %v4151_v24 = vsub.s32 6, %v3819_v8 }
 0x1ad   :  { %v873_v56 = vrot.slane %v4092_v20, %v3840_v21  ;;  %v877_v50 = vrot.slane %v4092_v20, %v4135_v4  ;;  %v934_v55 = vmul.f32 %v3808_v0, %v923_v29  ;;  %v751_v25 = vcombine.low %v739_v57, %v740_v3 }
 0x1ae   :  { %5453 = vst [vmem:[#allocation42_spill] sm:$0xff] %v4151_v24  ;;  %v782_v6 = vrot.slane %v4092_v20, %v4151_v24  ;;  %v742_v8 = vmul.f32 %v3806_v63, %v725_v15  ;;  %v743_v46 = vmul.f32 %v3806_v63, %v729_v14  ;;  %v655_v13 = vcombine.low %v643_v47, %v644_v9 }
 0x1af   :  { %v646_v40 = vmul.f32 %v3833_v16, %v629_v39  ;;  %v647_v29 = vmul.f32 %v3833_v16, %v633_v26  ;;  %v907_v54 = vrot.slane %v877_v50, %v3840_v21  ;;  %v889_v15 = vrot.slane %v4101_v59, %v4135_v4 }
 0x1b0   :  { %945 = vrot.lane.b32.xlu1 %v931_v18, %s3632_s1  ;;  %850 = vrot.lane.b32.xlu0 %v836_v41, %s3632_s1  ;;  %v839_v18 = vmul.f32 %v3842_v22, %v828_v1  ;;  %v778_v41 = vrot.slane %v4092_v20, %v3880_v44  ;;  %v903_v1 = vrot.slane %v873_v56, %v3840_v21 }
 0x1b1   :  { %v885_v20 = vrot.slane %v4101_v59, %v3840_v21  ;;  %v812_v14 = vrot.slane %v782_v6, %v3880_v44  ;;  %v790_v57 = vrot.slane %v4101_v59, %v3880_v44  ;;  %v794_v16 = vrot.slane %v4101_v59, %v4151_v24 }
 0x1b2   :  { %v808_v63 = vrot.slane %v778_v41, %v3880_v44  ;;  %v2764_v39 = vrot.slane %v4051_v30, %v3870_v38  ;;  %v752_v3 = vcombine.low %v742_v8, %v743_v46  ;;  %v656_v47 = vcombine.low %v646_v40, %v647_v29 }
 0x1b3   :  { %v2768_v9 = vrot.slane %v4051_v30, %v4099_v43  ;;  %v929_v26 = vmul.f32 %v3808_v0, %v903_v1  ;;  %v930_v56 = vmul.f32 %v3808_v0, %v907_v54  ;;  %v915_v50 = vrot.slane %v885_v20, %v3840_v21 }
 0x1b4   :  { %949 = vrot.lane.b32.xlu1 %v934_v55, %s3632_s1  ;;  %854 = vrot.lane.b32.xlu0 %v839_v18, %s3632_s1  ;;  %v919_v59 = vrot.slane %v889_v15, %v3840_v21  ;;  %v834_v55 = vmul.f32 %v3842_v22, %v808_v63  ;;  %v835_v18 = vmul.f32 %v3842_v22, %v812_v14 }
 0x1b5   :  { %v820_v41 = vrot.slane %v790_v57, %v3880_v44  ;;  %v824_v6 = vrot.slane %v794_v16, %v3880_v44  ;;  %v2794_v54 = vrot.slane %v2764_v39, %v3870_v38  ;;  %v2798_v8 = vrot.slane %v2768_v9, %v3870_v38  ;;  %v4211_v57 = vld [vmem:[#allocation2 + $0x38] sm:$0xf] }
 0x1b6   :  { %v2776_v46 = vrot.slane %v4053_v33, %v3870_v38  ;;  %v932_v40 = vmul.f32 %v3808_v0, %v915_v50  ;;  %v933_v29 = vmul.f32 %v3808_v0, %v919_v59  ;;  %v2780_v1 = vrot.slane %v4053_v33, %v4099_v43 }
 0x1b7   :  { %v846_v20 = vcombine.low %v834_v55, %v835_v18  ;;  %v837_v15 = vmul.f32 %v3842_v22, %v820_v41  ;;  %v838_v63 = vmul.f32 %v3842_v22, %v824_v6  ;;  %v2860_v0 = vrot.slane %v4051_v30, %v3826_v11 }
 0x1b8   :  { %753 = vrot.lane.b32.xlu0 %v751_v25, %s3632_s1  ;;  %657 = vrot.lane.b32.xlu1 %v655_v13, %s3632_s1  ;;  %v4195_v25 = vld [vmem:[#allocation2 + $0x28] sm:$0xf]  ;;  %v941_v13 = vcombine.low %v929_v26, %v930_v56  ;;  %v2864_v16 = vrot.slane %v4051_v30, %v4090_v53  ;;  %v2820_v39 = vmul.f32 %v3941_v17, %v2794_v54 }
 0x1b9   :  { %v206_v14 = vrot.slane %v4195_v25, %v3870_v38  ;;  %v2806_v22 = vrot.slane %v2776_v46, %v3870_v38  ;;  %v942_v9 = vcombine.low %v932_v40, %v933_v29  ;;  %v847_v26 = vcombine.low %v837_v15, %v838_v63 }
 0x1ba   :  { %v218_v50 = vrot.slane %v4211_v57, %v3870_v38  ;;  %v2872_v59 = vrot.slane %v4053_v33, %v3826_v11  ;;  %v2876_v55 = vrot.slane %v4053_v33, %v4090_v53  ;;  %v2890_v6 = vrot.slane %v2860_v0, %v3826_v11 }
 0x1bb   :  { %v236_v56 = vrot.slane %v206_v14, %v3870_v38  ;;  %v2823_v18 = vmul.f32 %v3941_v17, %v2806_v22  ;;  %v2894_v54 = vrot.slane %v2864_v16, %v3826_v11  ;;  %v302_v40 = vrot.slane %v4195_v25, %v3826_v11 }
 0x1bc   :  { %757 = vrot.lane.b32.xlu0 %v752_v3, %s3632_s1  ;;  %661 = vrot.lane.b32.xlu1 %v656_v47, %s3632_s1  ;;  %v2821_v3 = vmul.f32 %v3941_v17, %v2798_v8  ;;  %v2810_v47 = vrot.slane %v2780_v1, %v3870_v38  ;;  %v2902_v29 = vrot.slane %v2872_v59, %v3826_v11 }
 0x1bd   :  { %v256_v46 = vmul.f32 %v3828_v12, %v236_v56  ;;  %v2917_v15 = vmul.f32 %v3953_v34, %v2894_v54  ;;  %v314_v63 = vrot.slane %v4211_v57, %v3826_v11  ;;  %v332_v0 = vrot.slane %v302_v40, %v3826_v11 }
 0x1be   :  { %v2824_v41 = vmul.f32 %v3941_v17, %v2810_v47  ;;  %v2832_v8 = vcombine.low %v2820_v39, %v2821_v3  ;;  %v2906_v17 = vrot.slane %v2876_v55, %v3826_v11  ;;  %v2955_v16 = vrot.slane %v4051_v30, %v3880_v44 }
 0x1bf   :  { %v2959_v39 = vrot.slane %v4051_v30, %v4151_v24  ;;  %v492_v3 = vrot.slane %v4195_v25, %v3840_v21  ;;  %v2967_v22 = vrot.slane %v4053_v33, %v3880_v44  ;;  %v344_v56 = vrot.slane %v314_v63, %v3826_v11 }
 0x1c0   :  { %943 = vrot.lane.b32.xlu0 %v941_v13, %s3632_s1  ;;  %848 = vrot.lane.b32.xlu1 %v846_v20, %s3632_s1  ;;  %v248_v13 = vrot.slane %v218_v50, %v3870_v38  ;;  %v2833_v1 = vcombine.low %v2823_v18, %v2824_v41  ;;  %v2916_v20 = vmul.f32 %v3953_v34, %v2890_v6 }
 0x1c1   :  { %v352_v50 = vmul.f32 %v3800_v60, %v332_v0  ;;  %v2985_v59 = vrot.slane %v2955_v16, %v3880_v44  ;;  %v2989_v55 = vrot.slane %v2959_v39, %v3880_v44  ;;  %v2971_v18 = vrot.slane %v4053_v33, %v4151_v24 }
 0x1c2   :  { %v259_v14 = vmul.f32 %v3828_v12, %v248_v13  ;;  %v2928_v47 = vcombine.low %v2916_v20, %v2917_v15  ;;  %v522_v41 = vrot.slane %v492_v3, %v3840_v21  ;;  %v2997_v6 = vrot.slane %v2967_v22, %v3880_v44 }
 0x1c3   :  { %v355_v54 = vmul.f32 %v3800_v60, %v344_v56  ;;  %v3011_v13 = vmul.f32 %v3963_v52, %v2985_v59  ;;  %v3012_v40 = vmul.f32 %v3963_v52, %v2989_v55  ;;  %v3066_v22 = vrot.slane %v4053_v33, %v4135_v4 }
 0x1c4   :  { %947 = vrot.lane.b32.xlu0 %v942_v9, %s3632_s1  ;;  %852 = vrot.lane.b32.xlu1 %v847_v26, %s3632_s1  ;;  %v2919_v9 = vmul.f32 %v3953_v34, %v2902_v29  ;;  %v2920_v26 = vmul.f32 %v3953_v34, %v2906_v17  ;;  %v3001_v29 = vrot.slane %v2971_v18, %v3880_v44 }
 0x1c5   :  { %v3054_v17 = vrot.slane %v4051_v30, %v4135_v4  ;;  %v542_v20 = vmul.f32 %v3804_v62, %v522_v41  ;;  %v3014_v15 = vmul.f32 %v3963_v52, %v2997_v6  ;;  %v3023_v16 = vcombine.low %v3011_v13, %v3012_v40 }
 0x1c6   :  { %v2929_v34 = vcombine.low %v2919_v9, %v2920_v26  ;;  %v3015_v39 = vmul.f32 %v3963_v52, %v3001_v29  ;;  %v3096_v55 = vrot.slane %v3066_v22, %v3840_v21  ;;  %v397_v6 = vrot.slane %v4195_v25, %v3880_v44 }
 0x1c7   :  { %v3084_v3 = vrot.slane %v3054_v17, %v3840_v21  ;;  %v409_v40 = vrot.slane %v4211_v57, %v3880_v44 }
 0x1c8   :  { %2834 = vrot.lane.b32.xlu0 %v2832_v8, %s3629_s14  ;;  %270 = vrot.lane.b32.xlu1 %v256_v46, %s3633_s2  ;;  %v504_v8 = vrot.slane %v4211_v57, %v3840_v21  ;;  %v3050_v46 = vrot.slane %v4051_v30, %v3840_v21  ;;  %v3062_v30 = vrot.slane %v4053_v33, %v3840_v21 }
 0x1c9   :  { %v3024_v52 = vcombine.low %v3014_v15, %v3015_v39  ;;  %v3107_v59 = vmul.f32 %v3973_v19, %v3084_v3  ;;  %v427_v13 = vrot.slane %v397_v6, %v3880_v44  ;;  %v439_v15 = vrot.slane %v409_v40, %v3880_v44 }
 0x1ca   :  { %v534_v63 = vrot.slane %v504_v8, %v3840_v21 }
 0x1cb   :  { %v447_v57 = vmul.f32 %v3802_v61, %v427_v13  ;;  %v450_v39 = vmul.f32 %v3802_v61, %v439_v15 }
 0x1cc   :  { %2838 = vrot.lane.b32.xlu0 %v2833_v1, %s3629_s14  ;;  %274 = vrot.lane.b32.xlu1 %v259_v14, %s3633_s2  ;;  %v4282_v1 = vld [vmem:[#allocation2 + $0x48] sm:$0xf]  ;;  %v3080_v14 = vrot.slane %v3050_v46, %v3840_v21  ;;  %v545_v9 = vmul.f32 %v3804_v62, %v534_v63 }
 0x1cd   :  { %v1080_v0 = vrot.slane %v4282_v1, %v3826_v11  ;;  %v1270_v46 = vrot.slane %v4282_v1, %v3840_v21  ;;  %v984_v63 = vrot.slane %v4282_v1, %v3870_v38 }
 0x1ce   :  { %v3106_v26 = vmul.f32 %v3973_v19, %v3080_v14 }
 0x1cf   :  { %v1110_v56 = vrot.slane %v1080_v0, %v3826_v11  ;;  %v1014_v3 = vrot.slane %v984_v63, %v3870_v38 }
 0x1d0   :  { %2930 = vrot.lane.b32.xlu0 %v2928_v47, %s3629_s14  ;;  %366 = vrot.lane.b32.xlu1 %v352_v50, %s3633_s2  ;;  %v4298_v47 = vld [vmem:[#allocation2 + $0x58] sm:$0xf]  ;;  %v3092_v50 = vrot.slane %v3062_v30, %v3840_v21 }
 0x1d1   :  { %v1092_v33 = vrot.slane %v4298_v47, %v3826_v11  ;;  %v1130_v18 = vmul.f32 %v3810_v2, %v1110_v56  ;;  %v1282_v17 = vrot.slane %v4298_v47, %v3840_v21 }
 0x1d2   :  { %v3109_v41 = vmul.f32 %v3973_v19, %v3092_v50  ;;  %v1175_v50 = vrot.slane %v4282_v1, %v3880_v44  ;;  %v1187_v1 = vrot.slane %v4298_v47, %v3880_v44 }
 0x1d3   :  { %v1122_v8 = vrot.slane %v1092_v33, %v3826_v11  ;;  %v1312_v0 = vrot.slane %v1282_v17, %v3840_v21 }
 0x1d4   :  { %2934 = vrot.lane.b32.xlu0 %v2929_v34, %s3629_s14  ;;  %370 = vrot.lane.b32.xlu1 %v355_v54, %s3633_s2  ;;  %v3118_v34 = vcombine.low %v3106_v26, %v3107_v59  ;;  %v3110_v54 = vmul.f32 %v3973_v19, %v3096_v55  ;;  %v1300_v19 = vrot.slane %v1270_v46, %v3840_v21 }
 0x1d5   :  { %v1133_v25 = vmul.f32 %v3810_v2, %v1122_v8  ;;  %v1323_v22 = vmul.f32 %v3814_v5, %v1312_v0  ;;  %v996_v26 = vrot.slane %v4298_v47, %v3870_v38  ;;  %v1034_v59 = vmul.f32 %v3849_v27, %v1014_v3 }
 0x1d6   :  { %v3119_v29 = vcombine.low %v3109_v41, %v3110_v54  ;;  %v1320_v14 = vmul.f32 %v3814_v5, %v1300_v19  ;;  %v4363_v41 = vld [vmem:[#allocation2 + $0x20] sm:$0xff]  ;;  %v1205_v6 = vrot.slane %v1175_v50, %v3880_v44  ;;  %v1217_v47 = vrot.slane %v1187_v1, %v3880_v44 }
 0x1d7   :  { %v1026_v33 = vrot.slane %v996_v26, %v3870_v38  ;;  %v198_v13 = vrot.slane %v4363_v41, %v3870_v38  ;;  %v202_v40 = vrot.slane %v4363_v41, %v4099_v43 }
 0x1d8   :  { %3025 = vrot.lane.b32.xlu0 %v3023_v16, %s3629_s14  ;;  %556 = vrot.lane.b32.xlu1 %v542_v20, %s3633_s2  ;;  %v4329_v20 = vld [vmem:[#allocation2 + $0x28] sm:$0xf]  ;;  %v4341_v16 = vld [vmem:[#allocation2 + $0x38] sm:$0xf]  ;;  %v1225_v63 = vmul.f32 %v3857_v32, %v1205_v6 }
 0x1d9   :  { %v1469_v30 = vrot.slane %v4329_v20, %v3826_v11  ;;  %v1481_v56 = vrot.slane %v4341_v16, %v3826_v11  ;;  %v1671_v54 = vrot.slane %v4341_v16, %v3840_v21  ;;  %v1037_v8 = vmul.f32 %v3849_v27, %v1026_v33 }
 0x1da   :  { %v4397_v0 = vrot.slane %v202_v40, %v3870_v38  ;;  %v1385_v3 = vrot.slane %v4341_v16, %v3870_v38  ;;  %v1576_v40 = vrot.slane %v4341_v16, %v3880_v44  ;;  %v389_v16 = vrot.slane %v4363_v41, %v3880_v44 }
 0x1db   :  { %v1701_v19 = vrot.slane %v1671_v54, %v3840_v21 }
 0x1dc   :  { %3029 = vrot.lane.b32.xlu0 %v3024_v52, %s3629_s14  ;;  %560 = vrot.lane.b32.xlu1 %v545_v9, %s3633_s2  ;;  %v1499_v9 = vrot.slane %v1469_v30, %v3826_v11  ;;  %v1659_v52 = vrot.slane %v4329_v20, %v3840_v21  ;;  %v1228_v30 = vmul.f32 %v3857_v32, %v1217_v47 }
 0x1dd   :  { %v1415_v1 = vrot.slane %v1385_v3, %v3870_v38 }
 0x1de   :  { %v1519_v55 = vmul.f32 %v3816_v7, %v1499_v9 }
 0x1e0   :  { %3120 = vrot.lane.b32.xlu0 %v3118_v34, %s3629_s14  ;;  %1144 = vrot.lane.b32.xlu1 %v1130_v18, %s3634_s20  ;;  %v1511_v18 = vrot.slane %v1481_v56, %v3826_v11  ;;  %v1689_v34 = vrot.slane %v1659_v52, %v3840_v21  ;;  %v1564_v56 = vrot.slane %v4329_v20, %v3880_v44 }
 0x1e1   :  { %v255_v52 = vmul.f32 %v3828_v12, %v4397_v0 }
 0x1e2   :  { %v1522_v46 = vmul.f32 %v3816_v7, %v1511_v18  ;;  %v1594_v54 = vrot.slane %v1564_v56, %v3880_v44  ;;  %v4468_v56 = vld [vmem:[#allocation2 + $0x40] sm:$0xff] }
 0x1e4   :  { %3124 = vrot.lane.b32.xlu0 %v3119_v29, %s3629_s14  ;;  %1148 = vrot.lane.b32.xlu1 %v1133_v25, %s3634_s20  ;;  %v4379_v29 = vld [vmem:[#allocation2 + $0x30] sm:$0xff]  ;;  %v1373_v25 = vrot.slane %v4329_v20, %v3870_v38 }
 0x1e5   :  { %v210_v17 = vrot.slane %v4379_v29, %v3870_v38  ;;  %v214_v15 = vrot.slane %v4379_v29, %v4099_v43  ;;  %v306_v33 = vrot.slane %v4379_v29, %v3826_v11  ;;  %v310_v18 = vrot.slane %v4379_v29, %v4090_v53 }
 0x1e7   :  { %v4407_v9 = vrot.slane %v210_v17, %v3870_v38  ;;  %v4410_v26 = vrot.slane %v214_v15, %v3870_v38  ;;  %v4444_v47 = vrot.slane %v306_v33, %v3826_v11  ;;  %v4453_v17 = vpop.permute.xlu0 %3397  ;;  %v1426_v15 = vmul.f32 %v3862_v35, %v1415_v1 }
 0x1e8   :  { %461 = vrot.lane.b32.xlu0 %v447_v57, %s3633_s2  ;;  %1334 = vrot.lane.b32.xlu1 %v1320_v14, %s3634_s20  ;;  %v1709_v57 = vmul.f32 %v3823_v10, %v1689_v34  ;;  %v4394_v14 = vrot.slane %v198_v13, %v3870_v38  ;;  %5454 = vst [vmem:[#allocation43_spill] sm:$0xff] %v4453_v17 }
 0x1e9   :  { %v257_v6 = vmul.f32 %v3828_v12, %v4407_v9  ;;  %v258_v34 = vmul.f32 %v3828_v12, %v4410_v26  ;;  %v4485_v33 = vrot.slane %v389_v16, %v3880_v44  ;;  %v401_v1 = vrot.slane %v4379_v29, %v3880_v44 }
 0x1ea   :  { %v254_v50 = vmul.f32 %v3828_v12, %v4394_v14  ;;  %v484_v12 = vrot.slane %v4363_v41, %v3840_v21 }
 0x1ec   :  { %465 = vrot.lane.b32.xlu0 %v450_v39, %s3633_s2  ;;  %1338 = vrot.lane.b32.xlu1 %v1323_v22, %s3634_s20  ;;  %v1403_v39 = vrot.slane %v1373_v25, %v3870_v38  ;;  %v1712_v22 = vmul.f32 %v3823_v10, %v1701_v19  ;;  %v4447_v25 = vrot.slane %v310_v18, %v3826_v11 }
 0x1ed   :  { %v488_v19 = vrot.slane %v4363_v41, %v4135_v4  ;;  %v496_v18 = vrot.slane %v4379_v29, %v3840_v21 }
 0x1ee   :  { %v1423_v20 = vmul.f32 %v3862_v35, %v1403_v39 }
 0x1f0   :  { %1048 = vrot.lane.b32.xlu0 %v1034_v59, %s3634_s20  ;;  %1533 = vrot.lane.b32.xlu1 %v1519_v55, %s3635_s21  ;;  %v294_v59 = vrot.slane %v4363_v41, %v3826_v11  ;;  %v298_v55 = vrot.slane %v4363_v41, %v4090_v53 }
 0x1f2   :  { %v4439_v13 = vrot.slane %v298_v55, %v3826_v11  ;;  %v4480_v55 = vpop.permute.xlu0 %2058 }
 0x1f3   :  { %5455 = vst [vmem:[#allocation44_spill] sm:$0xff] %v4480_v55 }
 0x1f4   :  { %1052 = vrot.lane.b32.xlu0 %v1037_v8, %s3634_s20  ;;  %1537 = vrot.lane.b32.xlu1 %v1522_v46, %s3635_s21  ;;  %v266_v8 = vcombine.low %v254_v50, %v255_v52  ;;  %v4436_v46 = vrot.slane %v294_v59, %v3826_v11  ;;  %v351_v3 = vmul.f32 %v3800_v60, %v4439_v13 }
 0x1f5   :  { %v353_v50 = vmul.f32 %v3800_v60, %v4444_v47  ;;  %v354_v52 = vmul.f32 %v3800_v60, %v4447_v25  ;;  %v4478_v59 = vrot.slane %v488_v19, %v3840_v21 }
 0x1f6   :  { %v350_v39 = vmul.f32 %v3800_v60, %v4436_v46  ;;  %v500_v60 = vrot.slane %v4379_v29, %v4135_v4 }
 0x1f7   :  { %v363_v16 = vcombine.low %v353_v50, %v354_v52  ;;  %v4526_v50 = vrot.slane %v401_v1, %v3880_v44 }
 0x1f8   :  { %1239 = vrot.lane.b32.xlu0 %v1225_v63, %s3634_s20  ;;  %1723 = vrot.lane.b32.xlu1 %v1709_v57, %s3635_s21  ;;  %v267_v63 = vcombine.low %v257_v6, %v258_v34  ;;  %v393_v57 = vrot.slane %v4363_v41, %v4151_v24  ;;  %v4475_v41 = vrot.slane %v484_v12, %v3840_v21 }
 0x1f9   :  { %v405_v6 = vrot.slane %v4379_v29, %v4151_v24  ;;  %v1072_v34 = vrot.slane %v4468_v56, %v3826_v11  ;;  %v980_v12 = vrot.slane %v4468_v56, %v4099_v43  ;;  %v541_v29 = vmul.f32 %v3804_v62, %v4478_v59 }
 0x1fa   :  { %v448_v17 = vmul.f32 %v3802_v61, %v4526_v50 }
 0x1fb   :  { %v4529_v52 = vrot.slane %v405_v6, %v3880_v44 }
 0x1fc   :  { %1243 = vrot.lane.b32.xlu0 %v1228_v30, %s3634_s20  ;;  %1727 = vrot.lane.b32.xlu1 %v1712_v22, %s3635_s21  ;;  %v1614_v30 = vmul.f32 %v3866_v37, %v1594_v54  ;;  %v1606_v22 = vrot.slane %v1576_v40, %v3880_v44  ;;  %v362_v54 = vcombine.low %v350_v39, %v351_v3 }
 0x1fd   :  { %v976_v40 = vrot.slane %v4468_v56, %v3870_v38  ;;  %v4518_v39 = vrot.slane %v496_v18, %v3840_v21  ;;  %v4521_v3 = vrot.slane %v500_v60, %v3840_v21  ;;  %v1010_v60 = vrot.slane %v980_v12, %v3870_v38 }
 0x1fe   :  { %v1617_v19 = vmul.f32 %v3866_v37, %v1606_v22  ;;  %v449_v28 = vmul.f32 %v3802_v61, %v4529_v52 }
 0x1ff   :  { %v1006_v18 = vrot.slane %v976_v40, %v3870_v38  ;;  %v543_v40 = vmul.f32 %v3804_v62, %v4518_v39  ;;  %v544_v12 = vmul.f32 %v3804_v62, %v4521_v3 }
 0x200   :  { %1437 = vrot.lane.b32.xlu0 %v1423_v20, %s3635_s21  ;;  %268 = vrot.lane.b32.xlu1 %v266_v8, %s3633_s2  ;;  %v4492_v20 = vrot.slane %v393_v57, %v3880_v44  ;;  %v1076_v8 = vrot.slane %v4468_v56, %v4090_v53  ;;  %v445_v57 = vmul.f32 %v3802_v61, %v4485_v33 }
 0x202   :  { %v446_v22 = vmul.f32 %v3802_v61, %v4492_v20  ;;  %v1106_v55 = vrot.slane %v1076_v8, %v3826_v11  ;;  %v553_v61 = vcombine.low %v543_v40, %v544_v12 }
 0x204   :  { %1441 = vrot.lane.b32.xlu0 %v1426_v15, %s3635_s21  ;;  %272 = vrot.lane.b32.xlu1 %v267_v63, %s3633_s2  ;;  %v540_v15 = vmul.f32 %v3804_v62, %v4475_v41  ;;  %v4511_v63 = vld [vmem:[#allocation2 + $0x50] sm:$0xff] }
 0x205   :  { %v1084_v42 = vrot.slane %v4511_v63, %v3826_v11  ;;  %v1088_v1 = vrot.slane %v4511_v63, %v4090_v53  ;;  %v988_v6 = vrot.slane %v4511_v63, %v3870_v38 }
 0x206   :  { %v552_v8 = vcombine.low %v540_v15, %v541_v29  ;;  %v1033_v15 = vmul.f32 %v3849_v27, %v1010_v60  ;;  %v1171_v60 = vrot.slane %v4468_v56, %v4151_v24 }
 0x207   :  { %v1114_v29 = vrot.slane %v1084_v42, %v3826_v11  ;;  %v1118_v36 = vrot.slane %v1088_v1, %v3826_v11  ;;  %v1018_v62 = vrot.slane %v988_v6, %v3870_v38  ;;  %v1266_v42 = vrot.slane %v4468_v56, %v4135_v4  ;;  %v4577_v1 = vld [vmem:[#allocation2 + $0x54] sm:$0xff] }
 0x208   :  { %1628 = vrot.lane.b32.xlu0 %v1614_v30, %s3635_s21  ;;  %364 = vrot.lane.b32.xlu1 %v362_v54, %s3633_s2  ;;  %v1102_v30 = vrot.slane %v1072_v34, %v3826_v11  ;;  %v4532_v54 = vpop.permute.xlu0 %2062  ;;  %v992_v34 = vrot.slane %v4511_v63, %v4099_v43 }
 0x209   :  { %5456 = vst [vmem:[#allocation45_spill] sm:$0xff] %v4532_v54  ;;  %v457_v54 = vcombine.low %v445_v57, %v446_v22  ;;  %v4563_v22 = vld [vmem:[#allocation2 + $0x44] sm:$0xff] }
 0x20a   :  { %v1128_v48 = vmul.f32 %v3810_v2, %v1102_v30  ;;  %v1022_v57 = vrot.slane %v992_v34, %v3870_v38  ;;  %v458_v30 = vcombine.low %v448_v17, %v449_v28  ;;  %v1132_v28 = vmul.f32 %v3810_v2, %v1118_v36 }
 0x20b   :  { %v1035_v17 = vmul.f32 %v3849_v27, %v1018_v62  ;;  %v2276_v12 = vrot.slane %v4563_v22, %v4135_v4  ;;  %v1179_v62 = vrot.slane %v4511_v63, %v3880_v44 }
 0x20c   :  { %1632 = vrot.lane.b32.xlu0 %v1617_v19, %s3635_s21  ;;  %368 = vrot.lane.b32.xlu1 %v363_v16, %s3633_s2  ;;  %v1129_v19 = vmul.f32 %v3810_v2, %v1106_v55  ;;  %v1032_v16 = vmul.f32 %v3849_v27, %v1006_v18  ;;  %v4565_v58 = vpop.permute.xlu0 %2249  ;;  %v1262_v55 = vrot.slane %v4468_v56, %v3840_v21 }
 0x20d   :  { %5457 = vst [vmem:[#allocation46_spill] sm:$0xff] %v4565_v58  ;;  %v1167_v18 = vrot.slane %v4468_v56, %v3880_v44  ;;  %v1036_v40 = vmul.f32 %v3849_v27, %v1022_v57  ;;  %v2284_v56 = vrot.slane %v4577_v1, %v3840_v21  ;;  %v1201_v27 = vrot.slane %v1171_v60, %v3880_v44 }
 0x20e   :  { %v1140_v6 = vcombine.low %v1128_v48, %v1129_v19  ;;  %v1044_v34 = vcombine.low %v1032_v16, %v1033_v15  ;;  %v1292_v48 = vrot.slane %v1262_v55, %v3840_v21  ;;  %v2288_v19 = vrot.slane %v4577_v1, %v4135_v4 }
 0x20f   :  { %v1197_v36 = vrot.slane %v1167_v18, %v3880_v44  ;;  %v1274_v16 = vrot.slane %v4511_v63, %v3840_v21  ;;  %v1183_v57 = vrot.slane %v4511_v63, %v4151_v24  ;;  %v4617_v60 = vrot.slane %v2284_v56, %v3840_v21 }
 0x210   :  { %554 = vrot.lane.b32.xlu0 %v552_v8, %s3633_s2  ;;  %459 = vrot.lane.b32.xlu1 %v457_v54, %s3633_s2  ;;  %v1131_v54 = vmul.f32 %v3810_v2, %v1114_v29  ;;  %v2272_v8 = vrot.slane %v4563_v22, %v3840_v21  ;;  %v1296_v2 = vrot.slane %v1266_v42, %v3840_v21  ;;  %v4599_v15 = vpop.permute.xlu0 %2253 }
 0x211   :  { %5458 = vst [vmem:[#allocation47_spill] sm:$0xff] %v4599_v15  ;;  %v1278_v29 = vrot.slane %v4511_v63, %v4135_v4  ;;  %v4611_v42 = vrot.slane %v2276_v12, %v3840_v21  ;;  %v1318_v18 = vmul.f32 %v3814_v5, %v1292_v48  ;;  %v4620_v15 = vrot.slane %v2288_v19, %v3840_v21 }
 0x212   :  { %v1141_v55 = vcombine.low %v1131_v54, %v1132_v28  ;;  %v1319_v63 = vmul.f32 %v3814_v5, %v1296_v2  ;;  %v1223_v54 = vmul.f32 %v3857_v32, %v1197_v36  ;;  %v1304_v28 = vrot.slane %v1274_v16, %v3840_v21 }
 0x213   :  { %v1213_v12 = vrot.slane %v1183_v57, %v3880_v44  ;;  %v4639_v56 = vmul.f32 %v3995_v49, %v4611_v42  ;;  %v4645_v19 = vmul.f32 %v3995_v49, %v4617_v60  ;;  %v4649_v2 = vmul.f32 %v3995_v49, %v4620_v15 }
 0x214   :  { %558 = vrot.lane.b32.xlu0 %v553_v61, %s3633_s2  ;;  %463 = vrot.lane.b32.xlu1 %v458_v30, %s3633_s2  ;;  %v4608_v61 = vrot.slane %v2272_v8, %v3840_v21  ;;  %v1045_v30 = vcombine.low %v1035_v17, %v1036_v40  ;;  %v1224_v8 = vmul.f32 %v3857_v32, %v1201_v27 }
 0x215   :  { %v1209_v40 = vrot.slane %v1179_v62, %v3880_v44  ;;  %v1330_v36 = vcombine.low %v1318_v18, %v1319_v63  ;;  %v1321_v16 = vmul.f32 %v3814_v5, %v1304_v28  ;;  %v1227_v58 = vmul.f32 %v3857_v32, %v1213_v12 }
 0x216   :  { %v4635_v48 = vmul.f32 %v3995_v49, %v4608_v61  ;;  %v1235_v27 = vcombine.low %v1223_v54, %v1224_v8  ;;  %v1517_v18 = vmul.f32 %v3816_v7, %v4436_v46  ;;  %v1518_v63 = vmul.f32 %v3816_v7, %v4439_v13 }
 0x217   :  { %v1520_v46 = vmul.f32 %v3816_v7, %v4444_v47  ;;  %v1521_v13 = vmul.f32 %v3816_v7, %v4447_v25  ;;  %v1707_v7 = vmul.f32 %v3823_v10, %v4475_v41  ;;  %v2086_v41 = vrot.slane %v4563_v22, %v4090_v53 }
 0x218   :  { %1142 = vrot.lane.b32.xlu0 %v1140_v6, %s3634_s20  ;;  %1046 = vrot.lane.b32.xlu1 %v1044_v34, %s3634_s20  ;;  %v1308_v34 = vrot.slane %v1278_v29, %v3840_v21 }
 0x219   :  { %v1530_v47 = vcombine.low %v1520_v46, %v1521_v13 }
 0x21a   :  { %v4626_v17 = vpop.permute.xlu1 %755  ;;  %v4628_v6 = vpop.permute.xlu0 %659 }
 0x21b   :  { %5459 = vst [vmem:[#allocation48_spill] sm:$0xff] %v4628_v6  ;;  %v2328_v6 = vmul.f32 %v3855_v31, %v4608_v61 }
 0x21c   :  { %1146 = vrot.lane.b32.xlu0 %v1141_v55, %s3634_s20  ;;  %1050 = vrot.lane.b32.xlu1 %v1045_v30, %s3634_s20  ;;  %v1322_v55 = vmul.f32 %v3814_v5, %v1308_v34  ;;  %v1226_v30 = vmul.f32 %v3857_v32, %v1209_v40  ;;  %v1421_v32 = vmul.f32 %v3862_v35, %v4394_v14 }
 0x21d   :  { %v1422_v34 = vmul.f32 %v3862_v35, %v4397_v0  ;;  %v1424_v40 = vmul.f32 %v3862_v35, %v4407_v9  ;;  %v1529_v0 = vcombine.low %v1517_v18, %v1518_v63  ;;  %v1708_v9 = vmul.f32 %v3823_v10, %v4478_v59 }
 0x21e   :  { %v4654_v62 = vpop.permute.xlu1 %759  ;;  %v4656_v57 = vpop.permute.xlu0 %663  ;;  %v1331_v8 = vcombine.low %v1321_v16, %v1322_v55  ;;  %v1236_v28 = vcombine.low %v1226_v30, %v1227_v58  ;;  %v1425_v58 = vmul.f32 %v3862_v35, %v4410_v26  ;;  %v1612_v35 = vmul.f32 %v3866_v37, %v4485_v33 }
 0x21f   :  { %v2082_v26 = vrot.slane %v4563_v22, %v3826_v11  ;;  %v1613_v55 = vmul.f32 %v3866_v37, %v4492_v20  ;;  %v1986_v30 = vrot.slane %v4563_v22, %v3870_v38  ;;  %v1990_v59 = vrot.slane %v4563_v22, %v4099_v43 }
 0x220   :  { %1332 = vrot.lane.b32.xlu0 %v1330_v36, %s3634_s20  ;;  %1237 = vrot.lane.b32.xlu1 %v1235_v27, %s3634_s20  ;;  %v1433_v36 = vcombine.low %v1421_v32, %v1422_v34  ;;  %v1434_v25 = vcombine.low %v1424_v40, %v1425_v58  ;;  %v1710_v33 = vmul.f32 %v3823_v10, %v4518_v39 }
 0x221   :  { %v2094_v18 = vrot.slane %v4577_v1, %v3826_v11  ;;  %v2098_v63 = vrot.slane %v4577_v1, %v4090_v53  ;;  %v1711_v20 = vmul.f32 %v3823_v10, %v4521_v3  ;;  %v1719_v39 = vcombine.low %v1707_v7, %v1708_v9 }
 0x222   :  { %v4669_v54 = vpop.permute.xlu1 %945  ;;  %v4671_v5 = vpop.permute.xlu0 %850  ;;  %v1615_v32 = vmul.f32 %v3866_v37, %v4526_v50  ;;  %v1616_v34 = vmul.f32 %v3866_v37, %v4529_v52  ;;  %v4732_v46 = vrot.slane %v2082_v26, %v3826_v11  ;;  %v1624_v10 = vcombine.low %v1612_v35, %v1613_v55 }
 0x223   :  { %v4739_v3 = vrot.slane %v2086_v41, %v3826_v11  ;;  %v4742_v58 = vrot.slane %v1986_v30, %v3870_v38  ;;  %v4748_v50 = vrot.slane %v2094_v18, %v3826_v11  ;;  %v4751_v37 = vrot.slane %v2098_v63, %v3826_v11 }
 0x224   :  { %1336 = vrot.lane.b32.xlu0 %v1331_v8, %s3634_s20  ;;  %1241 = vrot.lane.b32.xlu1 %v1236_v28, %s3634_s20  ;;  %v1998_v8 = vrot.slane %v4577_v1, %v3870_v38  ;;  %v2002_v28 = vrot.slane %v4577_v1, %v4099_v43  ;;  %v1625_v7 = vcombine.low %v1615_v32, %v1616_v34 }
 0x225   :  { %v2177_v9 = vrot.slane %v4563_v22, %v3880_v44  ;;  %v2139_v55 = vmul.f32 %v3844_v23, %v4739_v3  ;;  %v2042_v41 = vmul.f32 %v3882_v45, %v4742_v58  ;;  %v2142_v18 = vmul.f32 %v3844_v23, %v4751_v37 }
 0x226   :  { %v4687_v14 = vpop.permute.xlu1 %949  ;;  %v4689_v12 = vpop.permute.xlu0 %854  ;;  %v4756_v52 = vrot.slane %v1998_v8, %v3870_v38 }
 0x227   :  { %v4788_v8 = vrot.slane %v2177_v9, %v3880_v44  ;;  %v4800_v9 = vld [vmem:[#allocation2 + $0x24] sm:$0xff] }
 0x228   :  { %1531 = vrot.lane.b32.xlu0 %v1529_v0, %s3635_s21  ;;  %1435 = vrot.lane.b32.xlu1 %v1433_v36, %s3635_s21  ;;  %v4745_v0 = vrot.slane %v1990_v59, %v3870_v38  ;;  %v4759_v36 = vrot.slane %v2002_v28, %v3870_v38  ;;  %v2181_v59 = vrot.slane %v4563_v22, %v4151_v24 }
 0x229   :  { %v2045_v63 = vmul.f32 %v3882_v45, %v4756_v52  ;;  %v2189_v22 = vrot.slane %v4577_v1, %v3880_v44  ;;  %v2193_v28 = vrot.slane %v4577_v1, %v4151_v24 }
 0x22a   :  { %v4701_v27 = vpop.permute.xlu1 %657  ;;  %v4703_v16 = vpop.permute.xlu0 %753  ;;  %v2043_v30 = vmul.f32 %v3882_v45, %v4745_v0 }
 0x22c   :  { %1535 = vrot.lane.b32.xlu0 %v1530_v47, %s3635_s21  ;;  %1439 = vrot.lane.b32.xlu1 %v1434_v25, %s3635_s21  ;;  %v1720_v47 = vcombine.low %v1710_v33, %v1711_v20  ;;  %v2138_v25 = vmul.f32 %v3844_v23, %v4732_v46  ;;  %v2141_v33 = vmul.f32 %v3844_v23, %v4748_v50 }
 0x22d   :  { %v2046_v20 = vmul.f32 %v3882_v45, %v4759_v36  ;;  %v2054_v34 = vcombine.low %v2042_v41, %v2043_v30  ;;  %v4812_v41 = vrot.slane %v2189_v22, %v3880_v44  ;;  %v4815_v30 = vrot.slane %v2193_v28, %v3880_v44  ;;  %v4832_v22 = vld [vmem:[#allocation2 + $0x5c] sm:$0xf] }
 0x22e   :  { %v4734_v13 = vpop.permute.xlu1 %661  ;;  %v4736_v40 = vpop.permute.xlu0 %757  ;;  %v2150_v32 = vcombine.low %v2138_v25, %v2139_v55  ;;  %v2329_v25 = vmul.f32 %v3855_v31, %v4611_v42  ;;  %v2331_v28 = vmul.f32 %v3855_v31, %v4617_v60 }
 0x22f   :  { %v2055_v1 = vcombine.low %v2045_v63, %v2046_v20  ;;  %v2379_v63 = vrot.slane %v4800_v9, %v4099_v43  ;;  %v4830_v20 = vld [vmem:[#allocation2 + $0x34] sm:$0xff] }
 0x230   :  { %1721 = vrot.lane.b32.xlu0 %v1719_v39, %s3635_s21  ;;  %1626 = vrot.lane.b32.xlu1 %v1624_v10, %s3635_s21  ;;  %v4797_v10 = vrot.slane %v2181_v59, %v3880_v44 }
 0x231   :  { %v2409_v29 = vrot.slane %v2379_v63, %v3870_v38 }
 0x232   :  { %v4765_v35 = vpop.permute.xlu1 %848  ;;  %v4767_v26 = vpop.permute.xlu0 %943  ;;  %v2234_v42 = vmul.f32 %v3889_v51, %v4797_v10 }
 0x234   :  { %1725 = vrot.lane.b32.xlu0 %v1720_v47, %s3635_s21  ;;  %1630 = vrot.lane.b32.xlu1 %v1625_v7, %s3635_s21  ;;  %v954_v47 = vrot.slane %v4687_v14, 4  ;;  %v2151_v7 = vcombine.low %v2141_v33, %v2142_v18  ;;  %v2233_v14 = vmul.f32 %v3889_v51, %v4788_v8  ;;  %v2375_v18 = vrot.slane %v4800_v9, %v3870_v38 }
 0x236   :  { %v4794_v23 = vpop.permute.xlu1 %852  ;;  %v948_v39 = vpop.permute.xlu0 %947 }
 0x237   :  { %5460 = vst [vmem:[#allocation49_spill] sm:$0xff] %v4794_v23  ;;  %v953_v45 = vrot.slane %v948_v39, 4 }
 0x238   :  { %2152 = vrot.lane.b32.xlu0 %v2150_v32, %s3627_s3  ;;  %2056 = vrot.lane.b32.xlu1 %v2054_v34, %s3627_s3  ;;  %v3173_v32 = vrot.slane %v4832_v22, %v3870_v38  ;;  %v2236_v34 = vmul.f32 %v3889_v51, %v4812_v41 }
 0x239   :  { %v957_v55 = vsel %vm26_vm0, %v953_v45, %v954_v47  ;;  %v2237_v47 = vmul.f32 %v3889_v51, %v4815_v30  ;;  %v2387_v45 = vrot.slane %v4830_v20, %v3870_v38 }
 0x23a   :  { %v4818_v59 = vsel %vm670_vm5, %v948_v39, %v957_v55  ;;  %v4820_v33 = vpop.permute.xlu1 %270  ;;  %v4822_v61 = vpop.permute.xlu0 %2834  ;;  %v2332_v39 = vmul.f32 %v3855_v31, %v4620_v15  ;;  %v2340_v31 = vcombine.low %v2328_v6, %v2329_v25  ;;  %v2245_v15 = vcombine.low %v2233_v14, %v2234_v42 }
 0x23b   :  { %5461 = vst [vmem:[#allocation50_spill] sm:$0xff] %v4818_v59  ;;  %5462 = vst [vmem:[#allocation51_spill] sm:$0xff] %v4822_v61  ;;  %v2405_v55 = vrot.slane %v2375_v18, %v3870_v38  ;;  %v3203_v51 = vrot.slane %v3173_v32, %v3870_v38  ;;  %v4859_v61 = vld [vmem:[#allocation2 + $0x4c] sm:$0xf]  ;;  %v2246_v23 = vcombine.low %v2236_v34, %v2237_v47 }
 0x23c   :  { %2156 = vrot.lane.b32.xlu0 %v2151_v7, %s3627_s3  ;;  %2060 = vrot.lane.b32.xlu1 %v2055_v1, %s3627_s3  ;;  %v2391_v7 = vrot.slane %v4830_v20, %v4099_v43  ;;  %v3257_v43 = vrot.slane %v4859_v61, %v3826_v11  ;;  %v2341_v59 = vcombine.low %v2331_v28, %v2332_v39  ;;  %v5465_v18 = vld [vmem:[#allocation13_spill] sm:$0xff] }
 0x23d   :  { %v2417_v6 = vrot.slane %v2387_v45, %v3870_v38  ;;  %v2431_v63 = vmul.f32 %v5465_v18, %v2405_v55  ;;  %v2471_v32 = vrot.slane %v4800_v9, %v3826_v11  ;;  %v3269_v39 = vrot.slane %v4832_v22, %v3826_v11  ;;  %v5467_v55 = vld [vmem:[#allocation17_spill] sm:$0xff] }
 0x23e   :  { %v4850_v1 = vpop.permute.xlu1 %274  ;;  %v4852_v60 = vpop.permute.xlu0 %2838  ;;  %v2421_v25 = vrot.slane %v2391_v7, %v3870_v38  ;;  %v3287_v28 = vrot.slane %v3257_v43, %v3826_v11  ;;  %v2487_v45 = vrot.slane %v4830_v20, %v4090_v53  ;;  %v3214_v43 = vmul.f32 %v5467_v55, %v3203_v51 }
 0x23f   :  { %5463 = vst [vmem:[#allocation52_spill] sm:$0xff] %v4852_v60  ;;  %v2434_v34 = vmul.f32 %v5465_v18, %v2417_v6  ;;  %v2501_v60 = vrot.slane %v2471_v32, %v3826_v11  ;;  %v3299_v6 = vrot.slane %v3269_v39, %v3826_v11  ;;  %v2566_v39 = vrot.slane %v4800_v9, %v3880_v44 }
 0x240   :  { %2342 = vrot.lane.b32.xlu0 %v2340_v31, %s3627_s3  ;;  %2247 = vrot.lane.b32.xlu1 %v2245_v15, %s3627_s3  ;;  %v2432_v31 = vmul.f32 %v5465_v18, %v2409_v29  ;;  %v2475_v15 = vrot.slane %v4800_v9, %v4090_v53  ;;  %v2435_v47 = vmul.f32 %v5465_v18, %v2421_v25  ;;  %v5468_v53 = vld [vmem:[#allocation18_spill] sm:$0xff] }
 0x241   :  { %v2483_v29 = vrot.slane %v4830_v20, %v3826_v11  ;;  %v3352_v25 = vrot.slane %v4859_v61, %v3880_v44  ;;  %v3307_v38 = vmul.f32 %v5468_v53, %v3287_v28  ;;  %v2517_v51 = vrot.slane %v2487_v45, %v3826_v11 }
 0x242   :  { %v4865_v14 = vpop.permute.xlu1 %366  ;;  %v4867_v42 = vpop.permute.xlu0 %2930  ;;  %v2444_v18 = vcombine.low %v2434_v34, %v2435_v47  ;;  %v2570_v34 = vrot.slane %v4800_v9, %v4151_v24  ;;  %v3310_v28 = vmul.f32 %v5468_v53, %v3299_v6  ;;  %v3364_v47 = vrot.slane %v4832_v22, %v3880_v44 }
 0x243   :  { %5464 = vst [vmem:[#allocation53_spill] sm:$0xff] %v4867_v42  ;;  %v2505_v42 = vrot.slane %v2475_v15, %v3826_v11  ;;  %v5470_v15 = vld [vmem:[#allocation14_spill] sm:$0xff]  ;;  %v2578_v45 = vrot.slane %v4830_v20, %v3880_v44 }
 0x244   :  { %2346 = vrot.lane.b32.xlu0 %v2341_v59, %s3627_s3  ;;  %2251 = vrot.lane.b32.xlu1 %v2246_v23, %s3627_s3  ;;  %v2443_v23 = vcombine.low %v2431_v63, %v2432_v31  ;;  %v2513_v63 = vrot.slane %v2483_v29, %v3826_v11  ;;  %v2600_v6 = vrot.slane %v2570_v34, %v3880_v44 }
 0x245   :  { %v2582_v11 = vrot.slane %v4830_v20, %v4151_v24 }
 0x246   :  { %v4886_v7 = vpop.permute.xlu1 %370  ;;  %v4888_v59 = vpop.permute.xlu0 %2934  ;;  %v2530_v29 = vmul.f32 %v5470_v15, %v2513_v63  ;;  %v3447_v63 = vrot.slane %v4859_v61, %v3840_v21  ;;  %v2665_v61 = vrot.slane %v4800_v9, %v4135_v4 }
 0x247   :  { %5466 = vst [vmem:[#allocation13_spill] sm:$0xff] %v4888_v59 }
 0x248   :  { %2445 = vrot.lane.b32.xlu0 %v2443_v23, %s3628_s13  ;;  %3229 = vrot.lane.b32.xlu1 %v3214_v43, %s3630_s17  ;;  %v2527_v23 = vmul.f32 %v5470_v15, %v2501_v60  ;;  %v2528_v43 = vmul.f32 %v5470_v15, %v2505_v42  ;;  %v2531_v60 = vmul.f32 %v5470_v15, %v2517_v51  ;;  %v5472_v15 = vld [vmem:[#allocation43_spill] sm:$0xff] }
 0x249   :  { %v3382_v42 = vrot.slane %v3352_v25, %v3880_v44  ;;  %v3394_v25 = vrot.slane %v3364_v47, %v3880_v44  ;;  %v2612_v47 = vrot.slane %v2582_v11, %v3880_v44  ;;  %v2673_v11 = vrot.slane %v4830_v20, %v3840_v21 }
 0x24a   :  { %v4901_v31 = vpop.permute.xlu1 %556  ;;  %v4903_v32 = vpop.permute.xlu0 %3025  ;;  %v2540_v51 = vcombine.low %v2530_v29, %v2531_v60  ;;  %v3477_v29 = vrot.slane %v3447_v63, %v3840_v21  ;;  %v3459_v60 = vrot.slane %v4832_v22, %v3840_v21  ;;  %v2695_v63 = vrot.slane %v2665_v61, %v3840_v21 }
 0x24b   :  { %5469 = vst [vmem:[#allocation17_spill] sm:$0xff] %v4903_v32  ;;  %v2677_v22 = vrot.slane %v4830_v20, %v4135_v4 }
 0x24c   :  { %2449 = vrot.lane.b32.xlu0 %v2444_v18, %s3628_s13  ;;  %3321 = vrot.lane.b32.xlu1 %v3307_v38, %s3630_s17  ;;  %v2539_v18 = vcombine.low %v2527_v23, %v2528_v43  ;;  %v2596_v38 = vrot.slane %v2566_v39, %v3880_v44  ;;  %v2608_v23 = vrot.slane %v2578_v45, %v3880_v44 }
 0x24d   :  { %v2661_v43 = vrot.slane %v4800_v9, %v3840_v21  ;;  %v2707_v20 = vrot.slane %v2677_v22, %v3840_v21 }
 0x24e   :  { %v4921_v59 = vpop.permute.xlu1 %560  ;;  %v4923_v32 = vpop.permute.xlu0 %3029 }
 0x24f   :  { %5471 = vst [vmem:[#allocation18_spill] sm:$0xff] %v4923_v32  ;;  %v3402_v32 = vmul.f32 %v5472_v15, %v3382_v42  ;;  %v3405_v42 = vmul.f32 %v5472_v15, %v3394_v25  ;;  %v3497_v25 = vmul.f32 %v3995_v49, %v3477_v29 }
 0x250   :  { %2541 = vrot.lane.b32.xlu0 %v2539_v18, %s3628_s13  ;;  %3325 = vrot.lane.b32.xlu1 %v3310_v28, %s3630_s17  ;;  %v5474_v18 = vld [vmem:[#allocation15_spill] sm:$0xff] }
 0x251   :  { %v2622_v24 = vmul.f32 %v5474_v18, %v2596_v38  ;;  %v2623_v28 = vmul.f32 %v5474_v18, %v2600_v6  ;;  %v2625_v45 = vmul.f32 %v5474_v18, %v2608_v23  ;;  %v2691_v38 = vrot.slane %v2661_v43, %v3840_v21  ;;  %v5475_v43 = vld [vmem:[#allocation16_spill] sm:$0xff] }
 0x252   :  { %v4938_v39 = vpop.permute.xlu1 %1144  ;;  %v4940_v34 = vpop.permute.xlu0 %3120  ;;  %v3489_v23 = vrot.slane %v3459_v60, %v3840_v21 }
 0x253   :  { %5473 = vst [vmem:[#allocation14_spill] sm:$0xff] %v4940_v34  ;;  %v2717_v34 = vmul.f32 %v5475_v43, %v2691_v38 }
 0x254   :  { %2545 = vrot.lane.b32.xlu0 %v2540_v51, %s3628_s13  ;;  %3416 = vrot.lane.b32.xlu1 %v3402_v32, %s3630_s17  ;;  %v2634_v51 = vcombine.low %v2622_v24, %v2623_v28  ;;  %v2626_v32 = vmul.f32 %v5474_v18, %v2612_v47  ;;  %v2718_v28 = vmul.f32 %v5475_v43, %v2695_v63 }
 0x255   :  { %v2703_v47 = vrot.slane %v2673_v11, %v3840_v21  ;;  %v3500_v60 = vmul.f32 %v3995_v49, %v3489_v23  ;;  %v3209_v63 = vmul.f32 %v5467_v55, %v4742_v58  ;;  %v3210_v49 = vmul.f32 %v5467_v55, %v4745_v0 }
 0x256   :  { %v4957_v6 = vpop.permute.xlu1 %1148  ;;  %v4959_v9 = vpop.permute.xlu0 %3124  ;;  %v2635_v18 = vcombine.low %v2625_v45, %v2626_v32  ;;  %v2721_v45 = vmul.f32 %v5475_v43, %v2707_v20  ;;  %v3212_v23 = vmul.f32 %v5467_v55, %v4756_v52 }
 0x257   :  { %v2720_v38 = vmul.f32 %v5475_v43, %v2703_v47  ;;  %v3213_v43 = vmul.f32 %v5467_v55, %v4759_v36  ;;  %v3306_v47 = vmul.f32 %v5468_v53, %v4739_v3  ;;  %v3308_v55 = vmul.f32 %v5468_v53, %v4748_v50 }
 0x258   :  { %3420 = vrot.lane.b32.xlu1 %v3405_v42, %s3630_s17  ;;  %2636 = vrot.lane.b32.xlu0 %v2634_v51, %s3628_s13  ;;  %v2729_v42 = vcombine.low %v2717_v34, %v2718_v28  ;;  %v3305_v28 = vmul.f32 %v5468_v53, %v4732_v46  ;;  %v3400_v3 = vmul.f32 %v5472_v15, %v4788_v8  ;;  %v277_v50 = vrot.slane %v4820_v33, 4  ;;  %v184_v33 = vld [vmem:[%s5368_s0] sm:$0xff] }
 0x259   :  { %v2730_v32 = vcombine.low %v2720_v38, %v2721_v45  ;;  %v3222_v0 = vcombine.low %v3212_v23, %v3213_v43  ;;  %v3401_v45 = vmul.f32 %v5472_v15, %v4797_v10  ;;  %v279_v10 = vrot.slane %v4850_v1, 4 }
 0x25a   :  { %v4970_v44 = vpop.permute.xlu1 %1334  ;;  %v4972_v24 = vpop.permute.xlu0 %461  ;;  %v3317_v36 = vcombine.low %v3305_v28, %v3306_v47 }
 0x25c   :  { %3511 = vrot.lane.b32.xlu1 %v3497_v25, %s3630_s17  ;;  %2640 = vrot.lane.b32.xlu0 %v2635_v18, %s3628_s13  ;;  %v3221_v25 = vcombine.low %v3209_v63, %v3210_v49 }
 0x25e   :  { %v4979_v61 = vpop.permute.xlu1 %1338  ;;  %v4981_v29 = vpop.permute.xlu0 %465 }
 0x260   :  { %3515 = vrot.lane.b32.xlu1 %v3500_v60, %s3630_s17  ;;  %2731 = vrot.lane.b32.xlu0 %v2729_v42, %s3628_s13  ;;  %v3309_v60 = vmul.f32 %v5468_v53, %v4751_v37  ;;  %v3412_v53 = vcombine.low %v3400_v3, %v3401_v45  ;;  %v3403_v37 = vmul.f32 %v5472_v15, %v4812_v41 }
 0x262   :  { %v4988_v11 = vpop.permute.xlu1 %1533  ;;  %v4990_v51 = vpop.permute.xlu0 %1048  ;;  %v3318_v38 = vcombine.low %v3308_v55, %v3309_v60  ;;  %v185_v55 = vld [vmem:[%s5368_s0 + $0x8] sm:$0xff]  ;;  %s3636_s0 = smov [#allocation3]  }
 0x263   :  { %s3536_s26 = sshll.u32 %s3636_s0, 4  ;;  %s3537_s26 = int_to_ptr.vmem [resolvable:$true] %s3536_s26 }
 0x264   :  { %2735 = vrot.lane.b32.xlu0 %v2730_v32, %s3628_s13  ;;  %s3603_s27 = scalar_lea.vmem %s3537_s26, 256  ;;  %p3608_p1 = scmp.lt.s32.totalorder %s3537_s26, %s3537_s26 }
 0x265   :  { %p3604_p0 = scmp.ne.s32.totalorder %s3537_s26, %s3603_s27  ;;  %p3609_p2 = scmp.lt.s32.totalorder %s3603_s27, %s3603_s27 }
 0x266   :  { %v4997_v34 = vpop.permute.xlu1 %1537  ;;  %v4999_v22 = vpop.permute.xlu0 %1052 }
 0x267   :  { %p3610_p3 = por %p3609_p2, %p3608_p1 }
 0x268   :  { %3223 = vrot.lane.b32.xlu0 %v3221_v25, %s3630_s17  ;;  %v3404_v25 = vmul.f32 %v5472_v15, %v4815_v30  ;;  %v373_v30 = vrot.slane %v4865_v14, 4  ;;  %v375_v14 = vrot.slane %v4886_v7, 4  ;;  %v563_v7 = vrot.slane %v4901_v31, 4 }
 0x269   :  { %p3611_p4 = pnand %p3610_p3, %p3604_p0 }
 0x26a   :  { %v5006_v18 = vpop.permute.xlu1 %1723  ;;  %v5008_v58 = vpop.permute.xlu0 %1239  ;;  %v3413_v41 = vcombine.low %v3403_v37, %v3404_v25  ;;  %v665_v37 = vrot.slane %v4701_v27, 4 }
 0x26c   :  { %3227 = vrot.lane.b32.xlu0 %v3222_v0, %s3630_s17 }
 0x26e   :  { %v5015_v20 = vpop.permute.xlu1 %1727  ;;  %v5017_v52 = vpop.permute.xlu0 %1243 }
 0x270   :  { %3319 = vrot.lane.b32.xlu0 %v3317_v36, %s3630_s17 }
 0x272   :  { %v269_v42 = vpop.permute.xlu1 %268  ;;  %v5024_v46 = vpop.permute.xlu0 %1437 }
 0x273   :  { %v276_v32 = vrot.slane %v269_v42, 4 }
 0x274   :  { %3323 = vrot.lane.b32.xlu0 %v3318_v38, %s3630_s17 }
 0x275   :  { %v280_v8 = vsel %vm26_vm0, %v276_v32, %v277_v50  ;;  %v5476_v50 = vcombine.low %v4635_v48, %v4639_v56  ;;  %v468_v48 = vrot.slane %v4972_v24, 4  ;;  %v667_v24 = vrot.slane %v4734_v13, 4 }
 0x276   :  { %v273_v63 = vpop.permute.xlu1 %272  ;;  %v5032_v49 = vpop.permute.xlu0 %1441  ;;  %v282_v43 = vsel %vm281_vm6, %v269_v42, %v280_v8  ;;  %v5477_v8 = vld [vmem:[#allocation48_spill] sm:$0xff] }
 0x277   :  { %v278_v23 = vrot.slane %v273_v63, 4  ;;  %v287_v36 = vadd.f32 %v282_v43, %v184_v33 }
 0x278   :  { %3414 = vrot.lane.b32.xlu0 %v3412_v53, %s3630_s17  ;;  %v762_v53 = vrot.slane %v4626_v17, 4 }
 0x279   :  { %v283_v15 = vsel %vm26_vm0, %v278_v23, %v279_v10  ;;  %v666_v23 = vrot.slane %v5477_v8, 4  ;;  %v764_v10 = vrot.slane %v4654_v62, 4  ;;  %v5478_v62 = vcombine.low %v4645_v19, %v4649_v2 }
 0x27a   :  { %v365_v0 = vpop.permute.xlu1 %364  ;;  %v5045_v28 = vpop.permute.xlu0 %1628  ;;  %v284_v60 = vsel %vm281_vm6, %v273_v63, %v283_v15  ;;  %v952_v15 = vrot.slane %v4669_v54, 4  ;;  %v856_v54 = vrot.slane %v4765_v35, 4  ;;  %v470_v19 = vrot.slane %v4981_v29, 4 }
 0x27b   :  { %v372_v47 = vrot.slane %v365_v0, 4  ;;  %v288_v25 = vadd.f32 %v284_v60, %v185_v55  ;;  %v669_v31 = vsel %vm26_vm0, %v665_v37, %v666_v23  ;;  %v951_v37 = vrot.slane %v4767_v26, 4 }
 0x27c   :  { %3418 = vrot.lane.b32.xlu0 %v3413_v41, %s3630_s17  ;;  %v671_v29 = vsel %vm670_vm5, %v4701_v27, %v669_v31 }
 0x27d   :  { %v376_v1 = vsel %vm26_vm0, %v372_v47, %v373_v30  ;;  %v668_v30 = vrot.slane %v4656_v57, 4  ;;  %v857_v47 = vrot.slane %v4671_v5, 4  ;;  %v763_v57 = vrot.slane %v4736_v40, 4 }
 0x27e   :  { %v377_v42 = vsel %vm281_vm6, %v365_v0, %v376_v1  ;;  %v369_v38 = vpop.permute.xlu1 %368  ;;  %v5056_v3 = vpop.permute.xlu0 %1632  ;;  %v565_v5 = vrot.slane %v4921_v59, 4 }
 0x27f   :  { %v382_v45 = vadd.f32 %v377_v42, %v287_v36  ;;  %v374_v32 = vrot.slane %v369_v38, 4  ;;  %v761_v36 = vrot.slane %v4703_v16, 4 }
 0x280   :  { %3509 = vrot.lane.b32.xlu0 %v5476_v50, %s3630_s17  ;;  %v859_v50 = vrot.slane %v4689_v12, 4  ;;  %v767_v12 = vsel %vm26_vm0, %v763_v57, %v764_v10  ;;  %v1055_v10 = vrot.slane %v4990_v51, 4 }
 0x281   :  { %v378_v63 = vsel %vm26_vm0, %v374_v32, %v375_v14  ;;  %v765_v59 = vsel %vm26_vm0, %v761_v36, %v762_v53 }
 0x282   :  { %v379_v33 = vsel %vm281_vm6, %v369_v38, %v378_v63  ;;  %v460_v43 = vpop.permute.xlu1 %459  ;;  %v555_v0 = vpop.permute.xlu0 %554 }
 0x283   :  { %v383_v56 = vadd.f32 %v379_v33, %v288_v25  ;;  %v467_v41 = vrot.slane %v460_v43, 4  ;;  %v562_v17 = vrot.slane %v555_v0, 4  ;;  %v5479_v25 = vld [vmem:[#allocation49_spill] sm:$0xff] }
 0x284   :  { %3513 = vrot.lane.b32.xlu0 %v5478_v62, %s3630_s17  ;;  %v858_v63 = vrot.slane %v5479_v25, 4  ;;  %v766_v62 = vsel %vm670_vm5, %v4703_v16, %v765_v59 }
 0x285   :  { %v471_v1 = vsel %vm26_vm0, %v467_v41, %v468_v48  ;;  %v566_v55 = vsel %vm26_vm0, %v562_v17, %v563_v7 }
 0x286   :  { %v472_v60 = vsel %vm281_vm6, %v460_v43, %v471_v1  ;;  %v464_v42 = vpop.permute.xlu1 %463  ;;  %v559_v38 = vpop.permute.xlu0 %558  ;;  %v567_v8 = vsel %vm281_vm6, %v555_v0, %v566_v55  ;;  %v860_v0 = vsel %vm26_vm0, %v856_v54, %v857_v47  ;;  %v955_v1 = vsel %vm26_vm0, %v951_v37, %v952_v15 }
 0x287   :  { %v477_v2 = vadd.f32 %v472_v60, %v382_v45  ;;  %v469_v14 = vrot.slane %v464_v42, 4  ;;  %v564_v32 = vrot.slane %v559_v38, 4  ;;  %v672_v45 = vsel %vm26_vm0, %v667_v24, %v668_v30 }
 0x288   :  { %v862_v27 = vsel %vm26_vm0, %v858_v63, %v859_v50  ;;  %v673_v47 = vsel %vm670_vm5, %v4734_v13, %v672_v45  ;;  %v861_v16 = vsel %vm670_vm5, %v4765_v35, %v860_v0  ;;  %v1151_v15 = vrot.slane %v4938_v39, 4 }
 0x289   :  { %v572_v23 = vadd.f32 %v567_v8, %v477_v2  ;;  %v473_v7 = vsel %vm26_vm0, %v469_v14, %v470_v19  ;;  %v568_v33 = vsel %vm26_vm0, %v564_v32, %v565_v5  ;;  %v863_v13 = vsel %vm670_vm5, %v5479_v25, %v862_v27 }
 0x28a   :  { %v474_v43 = vsel %vm281_vm6, %v464_v42, %v473_v7  ;;  %v1047_v48 = vpop.permute.xlu1 %1046  ;;  %v1143_v41 = vpop.permute.xlu0 %1142  ;;  %v569_v30 = vsel %vm281_vm6, %v559_v38, %v568_v33  ;;  %v956_v38 = vsel %vm670_vm5, %v4767_v26, %v955_v1  ;;  %v1153_v35 = vrot.slane %v4957_v6, 4 }
 0x28b   :  { %v676_v17 = vadd.f32 %v671_v29, %v572_v23  ;;  %v478_v53 = vadd.f32 %v474_v43, %v383_v56  ;;  %v1054_v36 = vrot.slane %v1047_v48, 4  ;;  %v1150_v55 = vrot.slane %v1143_v41, 4  ;;  %v5480_v29 = vld [vmem:[#allocation50_spill] sm:$0xff] }
 0x28c   :  { %v768_v56 = vsel %vm670_vm5, %v4736_v40, %v767_v12  ;;  %v1057_v40 = vrot.slane %v4999_v22, 4  ;;  %v1341_v32 = vrot.slane %v4970_v44, 4  ;;  %v1246_v50 = vrot.slane %v5008_v58, 4 }
 0x28d   :  { %v771_v31 = vadd.f32 %v766_v62, %v676_v17  ;;  %v573_v24 = vadd.f32 %v569_v30, %v478_v53  ;;  %v1058_v51 = vsel %vm26_vm0, %v1054_v36, %v1055_v10  ;;  %v1154_v14 = vsel %vm26_vm0, %v1150_v55, %v1151_v15 }
 0x28e   :  { %v1051_v57 = vpop.permute.xlu1 %1050  ;;  %v1147_v54 = vpop.permute.xlu0 %1146  ;;  %v1060_v37 = vsel %vm1059_vm7, %v1047_v48, %v1058_v51  ;;  %v1155_v6 = vsel %vm1059_vm7, %v1143_v41, %v1154_v14  ;;  %v1343_v12 = vrot.slane %v4979_v61, 4  ;;  %v1248_v43 = vrot.slane %v5017_v52, 4 }
 0x28f   :  { %v677_v5 = vadd.f32 %v673_v47, %v573_v24  ;;  %v866_v60 = vadd.f32 %v861_v16, %v771_v31  ;;  %v1056_v42 = vrot.slane %v1051_v57, 4  ;;  %v1152_v19 = vrot.slane %v1147_v54, 4 }
 0x290   :  { %v1540_v24 = vrot.slane %v4988_v11, 4  ;;  %v1444_v16 = vrot.slane %v5024_v46, 4  ;;  %v1542_v11 = vrot.slane %v4997_v34, 4  ;;  %v1446_v46 = vrot.slane %v5032_v49, 4  ;;  %v5482_v34 = vld [vmem:[#allocation41_spill] sm:$0xff] }
 0x291   :  { %v772_v2 = vadd.f32 %v768_v56, %v677_v5  ;;  %v961_v39 = vadd.f32 %v956_v38, %v866_v60  ;;  %v1061_v26 = vsel %vm26_vm0, %v1056_v42, %v1057_v40  ;;  %v1156_v7 = vsel %vm26_vm0, %v1152_v19, %v1153_v35  ;;  %v5145_v38 = vld [vmem:[#allocation2 + $0x4] sm:$0xff] }
 0x292   :  { %v1238_v63 = vpop.permute.xlu1 %1237  ;;  %v1333_v8 = vpop.permute.xlu0 %1332  ;;  %v1062_v48 = vsel %vm1059_vm7, %v1051_v57, %v1061_v26  ;;  %v1157_v27 = vsel %vm1059_vm7, %v1147_v54, %v1156_v7  ;;  %v5159_v7 = vld [vmem:[#allocation2 + $0x14] sm:$0xff] }
 0x293   :  { %v1065_v25 = vadd.f32 %v1060_v37, %v961_v39  ;;  %v867_v59 = vadd.f32 %v863_v13, %v772_v2  ;;  %v1245_v22 = vrot.slane %v1238_v63, 4  ;;  %v1340_v23 = vrot.slane %v1333_v8, 4 }
 0x295   :  { %v1160_v33 = vadd.f32 %v1155_v6, %v1065_v25  ;;  %v962_v45 = vadd.f32 %v5480_v29, %v867_v59  ;;  %v1249_v44 = vsel %vm26_vm0, %v1245_v22, %v1246_v50  ;;  %v1344_v58 = vsel %vm26_vm0, %v1340_v23, %v1341_v32  ;;  %v5481_v32 = vld [vmem:[#allocation9_spill] sm:$0xff]  ;;  %v5483_v29 = vld [vmem:[#allocation6_spill] sm:$0xff] }
 0x296   :  { %v1250_v0 = vsel %vm1059_vm7, %v1238_v63, %v1249_v44  ;;  %v1242_v17 = vpop.permute.xlu1 %1241  ;;  %v1337_v53 = vpop.permute.xlu0 %1336  ;;  %v1345_v30 = vsel %vm1059_vm7, %v1333_v8, %v1344_v58  ;;  %v1750_v50 = vrot.slane %v5145_v38, %v5481_v32  ;;  %v1754_v8 = vrot.slane %v5145_v38, %v5482_v34  ;;  %v5484_v44 = vld [vmem:[#allocation40_spill] sm:$0xff] }
 0x297   :  { %v1066_v41 = vadd.f32 %v1062_v48, %v962_v45  ;;  %v1255_v36 = vadd.f32 %v1250_v0, %v1160_v33  ;;  %v1247_v62 = vrot.slane %v1242_v17, 4  ;;  %v1342_v1 = vrot.slane %v1337_v53, 4 }
 0x298   :  { %v1635_v22 = vrot.slane %v5045_v28, 4  ;;  %v1807_v45 = vrot.slane %v5145_v38, %v5483_v29  ;;  %v1811_v58 = vrot.slane %v5145_v38, %v5484_v44  ;;  %v1770_v48 = vrot.slane %v1750_v50, %v5481_v32 }
 0x299   :  { %v1161_v10 = vadd.f32 %v1157_v27, %v1066_v41  ;;  %v1350_v31 = vadd.f32 %v1345_v30, %v1255_v36  ;;  %v1251_v61 = vsel %vm26_vm0, %v1247_v62, %v1248_v43  ;;  %v1346_v52 = vsel %vm26_vm0, %v1342_v1, %v1343_v12 }
 0x29a   :  { %v1252_v55 = vsel %vm1059_vm7, %v1242_v17, %v1251_v61  ;;  %v1436_v47 = vpop.permute.xlu1 %1435  ;;  %v1532_v56 = vpop.permute.xlu0 %1531  ;;  %v1347_v5 = vsel %vm1059_vm7, %v1337_v53, %v1346_v52  ;;  %v1774_v0 = vrot.slane %v1754_v8, %v5481_v32  ;;  %v1758_v41 = vrot.slane %v5159_v7, %v5481_v32  ;;  %v5485_v61 = vld [vmem:[#allocation10_spill] sm:$0xff] }
 0x29b   :  { %v1256_v15 = vadd.f32 %v1252_v55, %v1161_v10  ;;  %v1443_v57 = vrot.slane %v1436_v47, 4  ;;  %v1539_v54 = vrot.slane %v1532_v56, 4  ;;  %v1637_v62 = vrot.slane %v5056_v3, 4 }
 0x29c   :  { %v1762_v30 = vrot.slane %v5159_v7, %v5482_v34  ;;  %v1730_v10 = vrot.slane %v5006_v18, 4  ;;  %v1788_v52 = vmul.f32 %v5485_v61, %v1770_v48  ;;  %v1831_v55 = vrot.slane %v1811_v58, %v5483_v29 }
 0x29d   :  { %v1351_v60 = vadd.f32 %v1347_v5, %v1256_v15  ;;  %v1447_v51 = vsel %vm26_vm0, %v1443_v57, %v1444_v16  ;;  %v1543_v42 = vsel %vm26_vm0, %v1539_v54, %v1540_v24  ;;  %v1789_v24 = vmul.f32 %v5485_v61, %v1774_v0 }
 0x29e   :  { %v1449_v13 = vsel %vm1448_vm8, %v1436_v47, %v1447_v51  ;;  %v1440_v40 = vpop.permute.xlu1 %1439  ;;  %v1536_v19 = vpop.permute.xlu0 %1535  ;;  %v1544_v14 = vsel %vm1448_vm8, %v1532_v56, %v1543_v42  ;;  %v1778_v16 = vrot.slane %v1758_v41, %v5481_v32  ;;  %v1815_v15 = vrot.slane %v5159_v7, %v5483_v29  ;;  %v5486_v51 = vld [vmem:[#allocation12_spill] sm:$0xff] }
 0x29f   :  { %v1454_v35 = vadd.f32 %v1449_v13, %v1350_v31  ;;  %v1445_v2 = vrot.slane %v1440_v40, 4  ;;  %v1541_v39 = vrot.slane %v1536_v19, 4  ;;  %v1827_v31 = vrot.slane %v1807_v45, %v5483_v29 }
 0x2a0   :  { %v1782_v54 = vrot.slane %v1762_v30, %v5481_v32  ;;  %v1819_v5 = vrot.slane %v5159_v7, %v5484_v44  ;;  %v1864_v42 = vrot.slane %v5145_v38, %v5486_v51  ;;  %v1790_v32 = vmul.f32 %v5485_v61, %v1778_v16 }
 0x2a1   :  { %v1549_v37 = vadd.f32 %v1544_v14, %v1454_v35  ;;  %v1450_v26 = vsel %vm26_vm0, %v1445_v2, %v1446_v46  ;;  %v1545_v63 = vsel %vm26_vm0, %v1541_v39, %v1542_v11  ;;  %v5487_v11 = vld [vmem:[#allocation42_spill] sm:$0xff]  ;;  %v1796_v2 = vcombine.low %v1788_v52, %v1789_v24  ;;  %v5490_v52 = vld [vmem:[#allocation8_spill] sm:$0xff] }
 0x2a2   :  { %v1451_v25 = vsel %vm1448_vm8, %v1440_v40, %v1450_v26  ;;  %v1627_v59 = vpop.permute.xlu1 %1626  ;;  %v1722_v49 = vpop.permute.xlu0 %1721  ;;  %v1546_v33 = vsel %vm1448_vm8, %v1536_v19, %v1545_v63  ;;  %v1868_v13 = vrot.slane %v5145_v38, %v5487_v11  ;;  %v1732_v40 = vrot.slane %v5015_v20, 4  ;;  %v5488_v19 = vld [vmem:[#allocation7_spill] sm:$0xff] }
 0x2a3   :  { %v1455_v23 = vadd.f32 %v1451_v25, %v1351_v60  ;;  %v1634_v6 = vrot.slane %v1627_v59, 4  ;;  %v1729_v17 = vrot.slane %v1722_v49, 4  ;;  %v1845_v46 = vmul.f32 %v5488_v19, %v1827_v31 }
 0x2a4   :  { %v1846_v39 = vmul.f32 %v5488_v19, %v1831_v55  ;;  %v1835_v26 = vrot.slane %v1815_v15, %v5483_v29  ;;  %v1839_v63 = vrot.slane %v1819_v5, %v5483_v29  ;;  %v1884_v34 = vrot.slane %v1864_v42, %v5486_v51 }
 0x2a5   :  { %v1550_v12 = vadd.f32 %v1546_v33, %v1455_v23  ;;  %v1638_v43 = vsel %vm26_vm0, %v1634_v6, %v1635_v22  ;;  %v1733_v56 = vsel %vm26_vm0, %v1729_v17, %v1730_v10  ;;  %v1888_v8 = vrot.slane %v1868_v13, %v5486_v51 }
 0x2a6   :  { %v1639_v28 = vsel %vm1448_vm8, %v1627_v59, %v1638_v43  ;;  %v1631_v53 = vpop.permute.xlu1 %1630  ;;  %v1726_v36 = vpop.permute.xlu0 %1725  ;;  %v1734_v35 = vsel %vm1448_vm8, %v1722_v49, %v1733_v56  ;;  %v1921_v25 = vrot.slane %v5145_v38, %v3840_v21  ;;  %v1925_v59 = vrot.slane %v5145_v38, %v4135_v4  ;;  %v5489_v38 = vld [vmem:[#allocation11_spill] sm:$0xff] }
 0x2a7   :  { %v1644_v1 = vadd.f32 %v1639_v28, %v1549_v37  ;;  %v1636_v27 = vrot.slane %v1631_v53, 4  ;;  %v1731_v60 = vrot.slane %v1726_v36, 4  ;;  %v1791_v37 = vmul.f32 %v5485_v61, %v1782_v54  ;;  %v5491_v54 = vld [vmem:[#allocation44_spill] sm:$0xff] }
 0x2a8   :  { %v1872_v22 = vrot.slane %v5159_v7, %v5486_v51  ;;  %v1876_v23 = vrot.slane %v5159_v7, %v5487_v11  ;;  %v1853_v6 = vcombine.low %v1845_v46, %v1846_v39  ;;  %v1847_v58 = vmul.f32 %v5488_v19, %v1835_v26  ;;  %v5492_v39 = vld [vmem:[#allocation19_spill] sm:$0xff] }
 0x2a9   :  { %v1640_v47 = vsel %vm26_vm0, %v1636_v27, %v1637_v62  ;;  %v1739_v14 = vadd.f32 %v1734_v35, %v1644_v1  ;;  %v1735_v20 = vsel %vm26_vm0, %v1731_v60, %v1732_v40  ;;  %v1797_v44 = vcombine.low %v1790_v32, %v1791_v37  ;;  %v5493_v37 = vld [vmem:[#allocation45_spill] sm:$0xff] }
 0x2aa   :  { %v1641_v3 = vsel %vm1448_vm8, %v1631_v53, %v1640_v47  ;;  %v5186_v18 = vpop.permute.xlu0 %2152  ;;  %v2057_v49 = vpop.permute.xlu1 %2056  ;;  %v1736_v29 = vsel %vm1448_vm8, %v1726_v36, %v1735_v20  ;;  %v1902_v48 = vmul.f32 %v5489_v38, %v1884_v34  ;;  %v1903_v0 = vmul.f32 %v5489_v38, %v1888_v8  ;;  %v5494_v34 = vld [vmem:[#allocation46_spill] sm:$0xff] }
 0x2ab   :  { %v1645_v57 = vadd.f32 %v1641_v3, %v1550_v12  ;;  %v1800_v33 = vadd.f32 %v1796_v2, %v1739_v14  ;;  %v1848_v12 = vmul.f32 %v5488_v19, %v1839_v63  ;;  %v1941_v28 = vrot.slane %v1921_v25, %v3840_v21 }
 0x2ac   :  { %v1945_v17 = vrot.slane %v1925_v59, %v3840_v21  ;;  %v1892_v53 = vrot.slane %v1872_v22, %v5486_v51  ;;  %v1896_v41 = vrot.slane %v1876_v23, %v5486_v51  ;;  %v1929_v36 = vrot.slane %v5159_v7, %v3840_v21 }
 0x2ad   :  { %v1740_v43 = vadd.f32 %v1736_v29, %v1645_v57  ;;  %v1933_v62 = vrot.slane %v5159_v7, %v4135_v4  ;;  %v1857_v1 = vadd.f32 %v1853_v6, %v1800_v33  ;;  %v1854_v31 = vcombine.low %v1847_v58, %v1848_v12  ;;  %v5495_v58 = vld [vmem:[#allocation20_spill] sm:$0xff] }
 0x2ae   :  { %v5200_v50 = vpop.permute.xlu0 %2156  ;;  %v2061_v27 = vpop.permute.xlu1 %2060  ;;  %v1910_v61 = vcombine.low %v1902_v48, %v1903_v0  ;;  %v1959_v24 = vmul.f32 %v5490_v52, %v1941_v28  ;;  %v1960_v55 = vmul.f32 %v5490_v52, %v1945_v17  ;;  %v1904_v47 = vmul.f32 %v5489_v38, %v1892_v53  ;;  %v5497_v0 = vld [vmem:[#allocation47_spill] sm:$0xff] }
 0x2af   :  { %v1801_v10 = vadd.f32 %v1797_v44, %v1740_v43  ;;  %v1905_v56 = vmul.f32 %v5489_v38, %v1896_v41  ;;  %v1949_v3 = vrot.slane %v1929_v36, %v3840_v21  ;;  %v1953_v16 = vrot.slane %v1933_v62, %v3840_v21  ;;  %v5496_v43 = vld [vmem:[#allocation21_spill] sm:$0xff] }
 0x2b0   :  { %v1914_v4 = vadd.f32 %v1910_v61, %v1857_v1  ;;  %v2064_v7 = vrot.slane %v2057_v49, 4  ;;  %v2065_v5 = vrot.slane %v5491_v54, 4  ;;  %v1967_v60 = vcombine.low %v1959_v24, %v1960_v55  ;;  %v5498_v61 = vld [vmem:[#allocation22_spill] sm:$0xff]  ;;  %v5499_v24 = vld [vmem:[#allocation23_spill] sm:$0xff]  ;;  %v5500_v55 = vld [vmem:[#allocation24_spill] sm:$0xff] }
 0x2b1   :  { %v1858_v57 = vadd.f32 %v1854_v31, %v1801_v10  ;;  %v1911_v42 = vcombine.low %v1904_v47, %v1905_v56  ;;  %v1961_v11 = vmul.f32 %v5490_v52, %v1949_v3  ;;  %v1962_v13 = vmul.f32 %v5490_v52, %v1953_v16  ;;  %v5501_v56 = vld [vmem:[#allocation25_spill] sm:$0xff]  ;;  %v5502_v16 = vld [vmem:[#allocation26_spill] sm:$0xff] }
 0x2b2   :  { %v5217_v45 = vpop.permute.xlu0 %2342  ;;  %v2248_v51 = vpop.permute.xlu1 %2247  ;;  %v1971_v40 = vadd.f32 %v1967_v60, %v1914_v4  ;;  %v2068_v19 = vsel %vm26_vm0, %v2064_v7, %v2065_v5  ;;  %v2160_v21 = vrot.slane %v5186_v18, 4  ;;  %v2066_v2 = vrot.slane %v2061_v27, 4 }
 0x2b3   :  { %v1915_v35 = vadd.f32 %v1911_v42, %v1858_v57  ;;  %v2161_v14 = vrot.slane %v5492_v39, 4  ;;  %v2255_v32 = vrot.slane %v2248_v51, 4  ;;  %v2067_v26 = vrot.slane %v5493_v37, 4  ;;  %v5505_v39 = vld [vmem:[#allocation29_spill] sm:$0xff] }
 0x2b4   :  { %v2070_v63 = vsel %vm2069_vm9, %v2057_v49, %v2068_v19  ;;  %v1968_v20 = vcombine.low %v1961_v11, %v1962_v13  ;;  %v2256_v8 = vrot.slane %v5494_v34, 4  ;;  %v2162_v29 = vrot.slane %v5200_v50, 4  ;;  %v5503_v19 = vld [vmem:[#allocation27_spill] sm:$0xff] }
 0x2b5   :  { %v2075_v25 = vadd.f32 %v2070_v63, %v1971_v40  ;;  %v2164_v59 = vsel %vm26_vm0, %v2160_v21, %v2161_v14  ;;  %v2071_v33 = vsel %vm26_vm0, %v2066_v2, %v2067_v26  ;;  %v2163_v12 = vrot.slane %v5495_v58, 4  ;;  %v5507_v34 = vld [vmem:[#allocation31_spill] sm:$0xff] }
 0x2b6   :  { %v5231_v30 = vpop.permute.xlu0 %2346  ;;  %v2252_v22 = vpop.permute.xlu1 %2251  ;;  %v1972_v6 = vadd.f32 %v1968_v20, %v1915_v35  ;;  %v2259_v44 = vsel %vm26_vm0, %v2255_v32, %v2256_v8  ;;  %v2351_v38 = vrot.slane %v5496_v43, 4  ;;  %v2165_v49 = vsel %vm2069_vm9, %v5186_v18, %v2164_v59  ;;  %v5504_v35 = vld [vmem:[#allocation28_spill] sm:$0xff]  ;;  %v5506_v32 = vld [vmem:[#allocation30_spill] sm:$0xff]  ;;  %v5509_v43 = vld [vmem:[#allocation33_spill] sm:$0xff] }
 0x2b7   :  { %v2257_v48 = vrot.slane %v2252_v22, 4  ;;  %v2258_v28 = vrot.slane %v5497_v0, 4  ;;  %v2170_v17 = vadd.f32 %v2165_v49, %v2075_v25  ;;  %v2072_v53 = vsel %vm2069_vm9, %v2061_v27, %v2071_v33  ;;  %v5510_v49 = vld [vmem:[#allocation34_spill] sm:$0xff] }
 0x2b8   :  { %v2350_v41 = vrot.slane %v5217_v45, 4  ;;  %v2076_v62 = vadd.f32 %v2072_v53, %v1972_v6  ;;  %v2166_v1 = vsel %vm26_vm0, %v2162_v29, %v2163_v12  ;;  %v2260_v10 = vsel %vm2069_vm9, %v2248_v51, %v2259_v44  ;;  %v5508_v12 = vld [vmem:[#allocation32_spill] sm:$0xff] }
 0x2b9   :  { %v2353_v52 = vrot.slane %v5498_v61, 4  ;;  %v2454_v18 = vrot.slane %v5499_v24, 4  ;;  %v2456_v47 = vrot.slane %v5500_v55, 4  ;;  %v2550_v3 = vrot.slane %v5501_v56, 4 }
 0x2ba   :  { %v5239_v15 = vpop.permute.xlu0 %2445  ;;  %v2552_v27 = vrot.slane %v5502_v16, 4  ;;  %v2261_v4 = vsel %vm26_vm0, %v2257_v48, %v2258_v28  ;;  %v2167_v57 = vsel %vm2069_vm9, %v5200_v50, %v2166_v1  ;;  %v2265_v54 = vadd.f32 %v2260_v10, %v2170_v17  ;;  %v5295_v0 = vpop.permute.xlu1 %3229  ;;  %v5511_v17 = vld [vmem:[#allocation35_spill] sm:$0xff]  ;;  %v5513_v10 = vld [vmem:[#allocation53_spill] sm:$0xff] }
 0x2bb   :  { %v2453_v31 = vrot.slane %v5239_v15, 4  ;;  %v2354_v5 = vsel %vm26_vm0, %v2350_v41, %v2351_v38  ;;  %v2352_v60 = vrot.slane %v5231_v30, 4  ;;  %v2171_v42 = vadd.f32 %v2167_v57, %v2076_v62 }
 0x2bc   :  { %v2645_v21 = vrot.slane %v5503_v19, 4  ;;  %v2647_v2 = vrot.slane %v5504_v35, 4  ;;  %v2740_v14 = vrot.slane %v5505_v39, 4  ;;  %v2262_v50 = vsel %vm2069_vm9, %v2252_v22, %v2261_v4  ;;  %v5517_v19 = vld [vmem:[#allocation14_spill] sm:$0xff]  ;;  %v5518_v39 = vld [vmem:[#allocation37_spill] sm:$0xff] }
 0x2bd   :  { %v2457_v11 = vsel %vm26_vm0, %v2453_v31, %v2454_v18  ;;  %v2742_v37 = vrot.slane %v5506_v32, 4  ;;  %v2355_v26 = vsel %vm2069_vm9, %v5217_v45, %v2354_v5  ;;  %v2843_v8 = vrot.slane %v5507_v34, 4 }
 0x2be   :  { %v5246_v46 = vpop.permute.xlu0 %2449  ;;  %v2360_v25 = vadd.f32 %v2355_v26, %v2265_v54  ;;  %v2356_v59 = vsel %vm26_vm0, %v2352_v60, %v2353_v52  ;;  %v2459_v6 = vsel %vm2458_vm10, %v5239_v15, %v2457_v11  ;;  %v2266_v29 = vadd.f32 %v2262_v50, %v2171_v42  ;;  %v5512_v15 = vld [vmem:[#allocation51_spill] sm:$0xff]  ;;  %v5516_v60 = vld [vmem:[#allocation13_spill] sm:$0xff]  ;;  %v3322_v42 = vpop.permute.xlu1 %3321 }
 0x2bf   :  { %v2455_v13 = vrot.slane %v5246_v46, 4  ;;  %v2845_v45 = vrot.slane %v5508_v12, 4  ;;  %v2939_v38 = vrot.slane %v5509_v43, 4  ;;  %v2941_v48 = vrot.slane %v5510_v49, 4 }
 0x2c0   :  { %v3034_v53 = vrot.slane %v5511_v17, 4  ;;  %v2842_v41 = vrot.slane %v5512_v15, 4  ;;  %v2464_v62 = vadd.f32 %v2459_v6, %v2360_v25  ;;  %v2938_v31 = vrot.slane %v5513_v10, 4 }
 0x2c1   :  { %v2460_v22 = vsel %vm26_vm0, %v2455_v13, %v2456_v47  ;;  %v2357_v61 = vsel %vm2069_vm9, %v5231_v30, %v2356_v59  ;;  %v3129_v50 = vrot.slane %v5518_v39, 4  ;;  %v5520_v59 = vld [vmem:[#allocation36_spill] sm:$0xff]  ;;  %v3130_v12 = vrot.slane %v4959_v9, 4 }
 0x2c2   :  { %v2542_v23 = vpop.permute.xlu0 %2541  ;;  %v2461_v52 = vsel %vm2458_vm10, %v5246_v46, %v2460_v22  ;;  %v2361_v55 = vadd.f32 %v2357_v61, %v2266_v29  ;;  %v2846_v30 = vsel %vm26_vm0, %v2842_v41, %v2843_v8  ;;  %v2942_v5 = vsel %vm26_vm0, %v2938_v31, %v2939_v38  ;;  %v3326_v49 = vpop.permute.xlu1 %3325 }
 0x2c3   :  { %v2549_v7 = vrot.slane %v2542_v23, 4  ;;  %v3036_v6 = vrot.slane %v5520_v59, 4 }
 0x2c4   :  { %v2465_v57 = vadd.f32 %v2461_v52, %v2361_v55 }
 0x2c5   :  { %v2553_v63 = vsel %vm26_vm0, %v2549_v7, %v2550_v3  ;;  %v5514_v3 = vld [vmem:[#allocation52_spill] sm:$0xff] }
 0x2c6   :  { %v2546_v36 = vpop.permute.xlu0 %2545  ;;  %v2554_v28 = vsel %vm2458_vm10, %v2542_v23, %v2553_v63  ;;  %v2844_v16 = vrot.slane %v5514_v3, 4  ;;  %v5519_v63 = vld [vmem:[#allocation18_spill] sm:$0xff]  ;;  %v3417_v55 = vpop.permute.xlu1 %3416 }
 0x2c7   :  { %v2551_v20 = vrot.slane %v2546_v36, 4  ;;  %v2559_v23 = vadd.f32 %v2554_v28, %v2464_v62  ;;  %v5521_v28 = vld [vmem:[#allocation38_spill] sm:$0xff] }
 0x2c8   :  { %v2849_v32 = vsel %vm26_vm0, %v2844_v16, %v2845_v45  ;;  %v3131_v17 = vrot.slane %v5521_v28, 4 }
 0x2c9   :  { %v2555_v1 = vsel %vm26_vm0, %v2551_v20, %v2552_v27  ;;  %v5515_v27 = vld [vmem:[#allocation17_spill] sm:$0xff]  ;;  %v3035_v20 = vrot.slane %v5519_v63, 4  ;;  %v2850_v38 = vsel %vm2847_vm11, %v5514_v3, %v2849_v32 }
 0x2ca   :  { %v2637_v51 = vpop.permute.xlu0 %2636  ;;  %v3033_v4 = vrot.slane %v5515_v27, 4  ;;  %v2556_v7 = vsel %vm2458_vm10, %v2546_v36, %v2555_v1  ;;  %v3421_v3 = vpop.permute.xlu1 %3420 }
 0x2cb   :  { %v2644_v40 = vrot.slane %v2637_v51, 4  ;;  %v2560_v35 = vadd.f32 %v2556_v7, %v2465_v57  ;;  %v5522_v7 = vld [vmem:[#allocation39_spill] sm:$0xff]  ;;  %v3328_v57 = vrot.slane %v3322_v42, 4 }
 0x2cc   :  { %v3037_v26 = vsel %vm26_vm0, %v3033_v4, %v3034_v53 }
 0x2cd   :  { %v2648_v44 = vsel %vm26_vm0, %v2644_v40, %v2645_v21  ;;  %v3128_v21 = vrot.slane %v5517_v19, 4 }
 0x2ce   :  { %v2641_v33 = vpop.permute.xlu0 %2640  ;;  %v2649_v24 = vsel %vm2458_vm10, %v2637_v51, %v2648_v44  ;;  %v2940_v51 = vrot.slane %v5516_v60, 4 }
 0x2cf   :  { %v2646_v58 = vrot.slane %v2641_v33, 4  ;;  %v2654_v54 = vadd.f32 %v2649_v24, %v2559_v23 }
 0x2d0   :  { %v2944_v29 = vsel %vm26_vm0, %v2940_v51, %v2941_v48  ;;  %v3039_v48 = vsel %vm26_vm0, %v3035_v20, %v3036_v6 }
 0x2d1   :  { %v2650_v47 = vsel %vm26_vm0, %v2646_v58, %v2647_v2  ;;  %v3132_v58 = vsel %vm26_vm0, %v3128_v21, %v3129_v50  ;;  %v2945_v41 = vsel %vm2847_vm11, %v5516_v60, %v2944_v29  ;;  %v3040_v52 = vsel %vm2847_vm11, %v5519_v63, %v3039_v48 }
 0x2d2   :  { %v2732_v18 = vpop.permute.xlu0 %2731  ;;  %v2651_v11 = vsel %vm2458_vm10, %v2641_v33, %v2650_v47  ;;  %v2943_v33 = vsel %vm2847_vm11, %v5513_v10, %v2942_v5  ;;  %v3133_v62 = vsel %vm2847_vm11, %v5517_v19, %v3132_v58  ;;  %v3134_v10 = vsel %vm26_vm0, %v3130_v12, %v3131_v17 }
 0x2d3   :  { %v2739_v56 = vrot.slane %v2732_v18, 4  ;;  %v2655_v34 = vadd.f32 %v2651_v11, %v2560_v35  ;;  %v3512_v11 = vpop.permute.xlu1 %3511  ;;  %v3330_v19 = vrot.slane %v3326_v49, 4 }
 0x2d4   :  { %v3518_v63 = vrot.slane %v3512_v11, 4 }
 0x2d5   :  { %v2743_v46 = vsel %vm26_vm0, %v2739_v56, %v2740_v14  ;;  %v2848_v14 = vsel %vm2847_vm11, %v5512_v15, %v2846_v30  ;;  %v3232_v30 = vrot.slane %v5522_v7, 4 }
 0x2d6   :  { %v2744_v13 = vsel %vm2458_vm10, %v2732_v18, %v2743_v46  ;;  %v2736_v40 = vpop.permute.xlu0 %2735  ;;  %v3135_v18 = vsel %vm2847_vm11, %v4959_v9, %v3134_v10  ;;  %v3423_v46 = vrot.slane %v3417_v55, 4 }
 0x2d7   :  { %v2749_v36 = vadd.f32 %v2744_v13, %v2654_v54  ;;  %v2741_v2 = vrot.slane %v2736_v40, 4 }
 0x2d9   :  { %v2853_v8 = vadd.f32 %v2848_v14, %v2749_v36  ;;  %v2745_v25 = vsel %vm26_vm0, %v2741_v2, %v2742_v37  ;;  %v3038_v37 = vsel %vm2847_vm11, %v5515_v27, %v3037_v26  ;;  %v3425_v2 = vrot.slane %v3421_v3, 4 }
 0x2da   :  { %v2746_v22 = vsel %vm2458_vm10, %v2736_v40, %v2745_v25  ;;  %v3224_v44 = vpop.permute.xlu0 %3223  ;;  %v3234_v40 = vrot.slane %v5295_v0, 4 }
 0x2db   :  { %v2948_v45 = vadd.f32 %v2943_v33, %v2853_v8  ;;  %v2750_v43 = vadd.f32 %v2746_v22, %v2655_v34  ;;  %v3231_v16 = vrot.slane %v3224_v44, 4  ;;  %v3516_v8 = vpop.permute.xlu1 %3515 }
 0x2dc   :  { %v3520_v12 = vrot.slane %v3516_v8, 4 }
 0x2dd   :  { %v2854_v53 = vadd.f32 %v2850_v38, %v2750_v43  ;;  %v3043_v15 = vadd.f32 %v3038_v37, %v2948_v45  ;;  %v3235_v5 = vsel %vm26_vm0, %v3231_v16, %v3232_v30 }
 0x2de   :  { %v3228_v1 = vpop.permute.xlu0 %3227  ;;  %v3237_v36 = vsel %vm3236_vm12, %v3224_v44, %v3235_v5 }
 0x2df   :  { %v2949_v31 = vadd.f32 %v2945_v41, %v2854_v53  ;;  %v3138_v61 = vadd.f32 %v3133_v62, %v3043_v15  ;;  %v3233_v60 = vrot.slane %v3228_v1, 4 }
 0x2e1   :  { %v3044_v24 = vadd.f32 %v3040_v52, %v2949_v31  ;;  %v3242_v39 = vadd.f32 %v3237_v36, %v3138_v61  ;;  %v3238_v50 = vsel %vm26_vm0, %v3233_v60, %v3234_v40 }
 0x2e2   :  { %v3320_v23 = vpop.permute.xlu0 %3319  ;;  %v3239_v25 = vsel %vm3236_vm12, %v3228_v1, %v3238_v50 }
 0x2e3   :  { %v3139_v47 = vadd.f32 %v3135_v18, %v3044_v24  ;;  %v3327_v27 = vrot.slane %v3320_v23, 4 }
 0x2e5   :  { %v3331_v51 = vsel %vm26_vm0, %v3327_v27, %v3328_v57  ;;  %v3243_v6 = vadd.f32 %v3239_v25, %v3139_v47 }
 0x2e6   :  { %v3324_v56 = vpop.permute.xlu0 %3323  ;;  %v3332_v42 = vsel %vm3236_vm12, %v3320_v23, %v3331_v51 }
 0x2e7   :  { %v3329_v9 = vrot.slane %v3324_v56, 4  ;;  %v3337_v20 = vadd.f32 %v3332_v42, %v3242_v39 }
 0x2e9   :  { %v3333_v14 = vsel %vm26_vm0, %v3329_v9, %v3330_v19 }
 0x2ea   :  { %v3415_v4 = vpop.permute.xlu0 %3414  ;;  %v3334_v59 = vsel %vm3236_vm12, %v3324_v56, %v3333_v14 }
 0x2eb   :  { %v3422_v54 = vrot.slane %v3415_v4, 4  ;;  %v3338_v45 = vadd.f32 %v3334_v59, %v3243_v6 }
 0x2ed   :  { %v3426_v21 = vsel %vm26_vm0, %v3422_v54, %v3423_v46 }
 0x2ee   :  { %v3419_v13 = vpop.permute.xlu0 %3418  ;;  %v3427_v32 = vsel %vm3236_vm12, %v3415_v4, %v3426_v21 }
 0x2ef   :  { %v3424_v35 = vrot.slane %v3419_v13, 4  ;;  %v3432_v33 = vadd.f32 %v3427_v32, %v3337_v20 }
 0x2f1   :  { %v3428_v0 = vsel %vm26_vm0, %v3424_v35, %v3425_v2 }
 0x2f2   :  { %v3510_v26 = vpop.permute.xlu0 %3509  ;;  %v3429_v22 = vsel %vm3236_vm12, %v3419_v13, %v3428_v0 }
 0x2f3   :  { %v3517_v34 = vrot.slane %v3510_v26, 4  ;;  %v3433_v37 = vadd.f32 %v3429_v22, %v3338_v45 }
 0x2f5   :  { %v3521_v29 = vsel %vm26_vm0, %v3517_v34, %v3518_v63 }
 0x2f6   :  { %v3522_v44 = vsel %vm3236_vm12, %v3510_v26, %v3521_v29  ;;  %v3514_v58 = vpop.permute.xlu0 %3513 }
 0x2f7   :  { %v3527_v43 = vadd.f32 %v3522_v44, %v3432_v33  ;;  %v3519_v38 = vrot.slane %v3514_v58, 4 }
 0x2f9   :  { %3529 = vst [vmem:[#allocation3] sm:$0xff] %v3527_v43  ;;  %v3523_v49 = vsel %vm26_vm0, %v3519_v38, %v3520_v12 }
 0x2fa   :  { %v3524_v28 = vsel %vm3236_vm12, %v3514_v58, %v3523_v49 }
 0x2fb   :  { %v3528_v17 = vadd.f32 %v3524_v28, %v3433_v37 }
 0x2fd   :  { %3530 = vst [vmem:[#allocation3 + $0x8] sm:$0xff] %v3528_v17 }
 0x2fe   :  { %3614 = shalt.err (!%p3611_p4)
}
 0x2ff   :  { %s3637_s28 = smov 128   ;;  %s3638_s29 = smov 8  }
 0x300   :  { %3542 = dma.vmem_to_hbm [thread:$0]  %s3537_s26, 256, %s5372_s4, [#allocation4], %s3637_s28, %s3637_s28, %s3638_s29  }
 0x301   :  { %3623 = dma.done.wait [#allocation4], 256  }
 0x302   :  { %3624 = vsyncadd [#allocation4], 4294967040 }
 0x303   :  { %3546 = vsyncpa [#allocation4], 1 }

</bundles_post_ra>
